<compile_context>
chip_gen: v7x
topology: tpu7x:2x2x1
jax: 0.10.0
libtpu: 0.0.40
codegen_flags: <defaults>
</compile_context>

<pallas_src>
import functools

import jax
import jax.numpy as jnp
from jax import lax
from jax.experimental import pallas as pl
from jax.experimental.pallas import tpu as pltpu


# ----------------------------------------------------------------------------
# Pallas kernels
# ----------------------------------------------------------------------------
def _round_up(x, m):
    return (x + m - 1) // m * m


def pallas_linear(x, w, b, act="none"):
    """y = act(x @ w + b).  x: [M, K], w: [K, N], b: [N].

    K-tiled, bf16 inputs, fp32 accumulation in VMEM scratch, fp32 epilogue.
    """
    M, K = x.shape
    N = w.shape[1]

    # M tiling
    Mp = _round_up(M, 8)
    if Mp <= 256:
        tm = Mp
    else:
        tm = 256
        Mp = _round_up(Mp, 256)
    # N tiling (lane-dense, feeds the 256-wide MXU on v6e/v7x)
    Np = _round_up(N, 128)
    if Np <= 512:
        tn = Np
    else:
        tn = 512
        Np = _round_up(Np, 512)
    # K tiling (reduction axis is the LAST grid axis)
    if K <= 1024:
        Kp, tk = K, K
    else:
        tk = 512
        Kp = _round_up(K, 512)

    xp = jnp.pad(x.astype(jnp.float32), ((0, Mp - M), (0, Kp - K))).astype(jnp.bfloat16)
    wp = jnp.pad(w.astype(jnp.float32), ((0, Kp - K), (0, Np - N))).astype(jnp.bfloat16)
    bp = jnp.pad(b.astype(jnp.float32), ((0, Np - N),)).reshape(1, Np)

    def kernel(x_ref, w_ref, b_ref, o_ref, acc_ref):
        k = pl.program_id(2)

        @pl.when(k == 0)
        def _():
            acc_ref[...] = jnp.zeros_like(acc_ref)

        acc_ref[...] += jnp.dot(x_ref[...], w_ref[...],
                                preferred_element_type=jnp.float32)

        @pl.when(k == pl.num_programs(2) - 1)
        def _():
            y = acc_ref[...] + b_ref[...]
            if act == "relu":
                y = jnp.maximum(y, 0.0)
            elif act == "sigmoid":
                y = jax.nn.sigmoid(y)
            elif act == "tanh":
                y = jnp.tanh(y)
            o_ref[...] = y

    out = pl.pallas_call(
        kernel,
        out_shape=jax.ShapeDtypeStruct((Mp, Np), jnp.float32),
        grid=(Mp // tm, Np // tn, Kp // tk),
        in_specs=[
            pl.BlockSpec((tm, tk), lambda i, j, k: (i, k)),
            pl.BlockSpec((tk, tn), lambda i, j, k: (k, j)),
            pl.BlockSpec((1, tn), lambda i, j, k: (0, j)),
        ],
        out_specs=pl.BlockSpec((tm, tn), lambda i, j, k: (i, j)),
        scratch_shapes=[pltpu.VMEM((tm, tn), jnp.float32)],
        compiler_params=pltpu.CompilerParams(
            dimension_semantics=("parallel", "parallel", "arbitrary")),
    )(xp, wp, bp)
    return out[:M, :N]


def _interleave_gates(wf, wb, H):
    """Interleave two [..., 4H] gate tensors into [..., 8H]: per gate [fwd_H | bwd_H]."""
    lead = wf.shape[:-1]
    wf4 = wf.reshape(lead + (4, H))
    wb4 = wb.reshape(lead + (4, H))
    return jnp.concatenate([wf4, wb4], axis=-1).reshape(lead + (8 * H,))


def bilstm_seq(xp, w_hh_comb):
    """Fused bidirectional LSTM recurrence (both directions in one kernel).

    xp        : [T, B, 8H] -- gate-interleaved input projections where, per gate
                block of width 2H, the first H columns are the FORWARD projection
                at time t and the last H are the BACKWARD projection at original
                time T-1-t (time-reversal pre-applied in JAX).
    w_hh_comb : [2H, 8H]   -- block-diagonal (fwd rows feed fwd halves, bwd rows bwd).
    Returns (h_fwd, h_bwd): each [T, B, H], both indexed by the ORIGINAL time axis.
    """
    T, B, H8 = xp.shape
    H = H8 // 8
    H2 = 2 * H
    unroll = bool(T <= 16)

    def kernel(xp_ref, whh_ref, of_ref, ob_ref):
        whh = whh_ref[...]                      # hoisted: resident across the loop
        h0 = jnp.zeros((B, H2), jnp.float32)
        c0 = jnp.zeros((B, H2), jnp.float32)

        def step(t, carry):
            h, c = carry
            gates = xp_ref[t] + jnp.dot(h, whh, preferred_element_type=jnp.float32)
            i_g = jax.nn.sigmoid(gates[:, 0 * H2:1 * H2])
            f_g = jax.nn.sigmoid(gates[:, 1 * H2:2 * H2])
            g_g = jnp.tanh(gates[:, 2 * H2:3 * H2])
            o_g = jax.nn.sigmoid(gates[:, 3 * H2:4 * H2])
            c_new = f_g * c + i_g * g_g
            h_new = o_g * jnp.tanh(c_new)
            of_ref[t] = h_new[:, :H]            # forward hidden at time t
            ob_ref[T - 1 - t] = h_new[:, H:]    # backward hidden at original time T-1-t
            return (h_new, c_new)

        lax.fori_loop(0, T, step, (h0, c0), unroll=unroll)

    return pl.pallas_call(
        kernel,
        out_shape=(jax.ShapeDtypeStruct((T, B, H), jnp.float32),
                   jax.ShapeDtypeStruct((T, B, H), jnp.float32)),
    )(xp.astype(jnp.float32), w_hh_comb.astype(jnp.float32))


def attention_decode(batch_H, bH_proj, onehots, p):
    """Fused attention decoder (teacher forcing).  Everything stays in VMEM.

    batch_H : [B, T, D], bH_proj : [B, T, H], onehots : [S, B, nc].
    Returns hidden states [S, B, H].
    """
    B, T, D = batch_H.shape
    H = bH_proj.shape[-1]
    S = onehots.shape[0]
    unroll = bool(S <= 16)

    def kernel(bh_ref, bhp_ref, oh_ref, h2h_w_ref, h2h_b_ref, score_ref,
               wih_c_ref, wih_o_ref, whh_ref, b_ref, out_ref):
        # Hoist every loop-invariant load / broadcast out of the decode loop
        # (JAX does not CSE broadcast_in_dim inside the loop body).
        bh = bh_ref[...]                                           # [B, T, D]
        bhp = bhp_ref[...]                                         # [B, T, H]
        h2h_w = h2h_w_ref[...]
        h2h_b = h2h_b_ref[...]
        wih_c = wih_c_ref[...]
        wih_o = wih_o_ref[...]
        whh = whh_ref[...]
        bvec = b_ref[...]
        score_b = jnp.broadcast_to(score_ref[...].reshape(1, 1, H), (B, T, H))

        h0 = jnp.zeros((B, H), jnp.float32)
        c0 = jnp.zeros((B, H), jnp.float32)

        def step(i, carry):
            h, c = carry
            hproj = jnp.dot(h, h2h_w, preferred_element_type=jnp.float32) + h2h_b
            # attention score as a VPU+XLU reduction (no N=1 matmul)
            s = jnp.tanh(bhp + hproj[:, None, :])                  # [B, T, H]
            e = jnp.sum(s * score_b, axis=-1)                      # [B, T]
            e = e - jnp.max(e, axis=1, keepdims=True)
            a = jnp.exp(e)
            alpha = a * pl.reciprocal(jnp.sum(a, axis=1, keepdims=True), approx=True)
            context = jnp.sum(alpha[:, :, None] * bh, axis=1)      # [B, D]
            onehot = oh_ref[i]                                     # [B, nc]
            gates = (jnp.dot(context, wih_c, preferred_element_type=jnp.float32)
                     + jnp.dot(onehot, wih_o, preferred_element_type=jnp.float32)
                     + jnp.dot(h, whh, preferred_element_type=jnp.float32)
                     + bvec)
            i_g = jax.nn.sigmoid(gates[:, 0 * H:1 * H])
            f_g = jax.nn.sigmoid(gates[:, 1 * H:2 * H])
            g_g = jnp.tanh(gates[:, 2 * H:3 * H])
            o_g = jax.nn.sigmoid(gates[:, 3 * H:4 * H])
            c_new = f_g * c + i_g * g_g
            h_new = o_g * jnp.tanh(c_new)
            out_ref[i] = h_new
            return (h_new, c_new)

        lax.fori_loop(0, S, step, (h0, c0), unroll=unroll)

    return pl.pallas_call(
        kernel,
        out_shape=jax.ShapeDtypeStruct((S, B, H), jnp.float32),
    )(batch_H.astype(jnp.float32), bH_proj.astype(jnp.float32),
      onehots.astype(jnp.float32),
      p["h2h_w"].astype(jnp.float32),
      p["h2h_b"].reshape(1, -1).astype(jnp.float32),
      p["score_w"].reshape(1, -1).astype(jnp.float32),
      p["rnn_w_ih"][:D].astype(jnp.float32),
      p["rnn_w_ih"][D:].astype(jnp.float32),
      p["rnn_w_hh"].astype(jnp.float32),
      p["rnn_b"].reshape(1, -1).astype(jnp.float32))


# ----------------------------------------------------------------------------
# Model building blocks (glue in JAX, hot paths in Pallas)
# ----------------------------------------------------------------------------
def conv3x3_relu_nhwc(x, w, b):
    """x: [B, H, W, Cin] NHWC; w: [Cout, Cin, 3, 3] (PyTorch layout); stride 1, pad 1."""
    B, H, W, C = x.shape
    Cout = w.shape[0]
    xp = jnp.pad(x, ((0, 0), (1, 1), (1, 1), (0, 0)))
    cols = []
    for dh in range(3):
        for dw in range(3):
            cols.append(xp[:, dh:dh + H, dw:dw + W, :])
    cols = jnp.stack(cols, axis=3).reshape(B * H * W, 9 * C)          # tap-major, then C
    wmat = w.transpose(2, 3, 1, 0).reshape(9 * C, Cout)               # [3,3,Cin,Cout] flat
    y = pallas_linear(cols, wmat, b, act="relu")
    return y.reshape(B, H, W, Cout)


def maxpool2_nhwc(x):
    B, H, W, C = x.shape
    return x.reshape(B, H // 2, 2, W // 2, 2, C).max(axis=(2, 4))


def feature_extraction(x_nchw, p):
    x = jnp.transpose(x_nchw, (0, 2, 3, 1))          # NCHW -> NHWC once
    x = conv3x3_relu_nhwc(x, p["conv1_w"], p["conv1_b"])
    x = maxpool2_nhwc(x)
    x = conv3x3_relu_nhwc(x, p["conv2_w"], p["conv2_b"])
    x = maxpool2_nhwc(x)
    return x                                          # [B, H', W', output_channel]


def bidir_lstm(x, p):
    """BidirectionalLSTM(input, hidden, output): fused biLSTM + Linear(2H, out)."""
    B, T, I = x.shape
    H = p["w_hh_f"].shape[0]
    # gate-interleaved input projection (fwd & bwd in one matmul)
    w_ih_comb = _interleave_gates(p["w_ih_f"], p["w_ih_b"], H)         # [I, 8H]
    b_comb = _interleave_gates(p["b_f"], p["b_b"], H)                  # [8H]
    w_hh_comb = jnp.concatenate([
        _interleave_gates(p["w_hh_f"], jnp.zeros_like(p["w_hh_f"]), H),
        _interleave_gates(jnp.zeros_like(p["w_hh_b"]), p["w_hh_b"], H)], axis=0)  # [2H, 8H]

    xp = pallas_linear(x.reshape(B * T, I), w_ih_comb, b_comb)         # [B*T, 8H]
    # Pre-reverse the backward direction's time axis once in JAX so the kernel
    # does a single xp load per step (no per-step lane select).
    xp = xp.reshape(B, T, 4, 2, H)
    xp = jnp.stack([xp[:, :, :, 0, :], jnp.flip(xp[:, :, :, 1, :], axis=1)], axis=3)
    xp = xp.reshape(B, T, 8 * H).transpose(1, 0, 2)                    # [T, B, 8H]

    h_f, h_b = bilstm_seq(xp, w_hh_comb)                               # [T, B, H] each
    h = jnp.concatenate([h_f, h_b], axis=-1).transpose(1, 0, 2)        # [B, T, 2H]
    out = pallas_linear(h.reshape(B * T, 2 * H), p["w_out"], p["b_out"])
    return out.reshape(B, T, -1)


def sequence_modeling(x, layers):
    for p in layers:
        x = bidir_lstm(x, p)
    return x


def attention_predict(batch_H, text, p, num_steps, num_class):
    """Attention decoder with teacher forcing (is_train=True path)."""
    B, T, D = batch_H.shape
    H = p["h2h_w"].shape[1]
    bH_proj = pallas_linear(batch_H.reshape(B * T, D), p["i2h_w"],
                            jnp.zeros((H,), jnp.float32)).reshape(B, T, H)
    onehots = jax.nn.one_hot(text[:, :num_steps], num_class,
                             dtype=jnp.float32).transpose(1, 0, 2)     # [S, B, nc]
    hiddens = attention_decode(batch_H, bH_proj, onehots, p)           # [S, B, H]
    output_hiddens = hiddens.transpose(1, 0, 2).reshape(B * num_steps, H)
    probs = pallas_linear(output_hiddens, p["gen_w"], p["gen_b"])
    return probs.reshape(B, num_steps, num_class)


def project(x, p):
    """nn.Sequential(ReLU, Linear(hidden, 128))"""
    B, T, D = x.shape
    y = pallas_linear(jnp.maximum(x.reshape(B * T, D), 0.0), p["w"], p["b"])
    return y.reshape(B, T, -1)


def scl_loss(anchor, others, temperature):
    # TODO(synk): SCL definition not provided in source; InfoNCE-style stand-in.
    a = anchor / (jnp.linalg.norm(anchor, axis=-1, keepdims=True) + 1e-6)   # [B, D]
    o = jnp.mean(others, axis=2)                                            # [B, 3, D]
    o = o / (jnp.linalg.norm(o, axis=-1, keepdims=True) + 1e-6)
    logits = jnp.einsum("bd,bkd->bk", a, o) / temperature
    return -jnp.mean(jax.nn.log_softmax(logits, axis=-1)[:, 0])


# ----------------------------------------------------------------------------
# Parameter init (deterministic)
# ----------------------------------------------------------------------------
def _dense(key, fan_in, fan_out):
    k1, k2 = jax.random.split(key)
    s = 1.0 / (fan_in ** 0.5)
    w = jax.random.uniform(k1, (fan_in, fan_out), jnp.float32, -s, s)
    b = jax.random.uniform(k2, (fan_out,), jnp.float32, -s, s)
    return w, b


def _lstm_dir(key, inp, hid):
    k1, k2, k3 = jax.random.split(key, 3)
    s = 1.0 / (hid ** 0.5)
    return dict(
        w_ih=jax.random.uniform(k1, (inp, 4 * hid), jnp.float32, -s, s),
        w_hh=jax.random.uniform(k2, (hid, 4 * hid), jnp.float32, -s, s),
        b=jax.random.uniform(k3, (4 * hid,), jnp.float32, -s, s),
    )


def _bilstm(key, inp, hid, out):
    kf, kb, kl = jax.random.split(key, 3)
    f = _lstm_dir(kf, inp, hid)
    bwd = _lstm_dir(kb, inp, hid)
    w_out, b_out = _dense(kl, 2 * hid, out)
    return dict(w_ih_f=f["w_ih"], w_hh_f=f["w_hh"], b_f=f["b"],
                w_ih_b=bwd["w_ih"], w_hh_b=bwd["w_hh"], b_b=bwd["b"],
                w_out=w_out, b_out=b_out)


def init_params(key, opt):
    oc, hid, nc = opt["output_channel"], opt["hidden_size"], opt["num_class"]
    keys = jax.random.split(key, 20)
    p = {}
    # simplified VGG feature extractor
    p["conv1_w"] = 0.1 * jax.random.normal(keys[0], (oc // 2, opt["input_channel"], 3, 3))
    p["conv1_b"] = jnp.zeros((oc // 2,), jnp.float32)
    p["conv2_w"] = 0.1 * jax.random.normal(keys[1], (oc, oc // 2, 3, 3))
    p["conv2_b"] = jnp.zeros((oc,), jnp.float32)
    # decorrelated-learning linears
    p["l1_w"], p["l1_b"] = _dense(keys[2], oc, oc // 2)
    p["l2_w"], p["l2_b"] = _dense(keys[3], oc // 2, oc)
    p["l3_w"], p["l3_b"] = _dense(keys[4], hid, 4)
    p["l4_w"], p["l4_b"] = _dense(keys[5], hid, 4)
    # sequence modeling (content) and style branches
    p["seq"] = [_bilstm(keys[6], oc, hid, hid), _bilstm(keys[7], hid, hid, hid)]
    p["seq_style"] = [_bilstm(keys[8], oc, hid, hid), _bilstm(keys[9], hid, hid, hid)]
    # attention decoder
    att = {}
    att["i2h_w"] = _dense(keys[10], hid, hid)[0]
    att["h2h_w"], att["h2h_b"] = _dense(keys[11], hid, hid)
    att["score_w"] = _dense(keys[12], hid, 1)[0]
    rnn = _lstm_dir(keys[13], hid + nc, hid)
    att["rnn_w_ih"], att["rnn_w_hh"], att["rnn_b"] = rnn["w_ih"], rnn["w_hh"], rnn["b"]
    att["gen_w"], att["gen_b"] = _dense(keys[14], hid, nc)
    p["att"] = att
    # projection head
    pw, pb = _dense(keys[15], hid, 128)
    p["proj"] = dict(w=pw, b=pb)
    return p


# ----------------------------------------------------------------------------
# Full forward (is_train=True path)
# ----------------------------------------------------------------------------
def forward(params, x, text, opt, is_train=True):
    # Transformation: opt.Transformation == 'None' -> skipped
    feat = feature_extraction(x, params)                 # NHWC [B, H', W', C]
    # AdaptiveAvgPool2d((None,1)) on permute(0,3,1,2): mean over H'
    visual_feature = jnp.mean(feat, axis=1)              # [B, T=W', C]
    B, T, C = visual_feature.shape
    num_steps = opt["batch_max_length"] + 1

    if not is_train:
        m = jnp.mean(visual_feature, axis=1)
        h1 = pallas_linear(m, params["l1_w"], params["l1_b"], act="relu")
        bb = pallas_linear(h1, params["l2_w"], params["l2_b"], act="sigmoid")
        ctx = sequence_modeling(visual_feature * bb[:, None, :], params["seq"])
        return attention_predict(ctx, text, params["att"], num_steps, opt["num_class"])

    mid_len = T // 2
    visual_feature_aug = jnp.concatenate(
        [visual_feature[:, mid_len:], visual_feature[:, :mid_len]], axis=1)

    # batch orig + aug through the shared gate / LSTM / head weights
    vf_both = jnp.concatenate([visual_feature, visual_feature_aug], axis=0)   # [2B, T, C]
    m_both = jnp.mean(vf_both, axis=1)                                        # [2B, C]
    h1_both = pallas_linear(m_both, params["l1_w"], params["l1_b"], act="relu")
    bb_both = pallas_linear(h1_both, params["l2_w"], params["l2_b"], act="sigmoid")
    dd_both = 1.0 - bb_both

    vf_new_both = vf_both * bb_both[:, None, :]
    vf_style_both = vf_both * dd_both[:, None, :]

    ctx_both = sequence_modeling(vf_new_both, params["seq"])                  # [2B, T, H]
    style_both = sequence_modeling(vf_style_both, params["seq_style"])        # [2B, T, H]

    contextual_feature_new = ctx_both[:B]

    prediction = attention_predict(contextual_feature_new, text, params["att"],
                                   num_steps, opt["num_class"])

    ee_both = pallas_linear(jnp.mean(ctx_both, axis=1),
                            params["l4_w"], params["l4_b"])                   # [2B, 4]
    ee, ee_aug = ee_both[:B], ee_both[B:]
    ee_softmax = jax.nn.softmax(ee, axis=-1)
    ee_log = jax.nn.log_softmax(ee, axis=-1)
    ee_softmax_aug = jax.nn.softmax(ee_aug, axis=-1)
    ee_log_aug = jax.nn.log_softmax(ee_aug, axis=-1)

    ff_both = pallas_linear(jnp.mean(style_both, axis=1),
                            params["l3_w"], params["l3_b"])                   # [2B, 4]
    style_ff, style_ff_aug = ff_both[:B], ff_both[B:]

    # projection head applied to all 4 sequences in one matmul
    proj_out = project(jnp.concatenate([style_both, ctx_both], axis=0), params["proj"])
    style_feature_pro = proj_out[0:B]
    style_feature_aug_pro = proj_out[B:2 * B]
    contextual_feature_new_pro = proj_out[2 * B:3 * B]
    contextual_feature_new_aug_pro = proj_out[3 * B:4 * B]

    seq_style = jnp.mean(style_feature_pro, axis=1)
    other_fea = jnp.stack([style_feature_aug_pro, contextual_feature_new_pro,
                           contextual_feature_new_aug_pro], axis=1)
    scloss = scl_loss(seq_style, other_fea, 0.1)
    seq_style_aug = jnp.mean(style_feature_aug_pro, axis=1)
    other_fea_aug = jnp.stack([style_feature_pro, contextual_feature_new_pro,
                               contextual_feature_new_aug_pro], axis=1)
    scloss_aug = scl_loss(seq_style_aug, other_fea_aug, 0.1)

    return (prediction, ee_softmax, ee_log, style_ff, ee_softmax_aug,
            ee_log_aug, style_ff_aug, scloss, scloss_aug)


# ----------------------------------------------------------------------------
if __name__ == "__main__":
    opt = dict(
        Transformation="None", FeatureExtraction="VGG",
        input_channel=1, output_channel=64, hidden_size=32,
        num_class=10, imgH=16, imgW=32, batch_max_length=5,
    )
    key = jax.random.PRNGKey(0)
    kx, kt, kp = jax.random.split(key, 3)
    x = jax.random.normal(kx, (2, opt["input_channel"], opt["imgH"], opt["imgW"]),
                          jnp.float32)
    text = jax.random.randint(kt, (2, opt["batch_max_length"] + 1), 0,
                              opt["num_class"], jnp.int32)
    params = init_params(kp, opt)

    fwd = jax.jit(functools.partial(forward, opt=opt, is_train=True))
    outs = fwd(params, x, text)
    outs = jax.block_until_ready(outs)

    # sanity: expected shapes
    assert outs[0].shape == (2, opt["batch_max_length"] + 1, opt["num_class"])
    assert outs[1].shape == (2, 4) and outs[3].shape == (2, 4)
    assert outs[4].shape == (2, 4) and outs[6].shape == (2, 4)
    assert outs[7].shape == () and outs[8].shape == ()
    print("KERNEL_OK")
</pallas_src>

<mosaic_0001>
module attributes {stable_mosaic.version = 11 : i64} {
  func.func @kernel(%arg0: i32, %arg1: i32, %arg2: i32, %arg3: memref<256x9xbf16, #tpu.memory_space<vmem>>, %arg4: memref<9x128xbf16, #tpu.memory_space<vmem>>, %arg5: memref<1x128xf32, #tpu.memory_space<vmem>>, %arg6: memref<256x128xf32, #tpu.memory_space<vmem>>, %arg7: memref<256x128xf32, #tpu.memory_space<vmem>>) attributes {dimension_semantics = [#tpu.dimension_semantics<parallel>, #tpu.dimension_semantics<parallel>, #tpu.dimension_semantics<arbitrary>], iteration_bounds = array<i64: 4, 1, 1>, scalar_prefetch = 0 : i64, scratch_operands = 1 : i64, tpu.core_type = #tpu.core_type<tc>, window_params = [{transform_indices = @transform_0, window_bounds = array<i64: 256, 9>}, {transform_indices = @transform_1, window_bounds = array<i64: 9, 128>}, {transform_indices = @transform_2, window_bounds = array<i64: 1, 128>}, {transform_indices = @transform_3, window_bounds = array<i64: 256, 128>}]} {
    %c0_i32 = arith.constant 0 : i32
    %0 = arith.cmpi eq, %arg2, %c0_i32 : i32
    %1 = arith.extui %0 : i1 to i32
    %c0_i32_0 = arith.constant 0 : i32
    %2 = arith.cmpi ne, %1, %c0_i32_0 : i32
    scf.if %2 {
      %cst_10 = arith.constant 0.000000e+00 : f32
      %12 = vector.broadcast %cst_10 : f32 to vector<256x128xf32>
      %c0_11 = arith.constant 0 : index
      %c0_12 = arith.constant 0 : index
      %13 = vector.load %arg7[%c0_11, %c0_12] : memref<256x128xf32, #tpu.memory_space<vmem>>, vector<256x128xf32>
      tpu.vector_store %arg7[%c0_11, %c0_12], %12 {strides = array<i32>} : memref<256x128xf32, #tpu.memory_space<vmem>>, vector<256x128xf32>,
    } else {
    }
    %c0 = arith.constant 0 : index
    %c0_1 = arith.constant 0 : index
    %3 = vector.load %arg7[%c0, %c0_1] : memref<256x128xf32, #tpu.memory_space<vmem>>, vector<256x128xf32>
    %c0_2 = arith.constant 0 : index
    %c0_3 = arith.constant 0 : index
    %4 = vector.load %arg3[%c0_2, %c0_3] : memref<256x9xbf16, #tpu.memory_space<vmem>>, vector<256x9xbf16>
    %c0_4 = arith.constant 0 : index
    %c0_5 = arith.constant 0 : index
    %5 = vector.load %arg4[%c0_4, %c0_5] : memref<9x128xbf16, #tpu.memory_space<vmem>>, vector<9x128xbf16>
    %cst = arith.constant dense<0.000000e+00> : vector<256x128xf32>
    %6 = tpu.matmul %4, %5, %cst {dimension_numbers = #tpu.dot_dimension_numbers<[1], [0], [0], [1], [0, 0, 1, 1], [], []>} : vector<256x9xbf16>, vector<9x128xbf16>, vector<256x128xf32> -> vector<256x128xf32>
    %7 = arith.addf %3, %6 : vector<256x128xf32>
    %c0_6 = arith.constant 0 : index
    %c0_7 = arith.constant 0 : index
    %8 = vector.load %arg7[%c0_6, %c0_7] : memref<256x128xf32, #tpu.memory_space<vmem>>, vector<256x128xf32>
    tpu.vector_store %arg7[%c0_6, %c0_7], %7 {strides = array<i32>} : memref<256x128xf32, #tpu.memory_space<vmem>>, vector<256x128xf32>,
    %c0_i32_8 = arith.constant 0 : i32
    %9 = arith.cmpi eq, %arg2, %c0_i32_8 : i32
    %10 = arith.extui %9 : i1 to i32
    %c0_i32_9 = arith.constant 0 : i32
    %11 = arith.cmpi ne, %10, %c0_i32_9 : i32
    scf.if %11 {
      %c0_10 = arith.constant 0 : index
      %c0_11 = arith.constant 0 : index
      %12 = vector.load %arg7[%c0_10, %c0_11] : memref<256x128xf32, #tpu.memory_space<vmem>>, vector<256x128xf32>
      %c0_12 = arith.constant 0 : index
      %c0_13 = arith.constant 0 : index
      %13 = vector.load %arg5[%c0_12, %c0_13] : memref<1x128xf32, #tpu.memory_space<vmem>>, vector<1x128xf32>
      %14 = vector.broadcast %13 : vector<1x128xf32> to vector<256x128xf32>
      %15 = arith.addf %12, %14 : vector<256x128xf32>
      %cst_14 = arith.constant 0.000000e+00 : f32
      %16 = vector.broadcast %cst_14 : f32 to vector<256x128xf32>
      %17 = arith.maximumf %15, %16 : vector<256x128xf32>
      %c0_15 = arith.constant 0 : index
      %c0_16 = arith.constant 0 : index
      %18 = vector.load %arg6[%c0_15, %c0_16] : memref<256x128xf32, #tpu.memory_space<vmem>>, vector<256x128xf32>
      tpu.vector_store %arg6[%c0_15, %c0_16], %17 {strides = array<i32>} : memref<256x128xf32, #tpu.memory_space<vmem>>, vector<256x128xf32>,
    } else {
    }
    return
  }
  func.func @transform_0(%arg0: i32, %arg1: i32, %arg2: i32) -> (i32, i32) {
    %c0_i32 = arith.constant 0 : i32
    return %arg0, %arg2 : i32, i32
  }
  func.func @transform_1(%arg0: i32, %arg1: i32, %arg2: i32) -> (i32, i32) {
    %c0_i32 = arith.constant 0 : i32
    return %arg2, %arg1 : i32, i32
  }
  func.func @transform_2(%arg0: i32, %arg1: i32, %arg2: i32) -> (i32, i32) {
    %c0_i32 = arith.constant 0 : i32
    %c0_i32_0 = arith.constant 0 : i32
    return %c0_i32, %arg1 : i32, i32
  }
  func.func @transform_3(%arg0: i32, %arg1: i32, %arg2: i32) -> (i32, i32) {
    %c0_i32 = arith.constant 0 : i32
    return %arg0, %arg1 : i32, i32
  }
}

module attributes {stable_mosaic.version = 11 : i64} {
  func.func @kernel(%arg0: i32, %arg1: i32, %arg2: i32, %arg3: memref<256x288xbf16, #tpu.memory_space<vmem>>, %arg4: memref<288x128xbf16, #tpu.memory_space<vmem>>, %arg5: memref<1x128xf32, #tpu.memory_space<vmem>>, %arg6: memref<256x128xf32, #tpu.memory_space<vmem>>, %arg7: memref<256x128xf32, #tpu.memory_space<vmem>>) attributes {dimension_semantics = [#tpu.dimension_semantics<parallel>, #tpu.dimension_semantics<parallel>, #tpu.dimension_semantics<arbitrary>], iteration_bounds = array<i64: 1, 1, 1>, scalar_prefetch = 0 : i64, scratch_operands = 1 : i64, tpu.core_type = #tpu.core_type<tc>, window_params = [{transform_indices = @transform_0, window_bounds = array<i64: 256, 288>}, {transform_indices = @transform_1, window_bounds = array<i64: 288, 128>}, {transform_indices = @transform_2, window_bounds = array<i64: 1, 128>}, {transform_indices = @transform_3, window_bounds = array<i64: 256, 128>}]} {
    %c0_i32 = arith.constant 0 : i32
    %0 = arith.cmpi eq, %arg2, %c0_i32 : i32
    %1 = arith.extui %0 : i1 to i32
    %c0_i32_0 = arith.constant 0 : i32
    %2 = arith.cmpi ne, %1, %c0_i32_0 : i32
    scf.if %2 {
      %cst_10 = arith.constant 0.000000e+00 : f32
      %12 = vector.broadcast %cst_10 : f32 to vector<256x128xf32>
      %c0_11 = arith.constant 0 : index
      %c0_12 = arith.constant 0 : index
      %13 = vector.load %arg7[%c0_11, %c0_12] : memref<256x128xf32, #tpu.memory_space<vmem>>, vector<256x128xf32>
      tpu.vector_store %arg7[%c0_11, %c0_12], %12 {strides = array<i32>} : memref<256x128xf32, #tpu.memory_space<vmem>>, vector<256x128xf32>,
    } else {
    }
    %c0 = arith.constant 0 : index
    %c0_1 = arith.constant 0 : index
    %3 = vector.load %arg7[%c0, %c0_1] : memref<256x128xf32, #tpu.memory_space<vmem>>, vector<256x128xf32>
    %c0_2 = arith.constant 0 : index
    %c0_3 = arith.constant 0 : index
    %4 = vector.load %arg3[%c0_2, %c0_3] : memref<256x288xbf16, #tpu.memory_space<vmem>>, vector<256x288xbf16>
    %c0_4 = arith.constant 0 : index
    %c0_5 = arith.constant 0 : index
    %5 = vector.load %arg4[%c0_4, %c0_5] : memref<288x128xbf16, #tpu.memory_space<vmem>>, vector<288x128xbf16>
    %cst = arith.constant dense<0.000000e+00> : vector<256x128xf32>
    %6 = tpu.matmul %4, %5, %cst {dimension_numbers = #tpu.dot_dimension_numbers<[1], [0], [0], [1], [0, 0, 1, 1], [], []>} : vector<256x288xbf16>, vector<288x128xbf16>, vector<256x128xf32> -> vector<256x128xf32>
    %7 = arith.addf %3, %6 : vector<256x128xf32>
    %c0_6 = arith.constant 0 : index
    %c0_7 = arith.constant 0 : index
    %8 = vector.load %arg7[%c0_6, %c0_7] : memref<256x128xf32, #tpu.memory_space<vmem>>, vector<256x128xf32>
    tpu.vector_store %arg7[%c0_6, %c0_7], %7 {strides = array<i32>} : memref<256x128xf32, #tpu.memory_space<vmem>>, vector<256x128xf32>,
    %c0_i32_8 = arith.constant 0 : i32
    %9 = arith.cmpi eq, %arg2, %c0_i32_8 : i32
    %10 = arith.extui %9 : i1 to i32
    %c0_i32_9 = arith.constant 0 : i32
    %11 = arith.cmpi ne, %10, %c0_i32_9 : i32
    scf.if %11 {
      %c0_10 = arith.constant 0 : index
      %c0_11 = arith.constant 0 : index
      %12 = vector.load %arg7[%c0_10, %c0_11] : memref<256x128xf32, #tpu.memory_space<vmem>>, vector<256x128xf32>
      %c0_12 = arith.constant 0 : index
      %c0_13 = arith.constant 0 : index
      %13 = vector.load %arg5[%c0_12, %c0_13] : memref<1x128xf32, #tpu.memory_space<vmem>>, vector<1x128xf32>
      %14 = vector.broadcast %13 : vector<1x128xf32> to vector<256x128xf32>
      %15 = arith.addf %12, %14 : vector<256x128xf32>
      %cst_14 = arith.constant 0.000000e+00 : f32
      %16 = vector.broadcast %cst_14 : f32 to vector<256x128xf32>
      %17 = arith.maximumf %15, %16 : vector<256x128xf32>
      %c0_15 = arith.constant 0 : index
      %c0_16 = arith.constant 0 : index
      %18 = vector.load %arg6[%c0_15, %c0_16] : memref<256x128xf32, #tpu.memory_space<vmem>>, vector<256x128xf32>
      tpu.vector_store %arg6[%c0_15, %c0_16], %17 {strides = array<i32>} : memref<256x128xf32, #tpu.memory_space<vmem>>, vector<256x128xf32>,
    } else {
    }
    return
  }
  func.func @transform_0(%arg0: i32, %arg1: i32, %arg2: i32) -> (i32, i32) {
    %c0_i32 = arith.constant 0 : i32
    return %arg0, %arg2 : i32, i32
  }
  func.func @transform_1(%arg0: i32, %arg1: i32, %arg2: i32) -> (i32, i32) {
    %c0_i32 = arith.constant 0 : i32
    return %arg2, %arg1 : i32, i32
  }
  func.func @transform_2(%arg0: i32, %arg1: i32, %arg2: i32) -> (i32, i32) {
    %c0_i32 = arith.constant 0 : i32
    %c0_i32_0 = arith.constant 0 : i32
    return %c0_i32, %arg1 : i32, i32
  }
  func.func @transform_3(%arg0: i32, %arg1: i32, %arg2: i32) -> (i32, i32) {
    %c0_i32 = arith.constant 0 : i32
    return %arg0, %arg1 : i32, i32
  }
}

module attributes {stable_mosaic.version = 11 : i64} {
  func.func @kernel(%arg0: i32, %arg1: i32, %arg2: i32, %arg3: memref<8x64xbf16, #tpu.memory_space<vmem>>, %arg4: memref<64x128xbf16, #tpu.memory_space<vmem>>, %arg5: memref<1x128xf32, #tpu.memory_space<vmem>>, %arg6: memref<8x128xf32, #tpu.memory_space<vmem>>, %arg7: memref<8x128xf32, #tpu.memory_space<vmem>>) attributes {dimension_semantics = [#tpu.dimension_semantics<parallel>, #tpu.dimension_semantics<parallel>, #tpu.dimension_semantics<arbitrary>], iteration_bounds = array<i64: 1, 1, 1>, scalar_prefetch = 0 : i64, scratch_operands = 1 : i64, tpu.core_type = #tpu.core_type<tc>, window_params = [{transform_indices = @transform_0, window_bounds = array<i64: 8, 64>}, {transform_indices = @transform_1, window_bounds = array<i64: 64, 128>}, {transform_indices = @transform_2, window_bounds = array<i64: 1, 128>}, {transform_indices = @transform_3, window_bounds = array<i64: 8, 128>}]} {
    %c0_i32 = arith.constant 0 : i32
    %0 = arith.cmpi eq, %arg2, %c0_i32 : i32
    %1 = arith.extui %0 : i1 to i32
    %c0_i32_0 = arith.constant 0 : i32
    %2 = arith.cmpi ne, %1, %c0_i32_0 : i32
    scf.if %2 {
      %cst_10 = arith.constant 0.000000e+00 : f32
      %12 = vector.broadcast %cst_10 : f32 to vector<8x128xf32>
      %c0_11 = arith.constant 0 : index
      %c0_12 = arith.constant 0 : index
      %13 = vector.load %arg7[%c0_11, %c0_12] : memref<8x128xf32, #tpu.memory_space<vmem>>, vector<8x128xf32>
      tpu.vector_store %arg7[%c0_11, %c0_12], %12 {strides = array<i32>} : memref<8x128xf32, #tpu.memory_space<vmem>>, vector<8x128xf32>,
    } else {
    }
    %c0 = arith.constant 0 : index
    %c0_1 = arith.constant 0 : index
    %3 = vector.load %arg7[%c0, %c0_1] : memref<8x128xf32, #tpu.memory_space<vmem>>, vector<8x128xf32>
    %c0_2 = arith.constant 0 : index
    %c0_3 = arith.constant 0 : index
    %4 = vector.load %arg3[%c0_2, %c0_3] : memref<8x64xbf16, #tpu.memory_space<vmem>>, vector<8x64xbf16>
    %c0_4 = arith.constant 0 : index
    %c0_5 = arith.constant 0 : index
    %5 = vector.load %arg4[%c0_4, %c0_5] : memref<64x128xbf16, #tpu.memory_space<vmem>>, vector<64x128xbf16>
    %cst = arith.constant dense<0.000000e+00> : vector<8x128xf32>
    %6 = tpu.matmul %4, %5, %cst {dimension_numbers = #tpu.dot_dimension_numbers<[1], [0], [0], [1], [0, 0, 1, 1], [], []>} : vector<8x64xbf16>, vector<64x128xbf16>, vector<8x128xf32> -> vector<8x128xf32>
    %7 = arith.addf %3, %6 : vector<8x128xf32>
    %c0_6 = arith.constant 0 : index
    %c0_7 = arith.constant 0 : index
    %8 = vector.load %arg7[%c0_6, %c0_7] : memref<8x128xf32, #tpu.memory_space<vmem>>, vector<8x128xf32>
    tpu.vector_store %arg7[%c0_6, %c0_7], %7 {strides = array<i32>} : memref<8x128xf32, #tpu.memory_space<vmem>>, vector<8x128xf32>,
    %c0_i32_8 = arith.constant 0 : i32
    %9 = arith.cmpi eq, %arg2, %c0_i32_8 : i32
    %10 = arith.extui %9 : i1 to i32
    %c0_i32_9 = arith.constant 0 : i32
    %11 = arith.cmpi ne, %10, %c0_i32_9 : i32
    scf.if %11 {
      %c0_10 = arith.constant 0 : index
      %c0_11 = arith.constant 0 : index
      %12 = vector.load %arg7[%c0_10, %c0_11] : memref<8x128xf32, #tpu.memory_space<vmem>>, vector<8x128xf32>
      %c0_12 = arith.constant 0 : index
      %c0_13 = arith.constant 0 : index
      %13 = vector.load %arg5[%c0_12, %c0_13] : memref<1x128xf32, #tpu.memory_space<vmem>>, vector<1x128xf32>
      %14 = vector.broadcast %13 : vector<1x128xf32> to vector<8x128xf32>
      %15 = arith.addf %12, %14 : vector<8x128xf32>
      %cst_14 = arith.constant 0.000000e+00 : f32
      %16 = vector.broadcast %cst_14 : f32 to vector<8x128xf32>
      %17 = arith.maximumf %15, %16 : vector<8x128xf32>
      %c0_15 = arith.constant 0 : index
      %c0_16 = arith.constant 0 : index
      %18 = vector.load %arg6[%c0_15, %c0_16] : memref<8x128xf32, #tpu.memory_space<vmem>>, vector<8x128xf32>
      tpu.vector_store %arg6[%c0_15, %c0_16], %17 {strides = array<i32>} : memref<8x128xf32, #tpu.memory_space<vmem>>, vector<8x128xf32>,
    } else {
    }
    return
  }
  func.func @transform_0(%arg0: i32, %arg1: i32, %arg2: i32) -> (i32, i32) {
    %c0_i32 = arith.constant 0 : i32
    return %arg0, %arg2 : i32, i32
  }
  func.func @transform_1(%arg0: i32, %arg1: i32, %arg2: i32) -> (i32, i32) {
    %c0_i32 = arith.constant 0 : i32
    return %arg2, %arg1 : i32, i32
  }
  func.func @transform_2(%arg0: i32, %arg1: i32, %arg2: i32) -> (i32, i32) {
    %c0_i32 = arith.constant 0 : i32
    %c0_i32_0 = arith.constant 0 : i32
    return %c0_i32, %arg1 : i32, i32
  }
  func.func @transform_3(%arg0: i32, %arg1: i32, %arg2: i32) -> (i32, i32) {
    %c0_i32 = arith.constant 0 : i32
    return %arg0, %arg1 : i32, i32
  }
}

module attributes {stable_mosaic.version = 11 : i64} {
  func.func @kernel(%arg0: i32, %arg1: i32, %arg2: i32, %arg3: memref<8x32xbf16, #tpu.memory_space<vmem>>, %arg4: memref<32x128xbf16, #tpu.memory_space<vmem>>, %arg5: memref<1x128xf32, #tpu.memory_space<vmem>>, %arg6: memref<8x128xf32, #tpu.memory_space<vmem>>, %arg7: memref<8x128xf32, #tpu.memory_space<vmem>>) attributes {dimension_semantics = [#tpu.dimension_semantics<parallel>, #tpu.dimension_semantics<parallel>, #tpu.dimension_semantics<arbitrary>], iteration_bounds = array<i64: 1, 1, 1>, scalar_prefetch = 0 : i64, scratch_operands = 1 : i64, tpu.core_type = #tpu.core_type<tc>, window_params = [{transform_indices = @transform_0, window_bounds = array<i64: 8, 32>}, {transform_indices = @transform_1, window_bounds = array<i64: 32, 128>}, {transform_indices = @transform_2, window_bounds = array<i64: 1, 128>}, {transform_indices = @transform_3, window_bounds = array<i64: 8, 128>}]} {
    %c0_i32 = arith.constant 0 : i32
    %0 = arith.cmpi eq, %arg2, %c0_i32 : i32
    %1 = arith.extui %0 : i1 to i32
    %c0_i32_0 = arith.constant 0 : i32
    %2 = arith.cmpi ne, %1, %c0_i32_0 : i32
    scf.if %2 {
      %cst_10 = arith.constant 0.000000e+00 : f32
      %12 = vector.broadcast %cst_10 : f32 to vector<8x128xf32>
      %c0_11 = arith.constant 0 : index
      %c0_12 = arith.constant 0 : index
      %13 = vector.load %arg7[%c0_11, %c0_12] : memref<8x128xf32, #tpu.memory_space<vmem>>, vector<8x128xf32>
      tpu.vector_store %arg7[%c0_11, %c0_12], %12 {strides = array<i32>} : memref<8x128xf32, #tpu.memory_space<vmem>>, vector<8x128xf32>,
    } else {
    }
    %c0 = arith.constant 0 : index
    %c0_1 = arith.constant 0 : index
    %3 = vector.load %arg7[%c0, %c0_1] : memref<8x128xf32, #tpu.memory_space<vmem>>, vector<8x128xf32>
    %c0_2 = arith.constant 0 : index
    %c0_3 = arith.constant 0 : index
    %4 = vector.load %arg3[%c0_2, %c0_3] : memref<8x32xbf16, #tpu.memory_space<vmem>>, vector<8x32xbf16>
    %c0_4 = arith.constant 0 : index
    %c0_5 = arith.constant 0 : index
    %5 = vector.load %arg4[%c0_4, %c0_5] : memref<32x128xbf16, #tpu.memory_space<vmem>>, vector<32x128xbf16>
    %cst = arith.constant dense<0.000000e+00> : vector<8x128xf32>
    %6 = tpu.matmul %4, %5, %cst {dimension_numbers = #tpu.dot_dimension_numbers<[1], [0], [0], [1], [0, 0, 1, 1], [], []>} : vector<8x32xbf16>, vector<32x128xbf16>, vector<8x128xf32> -> vector<8x128xf32>
    %7 = arith.addf %3, %6 : vector<8x128xf32>
    %c0_6 = arith.constant 0 : index
    %c0_7 = arith.constant 0 : index
    %8 = vector.load %arg7[%c0_6, %c0_7] : memref<8x128xf32, #tpu.memory_space<vmem>>, vector<8x128xf32>
    tpu.vector_store %arg7[%c0_6, %c0_7], %7 {strides = array<i32>} : memref<8x128xf32, #tpu.memory_space<vmem>>, vector<8x128xf32>,
    %c0_i32_8 = arith.constant 0 : i32
    %9 = arith.cmpi eq, %arg2, %c0_i32_8 : i32
    %10 = arith.extui %9 : i1 to i32
    %c0_i32_9 = arith.constant 0 : i32
    %11 = arith.cmpi ne, %10, %c0_i32_9 : i32
    scf.if %11 {
      %c0_10 = arith.constant 0 : index
      %c0_11 = arith.constant 0 : index
      %12 = vector.load %arg7[%c0_10, %c0_11] : memref<8x128xf32, #tpu.memory_space<vmem>>, vector<8x128xf32>
      %c0_12 = arith.constant 0 : index
      %c0_13 = arith.constant 0 : index
      %13 = vector.load %arg5[%c0_12, %c0_13] : memref<1x128xf32, #tpu.memory_space<vmem>>, vector<1x128xf32>
      %14 = vector.broadcast %13 : vector<1x128xf32> to vector<8x128xf32>
      %15 = arith.addf %12, %14 : vector<8x128xf32>
      %16 = arith.negf %15 : vector<8x128xf32>
      %17 = math.exp %16 : vector<8x128xf32>
      %cst_14 = arith.constant 1.000000e+00 : f32
      %18 = vector.broadcast %cst_14 : f32 to vector<8x128xf32>
      %19 = arith.addf %18, %17 : vector<8x128xf32>
      %20 = arith.divf %18, %19 : vector<8x128xf32>
      %c0_15 = arith.constant 0 : index
      %c0_16 = arith.constant 0 : index
      %21 = vector.load %arg6[%c0_15, %c0_16] : memref<8x128xf32, #tpu.memory_space<vmem>>, vector<8x128xf32>
      tpu.vector_store %arg6[%c0_15, %c0_16], %20 {strides = array<i32>} : memref<8x128xf32, #tpu.memory_space<vmem>>, vector<8x128xf32>,
    } else {
    }
    return
  }
  func.func @transform_0(%arg0: i32, %arg1: i32, %arg2: i32) -> (i32, i32) {
    %c0_i32 = arith.constant 0 : i32
    return %arg0, %arg2 : i32, i32
  }
  func.func @transform_1(%arg0: i32, %arg1: i32, %arg2: i32) -> (i32, i32) {
    %c0_i32 = arith.constant 0 : i32
    return %arg2, %arg1 : i32, i32
  }
  func.func @transform_2(%arg0: i32, %arg1: i32, %arg2: i32) -> (i32, i32) {
    %c0_i32 = arith.constant 0 : i32
    %c0_i32_0 = arith.constant 0 : i32
    return %c0_i32, %arg1 : i32, i32
  }
  func.func @transform_3(%arg0: i32, %arg1: i32, %arg2: i32) -> (i32, i32) {
    %c0_i32 = arith.constant 0 : i32
    return %arg0, %arg1 : i32, i32
  }
}

module attributes {stable_mosaic.version = 11 : i64} {
  func.func @kernel(%arg0: i32, %arg1: i32, %arg2: i32, %arg3: memref<32x64xbf16, #tpu.memory_space<vmem>>, %arg4: memref<64x256xbf16, #tpu.memory_space<vmem>>, %arg5: memref<1x256xf32, #tpu.memory_space<vmem>>, %arg6: memref<32x256xf32, #tpu.memory_space<vmem>>, %arg7: memref<32x256xf32, #tpu.memory_space<vmem>>) attributes {dimension_semantics = [#tpu.dimension_semantics<parallel>, #tpu.dimension_semantics<parallel>, #tpu.dimension_semantics<arbitrary>], iteration_bounds = array<i64: 1, 1, 1>, scalar_prefetch = 0 : i64, scratch_operands = 1 : i64, tpu.core_type = #tpu.core_type<tc>, window_params = [{transform_indices = @transform_0, window_bounds = array<i64: 32, 64>}, {transform_indices = @transform_1, window_bounds = array<i64: 64, 256>}, {transform_indices = @transform_2, window_bounds = array<i64: 1, 256>}, {transform_indices = @transform_3, window_bounds = array<i64: 32, 256>}]} {
    %c0_i32 = arith.constant 0 : i32
    %0 = arith.cmpi eq, %arg2, %c0_i32 : i32
    %1 = arith.extui %0 : i1 to i32
    %c0_i32_0 = arith.constant 0 : i32
    %2 = arith.cmpi ne, %1, %c0_i32_0 : i32
    scf.if %2 {
      %cst_10 = arith.constant 0.000000e+00 : f32
      %12 = vector.broadcast %cst_10 : f32 to vector<32x256xf32>
      %c0_11 = arith.constant 0 : index
      %c0_12 = arith.constant 0 : index
      %13 = vector.load %arg7[%c0_11, %c0_12] : memref<32x256xf32, #tpu.memory_space<vmem>>, vector<32x256xf32>
      tpu.vector_store %arg7[%c0_11, %c0_12], %12 {strides = array<i32>} : memref<32x256xf32, #tpu.memory_space<vmem>>, vector<32x256xf32>,
    } else {
    }
    %c0 = arith.constant 0 : index
    %c0_1 = arith.constant 0 : index
    %3 = vector.load %arg7[%c0, %c0_1] : memref<32x256xf32, #tpu.memory_space<vmem>>, vector<32x256xf32>
    %c0_2 = arith.constant 0 : index
    %c0_3 = arith.constant 0 : index
    %4 = vector.load %arg3[%c0_2, %c0_3] : memref<32x64xbf16, #tpu.memory_space<vmem>>, vector<32x64xbf16>
    %c0_4 = arith.constant 0 : index
    %c0_5 = arith.constant 0 : index
    %5 = vector.load %arg4[%c0_4, %c0_5] : memref<64x256xbf16, #tpu.memory_space<vmem>>, vector<64x256xbf16>
    %cst = arith.constant dense<0.000000e+00> : vector<32x256xf32>
    %6 = tpu.matmul %4, %5, %cst {dimension_numbers = #tpu.dot_dimension_numbers<[1], [0], [0], [1], [0, 0, 1, 1], [], []>} : vector<32x64xbf16>, vector<64x256xbf16>, vector<32x256xf32> -> vector<32x256xf32>
    %7 = arith.addf %3, %6 : vector<32x256xf32>
    %c0_6 = arith.constant 0 : index
    %c0_7 = arith.constant 0 : index
    %8 = vector.load %arg7[%c0_6, %c0_7] : memref<32x256xf32, #tpu.memory_space<vmem>>, vector<32x256xf32>
    tpu.vector_store %arg7[%c0_6, %c0_7], %7 {strides = array<i32>} : memref<32x256xf32, #tpu.memory_space<vmem>>, vector<32x256xf32>,
    %c0_i32_8 = arith.constant 0 : i32
    %9 = arith.cmpi eq, %arg2, %c0_i32_8 : i32
    %10 = arith.extui %9 : i1 to i32
    %c0_i32_9 = arith.constant 0 : i32
    %11 = arith.cmpi ne, %10, %c0_i32_9 : i32
    scf.if %11 {
      %c0_10 = arith.constant 0 : index
      %c0_11 = arith.constant 0 : index
      %12 = vector.load %arg7[%c0_10, %c0_11] : memref<32x256xf32, #tpu.memory_space<vmem>>, vector<32x256xf32>
      %c0_12 = arith.constant 0 : index
      %c0_13 = arith.constant 0 : index
      %13 = vector.load %arg5[%c0_12, %c0_13] : memref<1x256xf32, #tpu.memory_space<vmem>>, vector<1x256xf32>
      %14 = vector.broadcast %13 : vector<1x256xf32> to vector<32x256xf32>
      %15 = arith.addf %12, %14 : vector<32x256xf32>
      %c0_14 = arith.constant 0 : index
      %c0_15 = arith.constant 0 : index
      %16 = vector.load %arg6[%c0_14, %c0_15] : memref<32x256xf32, #tpu.memory_space<vmem>>, vector<32x256xf32>
      tpu.vector_store %arg6[%c0_14, %c0_15], %15 {strides = array<i32>} : memref<32x256xf32, #tpu.memory_space<vmem>>, vector<32x256xf32>,
    } else {
    }
    return
  }
  func.func @transform_0(%arg0: i32, %arg1: i32, %arg2: i32) -> (i32, i32) {
    %c0_i32 = arith.constant 0 : i32
    return %arg0, %arg2 : i32, i32
  }
  func.func @transform_1(%arg0: i32, %arg1: i32, %arg2: i32) -> (i32, i32) {
    %c0_i32 = arith.constant 0 : i32
    return %arg2, %arg1 : i32, i32
  }
  func.func @transform_2(%arg0: i32, %arg1: i32, %arg2: i32) -> (i32, i32) {
    %c0_i32 = arith.constant 0 : i32
    %c0_i32_0 = arith.constant 0 : i32
    return %c0_i32, %arg1 : i32, i32
  }
  func.func @transform_3(%arg0: i32, %arg1: i32, %arg2: i32) -> (i32, i32) {
    %c0_i32 = arith.constant 0 : i32
    return %arg0, %arg1 : i32, i32
  }
}

module attributes {stable_mosaic.version = 11 : i64} {
  func.func @kernel(%arg0: i32, %arg1: i32, %arg2: i32, %arg3: memref<32x64xbf16, #tpu.memory_space<vmem>>, %arg4: memref<64x128xbf16, #tpu.memory_space<vmem>>, %arg5: memref<1x128xf32, #tpu.memory_space<vmem>>, %arg6: memref<32x128xf32, #tpu.memory_space<vmem>>, %arg7: memref<32x128xf32, #tpu.memory_space<vmem>>) attributes {dimension_semantics = [#tpu.dimension_semantics<parallel>, #tpu.dimension_semantics<parallel>, #tpu.dimension_semantics<arbitrary>], iteration_bounds = array<i64: 1, 1, 1>, scalar_prefetch = 0 : i64, scratch_operands = 1 : i64, tpu.core_type = #tpu.core_type<tc>, window_params = [{transform_indices = @transform_0, window_bounds = array<i64: 32, 64>}, {transform_indices = @transform_1, window_bounds = array<i64: 64, 128>}, {transform_indices = @transform_2, window_bounds = array<i64: 1, 128>}, {transform_indices = @transform_3, window_bounds = array<i64: 32, 128>}]} {
    %c0_i32 = arith.constant 0 : i32
    %0 = arith.cmpi eq, %arg2, %c0_i32 : i32
    %1 = arith.extui %0 : i1 to i32
    %c0_i32_0 = arith.constant 0 : i32
    %2 = arith.cmpi ne, %1, %c0_i32_0 : i32
    scf.if %2 {
      %cst_10 = arith.constant 0.000000e+00 : f32
      %12 = vector.broadcast %cst_10 : f32 to vector<32x128xf32>
      %c0_11 = arith.constant 0 : index
      %c0_12 = arith.constant 0 : index
      %13 = vector.load %arg7[%c0_11, %c0_12] : memref<32x128xf32, #tpu.memory_space<vmem>>, vector<32x128xf32>
      tpu.vector_store %arg7[%c0_11, %c0_12], %12 {strides = array<i32>} : memref<32x128xf32, #tpu.memory_space<vmem>>, vector<32x128xf32>,
    } else {
    }
    %c0 = arith.constant 0 : index
    %c0_1 = arith.constant 0 : index
    %3 = vector.load %arg7[%c0, %c0_1] : memref<32x128xf32, #tpu.memory_space<vmem>>, vector<32x128xf32>
    %c0_2 = arith.constant 0 : index
    %c0_3 = arith.constant 0 : index
    %4 = vector.load %arg3[%c0_2, %c0_3] : memref<32x64xbf16, #tpu.memory_space<vmem>>, vector<32x64xbf16>
    %c0_4 = arith.constant 0 : index
    %c0_5 = arith.constant 0 : index
    %5 = vector.load %arg4[%c0_4, %c0_5] : memref<64x128xbf16, #tpu.memory_space<vmem>>, vector<64x128xbf16>
    %cst = arith.constant dense<0.000000e+00> : vector<32x128xf32>
    %6 = tpu.matmul %4, %5, %cst {dimension_numbers = #tpu.dot_dimension_numbers<[1], [0], [0], [1], [0, 0, 1, 1], [], []>} : vector<32x64xbf16>, vector<64x128xbf16>, vector<32x128xf32> -> vector<32x128xf32>
    %7 = arith.addf %3, %6 : vector<32x128xf32>
    %c0_6 = arith.constant 0 : index
    %c0_7 = arith.constant 0 : index
    %8 = vector.load %arg7[%c0_6, %c0_7] : memref<32x128xf32, #tpu.memory_space<vmem>>, vector<32x128xf32>
    tpu.vector_store %arg7[%c0_6, %c0_7], %7 {strides = array<i32>} : memref<32x128xf32, #tpu.memory_space<vmem>>, vector<32x128xf32>,
    %c0_i32_8 = arith.constant 0 : i32
    %9 = arith.cmpi eq, %arg2, %c0_i32_8 : i32
    %10 = arith.extui %9 : i1 to i32
    %c0_i32_9 = arith.constant 0 : i32
    %11 = arith.cmpi ne, %10, %c0_i32_9 : i32
    scf.if %11 {
      %c0_10 = arith.constant 0 : index
      %c0_11 = arith.constant 0 : index
      %12 = vector.load %arg7[%c0_10, %c0_11] : memref<32x128xf32, #tpu.memory_space<vmem>>, vector<32x128xf32>
      %c0_12 = arith.constant 0 : index
      %c0_13 = arith.constant 0 : index
      %13 = vector.load %arg5[%c0_12, %c0_13] : memref<1x128xf32, #tpu.memory_space<vmem>>, vector<1x128xf32>
      %14 = vector.broadcast %13 : vector<1x128xf32> to vector<32x128xf32>
      %15 = arith.addf %12, %14 : vector<32x128xf32>
      %c0_14 = arith.constant 0 : index
      %c0_15 = arith.constant 0 : index
      %16 = vector.load %arg6[%c0_14, %c0_15] : memref<32x128xf32, #tpu.memory_space<vmem>>, vector<32x128xf32>
      tpu.vector_store %arg6[%c0_14, %c0_15], %15 {strides = array<i32>} : memref<32x128xf32, #tpu.memory_space<vmem>>, vector<32x128xf32>,
    } else {
    }
    return
  }
  func.func @transform_0(%arg0: i32, %arg1: i32, %arg2: i32) -> (i32, i32) {
    %c0_i32 = arith.constant 0 : i32
    return %arg0, %arg2 : i32, i32
  }
  func.func @transform_1(%arg0: i32, %arg1: i32, %arg2: i32) -> (i32, i32) {
    %c0_i32 = arith.constant 0 : i32
    return %arg2, %arg1 : i32, i32
  }
  func.func @transform_2(%arg0: i32, %arg1: i32, %arg2: i32) -> (i32, i32) {
    %c0_i32 = arith.constant 0 : i32
    %c0_i32_0 = arith.constant 0 : i32
    return %c0_i32, %arg1 : i32, i32
  }
  func.func @transform_3(%arg0: i32, %arg1: i32, %arg2: i32) -> (i32, i32) {
    %c0_i32 = arith.constant 0 : i32
    return %arg0, %arg1 : i32, i32
  }
}

module attributes {stable_mosaic.version = 11 : i64} {
  func.func @kernel(%arg0: i32, %arg1: i32, %arg2: i32, %arg3: memref<32x32xbf16, #tpu.memory_space<vmem>>, %arg4: memref<32x256xbf16, #tpu.memory_space<vmem>>, %arg5: memref<1x256xf32, #tpu.memory_space<vmem>>, %arg6: memref<32x256xf32, #tpu.memory_space<vmem>>, %arg7: memref<32x256xf32, #tpu.memory_space<vmem>>) attributes {dimension_semantics = [#tpu.dimension_semantics<parallel>, #tpu.dimension_semantics<parallel>, #tpu.dimension_semantics<arbitrary>], iteration_bounds = array<i64: 1, 1, 1>, scalar_prefetch = 0 : i64, scratch_operands = 1 : i64, tpu.core_type = #tpu.core_type<tc>, window_params = [{transform_indices = @transform_0, window_bounds = array<i64: 32, 32>}, {transform_indices = @transform_1, window_bounds = array<i64: 32, 256>}, {transform_indices = @transform_2, window_bounds = array<i64: 1, 256>}, {transform_indices = @transform_3, window_bounds = array<i64: 32, 256>}]} {
    %c0_i32 = arith.constant 0 : i32
    %0 = arith.cmpi eq, %arg2, %c0_i32 : i32
    %1 = arith.extui %0 : i1 to i32
    %c0_i32_0 = arith.constant 0 : i32
    %2 = arith.cmpi ne, %1, %c0_i32_0 : i32
    scf.if %2 {
      %cst_10 = arith.constant 0.000000e+00 : f32
      %12 = vector.broadcast %cst_10 : f32 to vector<32x256xf32>
      %c0_11 = arith.constant 0 : index
      %c0_12 = arith.constant 0 : index
      %13 = vector.load %arg7[%c0_11, %c0_12] : memref<32x256xf32, #tpu.memory_space<vmem>>, vector<32x256xf32>
      tpu.vector_store %arg7[%c0_11, %c0_12], %12 {strides = array<i32>} : memref<32x256xf32, #tpu.memory_space<vmem>>, vector<32x256xf32>,
    } else {
    }
    %c0 = arith.constant 0 : index
    %c0_1 = arith.constant 0 : index
    %3 = vector.load %arg7[%c0, %c0_1] : memref<32x256xf32, #tpu.memory_space<vmem>>, vector<32x256xf32>
    %c0_2 = arith.constant 0 : index
    %c0_3 = arith.constant 0 : index
    %4 = vector.load %arg3[%c0_2, %c0_3] : memref<32x32xbf16, #tpu.memory_space<vmem>>, vector<32x32xbf16>
    %c0_4 = arith.constant 0 : index
    %c0_5 = arith.constant 0 : index
    %5 = vector.load %arg4[%c0_4, %c0_5] : memref<32x256xbf16, #tpu.memory_space<vmem>>, vector<32x256xbf16>
    %cst = arith.constant dense<0.000000e+00> : vector<32x256xf32>
    %6 = tpu.matmul %4, %5, %cst {dimension_numbers = #tpu.dot_dimension_numbers<[1], [0], [0], [1], [0, 0, 1, 1], [], []>} : vector<32x32xbf16>, vector<32x256xbf16>, vector<32x256xf32> -> vector<32x256xf32>
    %7 = arith.addf %3, %6 : vector<32x256xf32>
    %c0_6 = arith.constant 0 : index
    %c0_7 = arith.constant 0 : index
    %8 = vector.load %arg7[%c0_6, %c0_7] : memref<32x256xf32, #tpu.memory_space<vmem>>, vector<32x256xf32>
    tpu.vector_store %arg7[%c0_6, %c0_7], %7 {strides = array<i32>} : memref<32x256xf32, #tpu.memory_space<vmem>>, vector<32x256xf32>,
    %c0_i32_8 = arith.constant 0 : i32
    %9 = arith.cmpi eq, %arg2, %c0_i32_8 : i32
    %10 = arith.extui %9 : i1 to i32
    %c0_i32_9 = arith.constant 0 : i32
    %11 = arith.cmpi ne, %10, %c0_i32_9 : i32
    scf.if %11 {
      %c0_10 = arith.constant 0 : index
      %c0_11 = arith.constant 0 : index
      %12 = vector.load %arg7[%c0_10, %c0_11] : memref<32x256xf32, #tpu.memory_space<vmem>>, vector<32x256xf32>
      %c0_12 = arith.constant 0 : index
      %c0_13 = arith.constant 0 : index
      %13 = vector.load %arg5[%c0_12, %c0_13] : memref<1x256xf32, #tpu.memory_space<vmem>>, vector<1x256xf32>
      %14 = vector.broadcast %13 : vector<1x256xf32> to vector<32x256xf32>
      %15 = arith.addf %12, %14 : vector<32x256xf32>
      %c0_14 = arith.constant 0 : index
      %c0_15 = arith.constant 0 : index
      %16 = vector.load %arg6[%c0_14, %c0_15] : memref<32x256xf32, #tpu.memory_space<vmem>>, vector<32x256xf32>
      tpu.vector_store %arg6[%c0_14, %c0_15], %15 {strides = array<i32>} : memref<32x256xf32, #tpu.memory_space<vmem>>, vector<32x256xf32>,
    } else {
    }
    return
  }
  func.func @transform_0(%arg0: i32, %arg1: i32, %arg2: i32) -> (i32, i32) {
    %c0_i32 = arith.constant 0 : i32
    return %arg0, %arg2 : i32, i32
  }
  func.func @transform_1(%arg0: i32, %arg1: i32, %arg2: i32) -> (i32, i32) {
    %c0_i32 = arith.constant 0 : i32
    return %arg2, %arg1 : i32, i32
  }
  func.func @transform_2(%arg0: i32, %arg1: i32, %arg2: i32) -> (i32, i32) {
    %c0_i32 = arith.constant 0 : i32
    %c0_i32_0 = arith.constant 0 : i32
    return %c0_i32, %arg1 : i32, i32
  }
  func.func @transform_3(%arg0: i32, %arg1: i32, %arg2: i32) -> (i32, i32) {
    %c0_i32 = arith.constant 0 : i32
    return %arg0, %arg1 : i32, i32
  }
}

module attributes {stable_mosaic.version = 11 : i64} {
  func.func @kernel(%arg0: memref<8x4x256xf32, #tpu.memory_space<vmem>>, %arg1: memref<64x256xf32, #tpu.memory_space<vmem>>, %arg2: memref<8x4x32xf32, #tpu.memory_space<vmem>>, %arg3: memref<8x4x32xf32, #tpu.memory_space<vmem>>) attributes {dimension_semantics = [], scalar_prefetch = 0 : i64, scratch_operands = 0 : i64, tpu.core_type = #tpu.core_type<tc>} {
    %c0 = arith.constant 0 : index
    %c0_0 = arith.constant 0 : index
    %0 = vector.load %arg1[%c0, %c0_0] : memref<64x256xf32, #tpu.memory_space<vmem>>, vector<64x256xf32>
    %cst = arith.constant 0.000000e+00 : f32
    %1 = vector.broadcast %cst : f32 to vector<4x64xf32>
    %cst_1 = arith.constant 0.000000e+00 : f32
    %2 = vector.broadcast %cst_1 : f32 to vector<4x64xf32>
    %c0_i32 = arith.constant 0 : i32
    %3 = arith.index_cast %c0_i32 : i32 to index
    %c0_2 = arith.constant 0 : index
    %c0_3 = arith.constant 0 : index
    %4 = vector.load %arg0[%3, %c0_2, %c0_3] : memref<8x4x256xf32, #tpu.memory_space<vmem>>, vector<1x4x256xf32>
    %5 = vector.shape_cast %4 : vector<1x4x256xf32> to vector<4x256xf32>
    %cst_4 = arith.constant dense<0.000000e+00> : vector<4x256xf32>
    %6 = tpu.matmul %1, %0, %cst_4 {dimension_numbers = #tpu.dot_dimension_numbers<[1], [0], [0], [1], [0, 0, 1, 1], [], []>} : vector<4x64xf32>, vector<64x256xf32>, vector<4x256xf32> -> vector<4x256xf32>
    %7 = arith.addf %5, %6 : vector<4x256xf32>
    %8 = vector.extract_strided_slice %7 {offsets = [0, 0], sizes = [4, 64], strides = [1, 1]} : vector<4x256xf32> to vector<4x64xf32>
    %9 = arith.negf %8 : vector<4x64xf32>
    %10 = math.exp %9 : vector<4x64xf32>
    %cst_5 = arith.constant 1.000000e+00 : f32
    %11 = vector.broadcast %cst_5 : f32 to vector<4x64xf32>
    %12 = arith.addf %11, %10 : vector<4x64xf32>
    %13 = arith.divf %11, %12 : vector<4x64xf32>
    %14 = vector.extract_strided_slice %7 {offsets = [0, 64], sizes = [4, 64], strides = [1, 1]} : vector<4x256xf32> to vector<4x64xf32>
    %15 = arith.negf %14 : vector<4x64xf32>
    %16 = math.exp %15 : vector<4x64xf32>
    %cst_6 = arith.constant 1.000000e+00 : f32
    %17 = vector.broadcast %cst_6 : f32 to vector<4x64xf32>
    %18 = arith.addf %17, %16 : vector<4x64xf32>
    %19 = arith.divf %17, %18 : vector<4x64xf32>
    %20 = vector.extract_strided_slice %7 {offsets = [0, 128], sizes = [4, 64], strides = [1, 1]} : vector<4x256xf32> to vector<4x64xf32>
    %21 = math.tanh %20 : vector<4x64xf32>
    %22 = vector.extract_strided_slice %7 {offsets = [0, 192], sizes = [4, 64], strides = [1, 1]} : vector<4x256xf32> to vector<4x64xf32>
    %23 = arith.negf %22 : vector<4x64xf32>
    %24 = math.exp %23 : vector<4x64xf32>
    %cst_7 = arith.constant 1.000000e+00 : f32
    %25 = vector.broadcast %cst_7 : f32 to vector<4x64xf32>
    %26 = arith.addf %25, %24 : vector<4x64xf32>
    %27 = arith.divf %25, %26 : vector<4x64xf32>
    %28 = arith.mulf %19, %2 : vector<4x64xf32>
    %29 = arith.mulf %13, %21 : vector<4x64xf32>
    %30 = arith.addf %28, %29 : vector<4x64xf32>
    %31 = math.tanh %30 : vector<4x64xf32>
    %32 = arith.mulf %27, %31 : vector<4x64xf32>
    %33 = vector.extract_strided_slice %32 {offsets = [0, 0], sizes = [4, 32], strides = [1, 1]} : vector<4x64xf32> to vector<4x32xf32>
    %34 = arith.index_cast %c0_i32 : i32 to index
    %c0_8 = arith.constant 0 : index
    %c0_9 = arith.constant 0 : index
    %35 = vector.load %arg2[%34, %c0_8, %c0_9] : memref<8x4x32xf32, #tpu.memory_space<vmem>>, vector<1x4x32xf32>
    %36 = vector.shape_cast %35 : vector<1x4x32xf32> to vector<4x32xf32>
    %37 = vector.shape_cast %33 : vector<4x32xf32> to vector<1x4x32xf32>
    tpu.vector_store %arg2[%34, %c0_8, %c0_9], %37 {strides = array<i32>} : memref<8x4x32xf32, #tpu.memory_space<vmem>>, vector<1x4x32xf32>,
    %38 = vector.extract_strided_slice %32 {offsets = [0, 32], sizes = [4, 32], strides = [1, 1]} : vector<4x64xf32> to vector<4x32xf32>
    %c7_i32 = arith.constant 7 : i32
    %39 = arith.subi %c7_i32, %c0_i32 : i32
    %40 = arith.index_cast %39 : i32 to index
    %c0_10 = arith.constant 0 : index
    %c0_11 = arith.constant 0 : index
    %41 = vector.load %arg3[%40, %c0_10, %c0_11] : memref<8x4x32xf32, #tpu.memory_space<vmem>>, vector<1x4x32xf32>
    %42 = vector.shape_cast %41 : vector<1x4x32xf32> to vector<4x32xf32>
    %43 = vector.shape_cast %38 : vector<4x32xf32> to vector<1x4x32xf32>
    tpu.vector_store %arg3[%40, %c0_10, %c0_11], %43 {strides = array<i32>} : memref<8x4x32xf32, #tpu.memory_space<vmem>>, vector<1x4x32xf32>,
    %c1_i32 = arith.constant 1 : i32
    %44 = arith.index_cast %c1_i32 : i32 to index
    %c0_12 = arith.constant 0 : index
    %c0_13 = arith.constant 0 : index
    %45 = vector.load %arg0[%44, %c0_12, %c0_13] : memref<8x4x256xf32, #tpu.memory_space<vmem>>, vector<1x4x256xf32>
    %46 = vector.shape_cast %45 : vector<1x4x256xf32> to vector<4x256xf32>
    %cst_14 = arith.constant dense<0.000000e+00> : vector<4x256xf32>
    %47 = tpu.matmul %32, %0, %cst_14 {dimension_numbers = #tpu.dot_dimension_numbers<[1], [0], [0], [1], [0, 0, 1, 1], [], []>} : vector<4x64xf32>, vector<64x256xf32>, vector<4x256xf32> -> vector<4x256xf32>
    %48 = arith.addf %46, %47 : vector<4x256xf32>
    %49 = vector.extract_strided_slice %48 {offsets = [0, 0], sizes = [4, 64], strides = [1, 1]} : vector<4x256xf32> to vector<4x64xf32>
    %50 = arith.negf %49 : vector<4x64xf32>
    %51 = math.exp %50 : vector<4x64xf32>
    %cst_15 = arith.constant 1.000000e+00 : f32
    %52 = vector.broadcast %cst_15 : f32 to vector<4x64xf32>
    %53 = arith.addf %52, %51 : vector<4x64xf32>
    %54 = arith.divf %52, %53 : vector<4x64xf32>
    %55 = vector.extract_strided_slice %48 {offsets = [0, 64], sizes = [4, 64], strides = [1, 1]} : vector<4x256xf32> to vector<4x64xf32>
    %56 = arith.negf %55 : vector<4x64xf32>
    %57 = math.exp %56 : vector<4x64xf32>
    %cst_16 = arith.constant 1.000000e+00 : f32
    %58 = vector.broadcast %cst_16 : f32 to vector<4x64xf32>
    %59 = arith.addf %58, %57 : vector<4x64xf32>
    %60 = arith.divf %58, %59 : vector<4x64xf32>
    %61 = vector.extract_strided_slice %48 {offsets = [0, 128], sizes = [4, 64], strides = [1, 1]} : vector<4x256xf32> to vector<4x64xf32>
    %62 = math.tanh %61 : vector<4x64xf32>
    %63 = vector.extract_strided_slice %48 {offsets = [0, 192], sizes = [4, 64], strides = [1, 1]} : vector<4x256xf32> to vector<4x64xf32>
    %64 = arith.negf %63 : vector<4x64xf32>
    %65 = math.exp %64 : vector<4x64xf32>
    %cst_17 = arith.constant 1.000000e+00 : f32
    %66 = vector.broadcast %cst_17 : f32 to vector<4x64xf32>
    %67 = arith.addf %66, %65 : vector<4x64xf32>
    %68 = arith.divf %66, %67 : vector<4x64xf32>
    %69 = arith.mulf %60, %30 : vector<4x64xf32>
    %70 = arith.mulf %54, %62 : vector<4x64xf32>
    %71 = arith.addf %69, %70 : vector<4x64xf32>
    %72 = math.tanh %71 : vector<4x64xf32>
    %73 = arith.mulf %68, %72 : vector<4x64xf32>
    %74 = vector.extract_strided_slice %73 {offsets = [0, 0], sizes = [4, 32], strides = [1, 1]} : vector<4x64xf32> to vector<4x32xf32>
    %75 = arith.index_cast %c1_i32 : i32 to index
    %c0_18 = arith.constant 0 : index
    %c0_19 = arith.constant 0 : index
    %76 = vector.load %arg2[%75, %c0_18, %c0_19] : memref<8x4x32xf32, #tpu.memory_space<vmem>>, vector<1x4x32xf32>
    %77 = vector.shape_cast %76 : vector<1x4x32xf32> to vector<4x32xf32>
    %78 = vector.shape_cast %74 : vector<4x32xf32> to vector<1x4x32xf32>
    tpu.vector_store %arg2[%75, %c0_18, %c0_19], %78 {strides = array<i32>} : memref<8x4x32xf32, #tpu.memory_space<vmem>>, vector<1x4x32xf32>,
    %79 = vector.extract_strided_slice %73 {offsets = [0, 32], sizes = [4, 32], strides = [1, 1]} : vector<4x64xf32> to vector<4x32xf32>
    %c7_i32_20 = arith.constant 7 : i32
    %80 = arith.subi %c7_i32_20, %c1_i32 : i32
    %81 = arith.index_cast %80 : i32 to index
    %c0_21 = arith.constant 0 : index
    %c0_22 = arith.constant 0 : index
    %82 = vector.load %arg3[%81, %c0_21, %c0_22] : memref<8x4x32xf32, #tpu.memory_space<vmem>>, vector<1x4x32xf32>
    %83 = vector.shape_cast %82 : vector<1x4x32xf32> to vector<4x32xf32>
    %84 = vector.shape_cast %79 : vector<4x32xf32> to vector<1x4x32xf32>
    tpu.vector_store %arg3[%81, %c0_21, %c0_22], %84 {strides = array<i32>} : memref<8x4x32xf32, #tpu.memory_space<vmem>>, vector<1x4x32xf32>,
    %c2_i32 = arith.constant 2 : i32
    %85 = arith.index_cast %c2_i32 : i32 to index
    %c0_23 = arith.constant 0 : index
    %c0_24 = arith.constant 0 : index
    %86 = vector.load %arg0[%85, %c0_23, %c0_24] : memref<8x4x256xf32, #tpu.memory_space<vmem>>, vector<1x4x256xf32>
    %87 = vector.shape_cast %86 : vector<1x4x256xf32> to vector<4x256xf32>
    %cst_25 = arith.constant dense<0.000000e+00> : vector<4x256xf32>
    %88 = tpu.matmul %73, %0, %cst_25 {dimension_numbers = #tpu.dot_dimension_numbers<[1], [0], [0], [1], [0, 0, 1, 1], [], []>} : vector<4x64xf32>, vector<64x256xf32>, vector<4x256xf32> -> vector<4x256xf32>
    %89 = arith.addf %87, %88 : vector<4x256xf32>
    %90 = vector.extract_strided_slice %89 {offsets = [0, 0], sizes = [4, 64], strides = [1, 1]} : vector<4x256xf32> to vector<4x64xf32>
    %91 = arith.negf %90 : vector<4x64xf32>
    %92 = math.exp %91 : vector<4x64xf32>
    %cst_26 = arith.constant 1.000000e+00 : f32
    %93 = vector.broadcast %cst_26 : f32 to vector<4x64xf32>
    %94 = arith.addf %93, %92 : vector<4x64xf32>
    %95 = arith.divf %93, %94 : vector<4x64xf32>
    %96 = vector.extract_strided_slice %89 {offsets = [0, 64], sizes = [4, 64], strides = [1, 1]} : vector<4x256xf32> to vector<4x64xf32>
    %97 = arith.negf %96 : vector<4x64xf32>
    %98 = math.exp %97 : vector<4x64xf32>
    %cst_27 = arith.constant 1.000000e+00 : f32
    %99 = vector.broadcast %cst_27 : f32 to vector<4x64xf32>
    %100 = arith.addf %99, %98 : vector<4x64xf32>
    %101 = arith.divf %99, %100 : vector<4x64xf32>
    %102 = vector.extract_strided_slice %89 {offsets = [0, 128], sizes = [4, 64], strides = [1, 1]} : vector<4x256xf32> to vector<4x64xf32>
    %103 = math.tanh %102 : vector<4x64xf32>
    %104 = vector.extract_strided_slice %89 {offsets = [0, 192], sizes = [4, 64], strides = [1, 1]} : vector<4x256xf32> to vector<4x64xf32>
    %105 = arith.negf %104 : vector<4x64xf32>
    %106 = math.exp %105 : vector<4x64xf32>
    %cst_28 = arith.constant 1.000000e+00 : f32
    %107 = vector.broadcast %cst_28 : f32 to vector<4x64xf32>
    %108 = arith.addf %107, %106 : vector<4x64xf32>
    %109 = arith.divf %107, %108 : vector<4x64xf32>
    %110 = arith.mulf %101, %71 : vector<4x64xf32>
    %111 = arith.mulf %95, %103 : vector<4x64xf32>
    %112 = arith.addf %110, %111 : vector<4x64xf32>
    %113 = math.tanh %112 : vector<4x64xf32>
    %114 = arith.mulf %109, %113 : vector<4x64xf32>
    %115 = vector.extract_strided_slice %114 {offsets = [0, 0], sizes = [4, 32], strides = [1, 1]} : vector<4x64xf32> to vector<4x32xf32>
    %116 = arith.index_cast %c2_i32 : i32 to index
    %c0_29 = arith.constant 0 : index
    %c0_30 = arith.constant 0 : index
    %117 = vector.load %arg2[%116, %c0_29, %c0_30] : memref<8x4x32xf32, #tpu.memory_space<vmem>>, vector<1x4x32xf32>
    %118 = vector.shape_cast %117 : vector<1x4x32xf32> to vector<4x32xf32>
    %119 = vector.shape_cast %115 : vector<4x32xf32> to vector<1x4x32xf32>
    tpu.vector_store %arg2[%116, %c0_29, %c0_30], %119 {strides = array<i32>} : memref<8x4x32xf32, #tpu.memory_space<vmem>>, vector<1x4x32xf32>,
    %120 = vector.extract_strided_slice %114 {offsets = [0, 32], sizes = [4, 32], strides = [1, 1]} : vector<4x64xf32> to vector<4x32xf32>
    %c7_i32_31 = arith.constant 7 : i32
    %121 = arith.subi %c7_i32_31, %c2_i32 : i32
    %122 = arith.index_cast %121 : i32 to index
    %c0_32 = arith.constant 0 : index
    %c0_33 = arith.constant 0 : index
    %123 = vector.load %arg3[%122, %c0_32, %c0_33] : memref<8x4x32xf32, #tpu.memory_space<vmem>>, vector<1x4x32xf32>
    %124 = vector.shape_cast %123 : vector<1x4x32xf32> to vector<4x32xf32>
    %125 = vector.shape_cast %120 : vector<4x32xf32> to vector<1x4x32xf32>
    tpu.vector_store %arg3[%122, %c0_32, %c0_33], %125 {strides = array<i32>} : memref<8x4x32xf32, #tpu.memory_space<vmem>>, vector<1x4x32xf32>,
    %c3_i32 = arith.constant 3 : i32
    %126 = arith.index_cast %c3_i32 : i32 to index
    %c0_34 = arith.constant 0 : index
    %c0_35 = arith.constant 0 : index
    %127 = vector.load %arg0[%126, %c0_34, %c0_35] : memref<8x4x256xf32, #tpu.memory_space<vmem>>, vector<1x4x256xf32>
    %128 = vector.shape_cast %127 : vector<1x4x256xf32> to vector<4x256xf32>
    %cst_36 = arith.constant dense<0.000000e+00> : vector<4x256xf32>
    %129 = tpu.matmul %114, %0, %cst_36 {dimension_numbers = #tpu.dot_dimension_numbers<[1], [0], [0], [1], [0, 0, 1, 1], [], []>} : vector<4x64xf32>, vector<64x256xf32>, vector<4x256xf32> -> vector<4x256xf32>
    %130 = arith.addf %128, %129 : vector<4x256xf32>
    %131 = vector.extract_strided_slice %130 {offsets = [0, 0], sizes = [4, 64], strides = [1, 1]} : vector<4x256xf32> to vector<4x64xf32>
    %132 = arith.negf %131 : vector<4x64xf32>
    %133 = math.exp %132 : vector<4x64xf32>
    %cst_37 = arith.constant 1.000000e+00 : f32
    %134 = vector.broadcast %cst_37 : f32 to vector<4x64xf32>
    %135 = arith.addf %134, %133 : vector<4x64xf32>
    %136 = arith.divf %134, %135 : vector<4x64xf32>
    %137 = vector.extract_strided_slice %130 {offsets = [0, 64], sizes = [4, 64], strides = [1, 1]} : vector<4x256xf32> to vector<4x64xf32>
    %138 = arith.negf %137 : vector<4x64xf32>
    %139 = math.exp %138 : vector<4x64xf32>
    %cst_38 = arith.constant 1.000000e+00 : f32
    %140 = vector.broadcast %cst_38 : f32 to vector<4x64xf32>
    %141 = arith.addf %140, %139 : vector<4x64xf32>
    %142 = arith.divf %140, %141 : vector<4x64xf32>
    %143 = vector.extract_strided_slice %130 {offsets = [0, 128], sizes = [4, 64], strides = [1, 1]} : vector<4x256xf32> to vector<4x64xf32>
    %144 = math.tanh %143 : vector<4x64xf32>
    %145 = vector.extract_strided_slice %130 {offsets = [0, 192], sizes = [4, 64], strides = [1, 1]} : vector<4x256xf32> to vector<4x64xf32>
    %146 = arith.negf %145 : vector<4x64xf32>
    %147 = math.exp %146 : vector<4x64xf32>
    %cst_39 = arith.constant 1.000000e+00 : f32
    %148 = vector.broadcast %cst_39 : f32 to vector<4x64xf32>
    %149 = arith.addf %148, %147 : vector<4x64xf32>
    %150 = arith.divf %148, %149 : vector<4x64xf32>
    %151 = arith.mulf %142, %112 : vector<4x64xf32>
    %152 = arith.mulf %136, %144 : vector<4x64xf32>
    %153 = arith.addf %151, %152 : vector<4x64xf32>
    %154 = math.tanh %153 : vector<4x64xf32>
    %155 = arith.mulf %150, %154 : vector<4x64xf32>
    %156 = vector.extract_strided_slice %155 {offsets = [0, 0], sizes = [4, 32], strides = [1, 1]} : vector<4x64xf32> to vector<4x32xf32>
    %157 = arith.index_cast %c3_i32 : i32 to index
    %c0_40 = arith.constant 0 : index
    %c0_41 = arith.constant 0 : index
    %158 = vector.load %arg2[%157, %c0_40, %c0_41] : memref<8x4x32xf32, #tpu.memory_space<vmem>>, vector<1x4x32xf32>
    %159 = vector.shape_cast %158 : vector<1x4x32xf32> to vector<4x32xf32>
    %160 = vector.shape_cast %156 : vector<4x32xf32> to vector<1x4x32xf32>
    tpu.vector_store %arg2[%157, %c0_40, %c0_41], %160 {strides = array<i32>} : memref<8x4x32xf32, #tpu.memory_space<vmem>>, vector<1x4x32xf32>,
    %161 = vector.extract_strided_slice %155 {offsets = [0, 32], sizes = [4, 32], strides = [1, 1]} : vector<4x64xf32> to vector<4x32xf32>
    %c7_i32_42 = arith.constant 7 : i32
    %162 = arith.subi %c7_i32_42, %c3_i32 : i32
    %163 = arith.index_cast %162 : i32 to index
    %c0_43 = arith.constant 0 : index
    %c0_44 = arith.constant 0 : index
    %164 = vector.load %arg3[%163, %c0_43, %c0_44] : memref<8x4x32xf32, #tpu.memory_space<vmem>>, vector<1x4x32xf32>
    %165 = vector.shape_cast %164 : vector<1x4x32xf32> to vector<4x32xf32>
    %166 = vector.shape_cast %161 : vector<4x32xf32> to vector<1x4x32xf32>
    tpu.vector_store %arg3[%163, %c0_43, %c0_44], %166 {strides = array<i32>} : memref<8x4x32xf32, #tpu.memory_space<vmem>>, vector<1x4x32xf32>,
    %c4_i32 = arith.constant 4 : i32
    %167 = arith.index_cast %c4_i32 : i32 to index
    %c0_45 = arith.constant 0 : index
    %c0_46 = arith.constant 0 : index
    %168 = vector.load %arg0[%167, %c0_45, %c0_46] : memref<8x4x256xf32, #tpu.memory_space<vmem>>, vector<1x4x256xf32>
    %169 = vector.shape_cast %168 : vector<1x4x256xf32> to vector<4x256xf32>
    %cst_47 = arith.constant dense<0.000000e+00> : vector<4x256xf32>
    %170 = tpu.matmul %155, %0, %cst_47 {dimension_numbers = #tpu.dot_dimension_numbers<[1], [0], [0], [1], [0, 0, 1, 1], [], []>} : vector<4x64xf32>, vector<64x256xf32>, vector<4x256xf32> -> vector<4x256xf32>
    %171 = arith.addf %169, %170 : vector<4x256xf32>
    %172 = vector.extract_strided_slice %171 {offsets = [0, 0], sizes = [4, 64], strides = [1, 1]} : vector<4x256xf32> to vector<4x64xf32>
    %173 = arith.negf %172 : vector<4x64xf32>
    %174 = math.exp %173 : vector<4x64xf32>
    %cst_48 = arith.constant 1.000000e+00 : f32
    %175 = vector.broadcast %cst_48 : f32 to vector<4x64xf32>
    %176 = arith.addf %175, %174 : vector<4x64xf32>
    %177 = arith.divf %175, %176 : vector<4x64xf32>
    %178 = vector.extract_strided_slice %171 {offsets = [0, 64], sizes = [4, 64], strides = [1, 1]} : vector<4x256xf32> to vector<4x64xf32>
    %179 = arith.negf %178 : vector<4x64xf32>
    %180 = math.exp %179 : vector<4x64xf32>
    %cst_49 = arith.constant 1.000000e+00 : f32
    %181 = vector.broadcast %cst_49 : f32 to vector<4x64xf32>
    %182 = arith.addf %181, %180 : vector<4x64xf32>
    %183 = arith.divf %181, %182 : vector<4x64xf32>
    %184 = vector.extract_strided_slice %171 {offsets = [0, 128], sizes = [4, 64], strides = [1, 1]} : vector<4x256xf32> to vector<4x64xf32>
    %185 = math.tanh %184 : vector<4x64xf32>
    %186 = vector.extract_strided_slice %171 {offsets = [0, 192], sizes = [4, 64], strides = [1, 1]} : vector<4x256xf32> to vector<4x64xf32>
    %187 = arith.negf %186 : vector<4x64xf32>
    %188 = math.exp %187 : vector<4x64xf32>
    %cst_50 = arith.constant 1.000000e+00 : f32
    %189 = vector.broadcast %cst_50 : f32 to vector<4x64xf32>
    %190 = arith.addf %189, %188 : vector<4x64xf32>
    %191 = arith.divf %189, %190 : vector<4x64xf32>
    %192 = arith.mulf %183, %153 : vector<4x64xf32>
    %193 = arith.mulf %177, %185 : vector<4x64xf32>
    %194 = arith.addf %192, %193 : vector<4x64xf32>
    %195 = math.tanh %194 : vector<4x64xf32>
    %196 = arith.mulf %191, %195 : vector<4x64xf32>
    %197 = vector.extract_strided_slice %196 {offsets = [0, 0], sizes = [4, 32], strides = [1, 1]} : vector<4x64xf32> to vector<4x32xf32>
    %198 = arith.index_cast %c4_i32 : i32 to index
    %c0_51 = arith.constant 0 : index
    %c0_52 = arith.constant 0 : index
    %199 = vector.load %arg2[%198, %c0_51, %c0_52] : memref<8x4x32xf32, #tpu.memory_space<vmem>>, vector<1x4x32xf32>
    %200 = vector.shape_cast %199 : vector<1x4x32xf32> to vector<4x32xf32>
    %201 = vector.shape_cast %197 : vector<4x32xf32> to vector<1x4x32xf32>
    tpu.vector_store %arg2[%198, %c0_51, %c0_52], %201 {strides = array<i32>} : memref<8x4x32xf32, #tpu.memory_space<vmem>>, vector<1x4x32xf32>,
    %202 = vector.extract_strided_slice %196 {offsets = [0, 32], sizes = [4, 32], strides = [1, 1]} : vector<4x64xf32> to vector<4x32xf32>
    %c7_i32_53 = arith.constant 7 : i32
    %203 = arith.subi %c7_i32_53, %c4_i32 : i32
    %204 = arith.index_cast %203 : i32 to index
    %c0_54 = arith.constant 0 : index
    %c0_55 = arith.constant 0 : index
    %205 = vector.load %arg3[%204, %c0_54, %c0_55] : memref<8x4x32xf32, #tpu.memory_space<vmem>>, vector<1x4x32xf32>
    %206 = vector.shape_cast %205 : vector<1x4x32xf32> to vector<4x32xf32>
    %207 = vector.shape_cast %202 : vector<4x32xf32> to vector<1x4x32xf32>
    tpu.vector_store %arg3[%204, %c0_54, %c0_55], %207 {strides = array<i32>} : memref<8x4x32xf32, #tpu.memory_space<vmem>>, vector<1x4x32xf32>,
    %c5_i32 = arith.constant 5 : i32
    %208 = arith.index_cast %c5_i32 : i32 to index
    %c0_56 = arith.constant 0 : index
    %c0_57 = arith.constant 0 : index
    %209 = vector.load %arg0[%208, %c0_56, %c0_57] : memref<8x4x256xf32, #tpu.memory_space<vmem>>, vector<1x4x256xf32>
    %210 = vector.shape_cast %209 : vector<1x4x256xf32> to vector<4x256xf32>
    %cst_58 = arith.constant dense<0.000000e+00> : vector<4x256xf32>
    %211 = tpu.matmul %196, %0, %cst_58 {dimension_numbers = #tpu.dot_dimension_numbers<[1], [0], [0], [1], [0, 0, 1, 1], [], []>} : vector<4x64xf32>, vector<64x256xf32>, vector<4x256xf32> -> vector<4x256xf32>
    %212 = arith.addf %210, %211 : vector<4x256xf32>
    %213 = vector.extract_strided_slice %212 {offsets = [0, 0], sizes = [4, 64], strides = [1, 1]} : vector<4x256xf32> to vector<4x64xf32>
    %214 = arith.negf %213 : vector<4x64xf32>
    %215 = math.exp %214 : vector<4x64xf32>
    %cst_59 = arith.constant 1.000000e+00 : f32
    %216 = vector.broadcast %cst_59 : f32 to vector<4x64xf32>
    %217 = arith.addf %216, %215 : vector<4x64xf32>
    %218 = arith.divf %216, %217 : vector<4x64xf32>
    %219 = vector.extract_strided_slice %212 {offsets = [0, 64], sizes = [4, 64], strides = [1, 1]} : vector<4x256xf32> to vector<4x64xf32>
    %220 = arith.negf %219 : vector<4x64xf32>
    %221 = math.exp %220 : vector<4x64xf32>
    %cst_60 = arith.constant 1.000000e+00 : f32
    %222 = vector.broadcast %cst_60 : f32 to vector<4x64xf32>
    %223 = arith.addf %222, %221 : vector<4x64xf32>
    %224 = arith.divf %222, %223 : vector<4x64xf32>
    %225 = vector.extract_strided_slice %212 {offsets = [0, 128], sizes = [4, 64], strides = [1, 1]} : vector<4x256xf32> to vector<4x64xf32>
    %226 = math.tanh %225 : vector<4x64xf32>
    %227 = vector.extract_strided_slice %212 {offsets = [0, 192], sizes = [4, 64], strides = [1, 1]} : vector<4x256xf32> to vector<4x64xf32>
    %228 = arith.negf %227 : vector<4x64xf32>
    %229 = math.exp %228 : vector<4x64xf32>
    %cst_61 = arith.constant 1.000000e+00 : f32
    %230 = vector.broadcast %cst_61 : f32 to vector<4x64xf32>
    %231 = arith.addf %230, %229 : vector<4x64xf32>
    %232 = arith.divf %230, %231 : vector<4x64xf32>
    %233 = arith.mulf %224, %194 : vector<4x64xf32>
    %234 = arith.mulf %218, %226 : vector<4x64xf32>
    %235 = arith.addf %233, %234 : vector<4x64xf32>
    %236 = math.tanh %235 : vector<4x64xf32>
    %237 = arith.mulf %232, %236 : vector<4x64xf32>
    %238 = vector.extract_strided_slice %237 {offsets = [0, 0], sizes = [4, 32], strides = [1, 1]} : vector<4x64xf32> to vector<4x32xf32>
    %239 = arith.index_cast %c5_i32 : i32 to index
    %c0_62 = arith.constant 0 : index
    %c0_63 = arith.constant 0 : index
    %240 = vector.load %arg2[%239, %c0_62, %c0_63] : memref<8x4x32xf32, #tpu.memory_space<vmem>>, vector<1x4x32xf32>
    %241 = vector.shape_cast %240 : vector<1x4x32xf32> to vector<4x32xf32>
    %242 = vector.shape_cast %238 : vector<4x32xf32> to vector<1x4x32xf32>
    tpu.vector_store %arg2[%239, %c0_62, %c0_63], %242 {strides = array<i32>} : memref<8x4x32xf32, #tpu.memory_space<vmem>>, vector<1x4x32xf32>,
    %243 = vector.extract_strided_slice %237 {offsets = [0, 32], sizes = [4, 32], strides = [1, 1]} : vector<4x64xf32> to vector<4x32xf32>
    %c7_i32_64 = arith.constant 7 : i32
    %244 = arith.subi %c7_i32_64, %c5_i32 : i32
    %245 = arith.index_cast %244 : i32 to index
    %c0_65 = arith.constant 0 : index
    %c0_66 = arith.constant 0 : index
    %246 = vector.load %arg3[%245, %c0_65, %c0_66] : memref<8x4x32xf32, #tpu.memory_space<vmem>>, vector<1x4x32xf32>
    %247 = vector.shape_cast %246 : vector<1x4x32xf32> to vector<4x32xf32>
    %248 = vector.shape_cast %243 : vector<4x32xf32> to vector<1x4x32xf32>
    tpu.vector_store %arg3[%245, %c0_65, %c0_66], %248 {strides = array<i32>} : memref<8x4x32xf32, #tpu.memory_space<vmem>>, vector<1x4x32xf32>,
    %c6_i32 = arith.constant 6 : i32
    %249 = arith.index_cast %c6_i32 : i32 to index
    %c0_67 = arith.constant 0 : index
    %c0_68 = arith.constant 0 : index
    %250 = vector.load %arg0[%249, %c0_67, %c0_68] : memref<8x4x256xf32, #tpu.memory_space<vmem>>, vector<1x4x256xf32>
    %251 = vector.shape_cast %250 : vector<1x4x256xf32> to vector<4x256xf32>
    %cst_69 = arith.constant dense<0.000000e+00> : vector<4x256xf32>
    %252 = tpu.matmul %237, %0, %cst_69 {dimension_numbers = #tpu.dot_dimension_numbers<[1], [0], [0], [1], [0, 0, 1, 1], [], []>} : vector<4x64xf32>, vector<64x256xf32>, vector<4x256xf32> -> vector<4x256xf32>
    %253 = arith.addf %251, %252 : vector<4x256xf32>
    %254 = vector.extract_strided_slice %253 {offsets = [0, 0], sizes = [4, 64], strides = [1, 1]} : vector<4x256xf32> to vector<4x64xf32>
    %255 = arith.negf %254 : vector<4x64xf32>
    %256 = math.exp %255 : vector<4x64xf32>
    %cst_70 = arith.constant 1.000000e+00 : f32
    %257 = vector.broadcast %cst_70 : f32 to vector<4x64xf32>
    %258 = arith.addf %257, %256 : vector<4x64xf32>
    %259 = arith.divf %257, %258 : vector<4x64xf32>
    %260 = vector.extract_strided_slice %253 {offsets = [0, 64], sizes = [4, 64], strides = [1, 1]} : vector<4x256xf32> to vector<4x64xf32>
    %261 = arith.negf %260 : vector<4x64xf32>
    %262 = math.exp %261 : vector<4x64xf32>
    %cst_71 = arith.constant 1.000000e+00 : f32
    %263 = vector.broadcast %cst_71 : f32 to vector<4x64xf32>
    %264 = arith.addf %263, %262 : vector<4x64xf32>
    %265 = arith.divf %263, %264 : vector<4x64xf32>
    %266 = vector.extract_strided_slice %253 {offsets = [0, 128], sizes = [4, 64], strides = [1, 1]} : vector<4x256xf32> to vector<4x64xf32>
    %267 = math.tanh %266 : vector<4x64xf32>
    %268 = vector.extract_strided_slice %253 {offsets = [0, 192], sizes = [4, 64], strides = [1, 1]} : vector<4x256xf32> to vector<4x64xf32>
    %269 = arith.negf %268 : vector<4x64xf32>
    %270 = math.exp %269 : vector<4x64xf32>
    %cst_72 = arith.constant 1.000000e+00 : f32
    %271 = vector.broadcast %cst_72 : f32 to vector<4x64xf32>
    %272 = arith.addf %271, %270 : vector<4x64xf32>
    %273 = arith.divf %271, %272 : vector<4x64xf32>
    %274 = arith.mulf %265, %235 : vector<4x64xf32>
    %275 = arith.mulf %259, %267 : vector<4x64xf32>
    %276 = arith.addf %274, %275 : vector<4x64xf32>
    %277 = math.tanh %276 : vector<4x64xf32>
    %278 = arith.mulf %273, %277 : vector<4x64xf32>
    %279 = vector.extract_strided_slice %278 {offsets = [0, 0], sizes = [4, 32], strides = [1, 1]} : vector<4x64xf32> to vector<4x32xf32>
    %280 = arith.index_cast %c6_i32 : i32 to index
    %c0_73 = arith.constant 0 : index
    %c0_74 = arith.constant 0 : index
    %281 = vector.load %arg2[%280, %c0_73, %c0_74] : memref<8x4x32xf32, #tpu.memory_space<vmem>>, vector<1x4x32xf32>
    %282 = vector.shape_cast %281 : vector<1x4x32xf32> to vector<4x32xf32>
    %283 = vector.shape_cast %279 : vector<4x32xf32> to vector<1x4x32xf32>
    tpu.vector_store %arg2[%280, %c0_73, %c0_74], %283 {strides = array<i32>} : memref<8x4x32xf32, #tpu.memory_space<vmem>>, vector<1x4x32xf32>,
    %284 = vector.extract_strided_slice %278 {offsets = [0, 32], sizes = [4, 32], strides = [1, 1]} : vector<4x64xf32> to vector<4x32xf32>
    %c7_i32_75 = arith.constant 7 : i32
    %285 = arith.subi %c7_i32_75, %c6_i32 : i32
    %286 = arith.index_cast %285 : i32 to index
    %c0_76 = arith.constant 0 : index
    %c0_77 = arith.constant 0 : index
    %287 = vector.load %arg3[%286, %c0_76, %c0_77] : memref<8x4x32xf32, #tpu.memory_space<vmem>>, vector<1x4x32xf32>
    %288 = vector.shape_cast %287 : vector<1x4x32xf32> to vector<4x32xf32>
    %289 = vector.shape_cast %284 : vector<4x32xf32> to vector<1x4x32xf32>
    tpu.vector_store %arg3[%286, %c0_76, %c0_77], %289 {strides = array<i32>} : memref<8x4x32xf32, #tpu.memory_space<vmem>>, vector<1x4x32xf32>,
    %c7_i32_78 = arith.constant 7 : i32
    %290 = arith.index_cast %c7_i32_78 : i32 to index
    %c0_79 = arith.constant 0 : index
    %c0_80 = arith.constant 0 : index
    %291 = vector.load %arg0[%290, %c0_79, %c0_80] : memref<8x4x256xf32, #tpu.memory_space<vmem>>, vector<1x4x256xf32>
    %292 = vector.shape_cast %291 : vector<1x4x256xf32> to vector<4x256xf32>
    %cst_81 = arith.constant dense<0.000000e+00> : vector<4x256xf32>
    %293 = tpu.matmul %278, %0, %cst_81 {dimension_numbers = #tpu.dot_dimension_numbers<[1], [0], [0], [1], [0, 0, 1, 1], [], []>} : vector<4x64xf32>, vector<64x256xf32>, vector<4x256xf32> -> vector<4x256xf32>
    %294 = arith.addf %292, %293 : vector<4x256xf32>
    %295 = vector.extract_strided_slice %294 {offsets = [0, 0], sizes = [4, 64], strides = [1, 1]} : vector<4x256xf32> to vector<4x64xf32>
    %296 = arith.negf %295 : vector<4x64xf32>
    %297 = math.exp %296 : vector<4x64xf32>
    %cst_82 = arith.constant 1.000000e+00 : f32
    %298 = vector.broadcast %cst_82 : f32 to vector<4x64xf32>
    %299 = arith.addf %298, %297 : vector<4x64xf32>
    %300 = arith.divf %298, %299 : vector<4x64xf32>
    %301 = vector.extract_strided_slice %294 {offsets = [0, 64], sizes = [4, 64], strides = [1, 1]} : vector<4x256xf32> to vector<4x64xf32>
    %302 = arith.negf %301 : vector<4x64xf32>
    %303 = math.exp %302 : vector<4x64xf32>
    %cst_83 = arith.constant 1.000000e+00 : f32
    %304 = vector.broadcast %cst_83 : f32 to vector<4x64xf32>
    %305 = arith.addf %304, %303 : vector<4x64xf32>
    %306 = arith.divf %304, %305 : vector<4x64xf32>
    %307 = vector.extract_strided_slice %294 {offsets = [0, 128], sizes = [4, 64], strides = [1, 1]} : vector<4x256xf32> to vector<4x64xf32>
    %308 = math.tanh %307 : vector<4x64xf32>
    %309 = vector.extract_strided_slice %294 {offsets = [0, 192], sizes = [4, 64], strides = [1, 1]} : vector<4x256xf32> to vector<4x64xf32>
    %310 = arith.negf %309 : vector<4x64xf32>
    %311 = math.exp %310 : vector<4x64xf32>
    %cst_84 = arith.constant 1.000000e+00 : f32
    %312 = vector.broadcast %cst_84 : f32 to vector<4x64xf32>
    %313 = arith.addf %312, %311 : vector<4x64xf32>
    %314 = arith.divf %312, %313 : vector<4x64xf32>
    %315 = arith.mulf %306, %276 : vector<4x64xf32>
    %316 = arith.mulf %300, %308 : vector<4x64xf32>
    %317 = arith.addf %315, %316 : vector<4x64xf32>
    %318 = math.tanh %317 : vector<4x64xf32>
    %319 = arith.mulf %314, %318 : vector<4x64xf32>
    %320 = vector.extract_strided_slice %319 {offsets = [0, 0], sizes = [4, 32], strides = [1, 1]} : vector<4x64xf32> to vector<4x32xf32>
    %321 = arith.index_cast %c7_i32_78 : i32 to index
    %c0_85 = arith.constant 0 : index
    %c0_86 = arith.constant 0 : index
    %322 = vector.load %arg2[%321, %c0_85, %c0_86] : memref<8x4x32xf32, #tpu.memory_space<vmem>>, vector<1x4x32xf32>
    %323 = vector.shape_cast %322 : vector<1x4x32xf32> to vector<4x32xf32>
    %324 = vector.shape_cast %320 : vector<4x32xf32> to vector<1x4x32xf32>
    tpu.vector_store %arg2[%321, %c0_85, %c0_86], %324 {strides = array<i32>} : memref<8x4x32xf32, #tpu.memory_space<vmem>>, vector<1x4x32xf32>,
    %325 = vector.extract_strided_slice %319 {offsets = [0, 32], sizes = [4, 32], strides = [1, 1]} : vector<4x64xf32> to vector<4x32xf32>
    %c7_i32_87 = arith.constant 7 : i32
    %326 = arith.subi %c7_i32_87, %c7_i32_78 : i32
    %327 = arith.index_cast %326 : i32 to index
    %c0_88 = arith.constant 0 : index
    %c0_89 = arith.constant 0 : index
    %328 = vector.load %arg3[%327, %c0_88, %c0_89] : memref<8x4x32xf32, #tpu.memory_space<vmem>>, vector<1x4x32xf32>
    %329 = vector.shape_cast %328 : vector<1x4x32xf32> to vector<4x32xf32>
    %330 = vector.shape_cast %325 : vector<4x32xf32> to vector<1x4x32xf32>
    tpu.vector_store %arg3[%327, %c0_88, %c0_89], %330 {strides = array<i32>} : memref<8x4x32xf32, #tpu.memory_space<vmem>>, vector<1x4x32xf32>,
    %c8_i32 = arith.constant 8 : i32
    return
  }
}

module attributes {stable_mosaic.version = 11 : i64} {
  func.func @kernel(%arg0: i32, %arg1: i32, %arg2: i32, %arg3: memref<64x32xbf16, #tpu.memory_space<vmem>>, %arg4: memref<32x128xbf16, #tpu.memory_space<vmem>>, %arg5: memref<1x128xf32, #tpu.memory_space<vmem>>, %arg6: memref<64x128xf32, #tpu.memory_space<vmem>>, %arg7: memref<64x128xf32, #tpu.memory_space<vmem>>) attributes {dimension_semantics = [#tpu.dimension_semantics<parallel>, #tpu.dimension_semantics<parallel>, #tpu.dimension_semantics<arbitrary>], iteration_bounds = array<i64: 1, 1, 1>, scalar_prefetch = 0 : i64, scratch_operands = 1 : i64, tpu.core_type = #tpu.core_type<tc>, window_params = [{transform_indices = @transform_0, window_bounds = array<i64: 64, 32>}, {transform_indices = @transform_1, window_bounds = array<i64: 32, 128>}, {transform_indices = @transform_2, window_bounds = array<i64: 1, 128>}, {transform_indices = @transform_3, window_bounds = array<i64: 64, 128>}]} {
    %c0_i32 = arith.constant 0 : i32
    %0 = arith.cmpi eq, %arg2, %c0_i32 : i32
    %1 = arith.extui %0 : i1 to i32
    %c0_i32_0 = arith.constant 0 : i32
    %2 = arith.cmpi ne, %1, %c0_i32_0 : i32
    scf.if %2 {
      %cst_10 = arith.constant 0.000000e+00 : f32
      %12 = vector.broadcast %cst_10 : f32 to vector<64x128xf32>
      %c0_11 = arith.constant 0 : index
      %c0_12 = arith.constant 0 : index
      %13 = vector.load %arg7[%c0_11, %c0_12] : memref<64x128xf32, #tpu.memory_space<vmem>>, vector<64x128xf32>
      tpu.vector_store %arg7[%c0_11, %c0_12], %12 {strides = array<i32>} : memref<64x128xf32, #tpu.memory_space<vmem>>, vector<64x128xf32>,
    } else {
    }
    %c0 = arith.constant 0 : index
    %c0_1 = arith.constant 0 : index
    %3 = vector.load %arg7[%c0, %c0_1] : memref<64x128xf32, #tpu.memory_space<vmem>>, vector<64x128xf32>
    %c0_2 = arith.constant 0 : index
    %c0_3 = arith.constant 0 : index
    %4 = vector.load %arg3[%c0_2, %c0_3] : memref<64x32xbf16, #tpu.memory_space<vmem>>, vector<64x32xbf16>
    %c0_4 = arith.constant 0 : index
    %c0_5 = arith.constant 0 : index
    %5 = vector.load %arg4[%c0_4, %c0_5] : memref<32x128xbf16, #tpu.memory_space<vmem>>, vector<32x128xbf16>
    %cst = arith.constant dense<0.000000e+00> : vector<64x128xf32>
    %6 = tpu.matmul %4, %5, %cst {dimension_numbers = #tpu.dot_dimension_numbers<[1], [0], [0], [1], [0, 0, 1, 1], [], []>} : vector<64x32xbf16>, vector<32x128xbf16>, vector<64x128xf32> -> vector<64x128xf32>
    %7 = arith.addf %3, %6 : vector<64x128xf32>
    %c0_6 = arith.constant 0 : index
    %c0_7 = arith.constant 0 : index
    %8 = vector.load %arg7[%c0_6, %c0_7] : memref<64x128xf32, #tpu.memory_space<vmem>>, vector<64x128xf32>
    tpu.vector_store %arg7[%c0_6, %c0_7], %7 {strides = array<i32>} : memref<64x128xf32, #tpu.memory_space<vmem>>, vector<64x128xf32>,
    %c0_i32_8 = arith.constant 0 : i32
    %9 = arith.cmpi eq, %arg2, %c0_i32_8 : i32
    %10 = arith.extui %9 : i1 to i32
    %c0_i32_9 = arith.constant 0 : i32
    %11 = arith.cmpi ne, %10, %c0_i32_9 : i32
    scf.if %11 {
      %c0_10 = arith.constant 0 : index
      %c0_11 = arith.constant 0 : index
      %12 = vector.load %arg7[%c0_10, %c0_11] : memref<64x128xf32, #tpu.memory_space<vmem>>, vector<64x128xf32>
      %c0_12 = arith.constant 0 : index
      %c0_13 = arith.constant 0 : index
      %13 = vector.load %arg5[%c0_12, %c0_13] : memref<1x128xf32, #tpu.memory_space<vmem>>, vector<1x128xf32>
      %14 = vector.broadcast %13 : vector<1x128xf32> to vector<64x128xf32>
      %15 = arith.addf %12, %14 : vector<64x128xf32>
      %c0_14 = arith.constant 0 : index
      %c0_15 = arith.constant 0 : index
      %16 = vector.load %arg6[%c0_14, %c0_15] : memref<64x128xf32, #tpu.memory_space<vmem>>, vector<64x128xf32>
      tpu.vector_store %arg6[%c0_14, %c0_15], %15 {strides = array<i32>} : memref<64x128xf32, #tpu.memory_space<vmem>>, vector<64x128xf32>,
    } else {
    }
    return
  }
  func.func @transform_0(%arg0: i32, %arg1: i32, %arg2: i32) -> (i32, i32) {
    %c0_i32 = arith.constant 0 : i32
    return %arg0, %arg2 : i32, i32
  }
  func.func @transform_1(%arg0: i32, %arg1: i32, %arg2: i32) -> (i32, i32) {
    %c0_i32 = arith.constant 0 : i32
    return %arg2, %arg1 : i32, i32
  }
  func.func @transform_2(%arg0: i32, %arg1: i32, %arg2: i32) -> (i32, i32) {
    %c0_i32 = arith.constant 0 : i32
    %c0_i32_0 = arith.constant 0 : i32
    return %c0_i32, %arg1 : i32, i32
  }
  func.func @transform_3(%arg0: i32, %arg1: i32, %arg2: i32) -> (i32, i32) {
    %c0_i32 = arith.constant 0 : i32
    return %arg0, %arg1 : i32, i32
  }
}

module attributes {stable_mosaic.version = 11 : i64} {
  func.func @kernel(%arg0: i32, %arg1: i32, %arg2: i32, %arg3: memref<16x32xbf16, #tpu.memory_space<vmem>>, %arg4: memref<32x128xbf16, #tpu.memory_space<vmem>>, %arg5: memref<1x128xf32, #tpu.memory_space<vmem>>, %arg6: memref<16x128xf32, #tpu.memory_space<vmem>>, %arg7: memref<16x128xf32, #tpu.memory_space<vmem>>) attributes {dimension_semantics = [#tpu.dimension_semantics<parallel>, #tpu.dimension_semantics<parallel>, #tpu.dimension_semantics<arbitrary>], iteration_bounds = array<i64: 1, 1, 1>, scalar_prefetch = 0 : i64, scratch_operands = 1 : i64, tpu.core_type = #tpu.core_type<tc>, window_params = [{transform_indices = @transform_0, window_bounds = array<i64: 16, 32>}, {transform_indices = @transform_1, window_bounds = array<i64: 32, 128>}, {transform_indices = @transform_2, window_bounds = array<i64: 1, 128>}, {transform_indices = @transform_3, window_bounds = array<i64: 16, 128>}]} {
    %c0_i32 = arith.constant 0 : i32
    %0 = arith.cmpi eq, %arg2, %c0_i32 : i32
    %1 = arith.extui %0 : i1 to i32
    %c0_i32_0 = arith.constant 0 : i32
    %2 = arith.cmpi ne, %1, %c0_i32_0 : i32
    scf.if %2 {
      %cst_10 = arith.constant 0.000000e+00 : f32
      %12 = vector.broadcast %cst_10 : f32 to vector<16x128xf32>
      %c0_11 = arith.constant 0 : index
      %c0_12 = arith.constant 0 : index
      %13 = vector.load %arg7[%c0_11, %c0_12] : memref<16x128xf32, #tpu.memory_space<vmem>>, vector<16x128xf32>
      tpu.vector_store %arg7[%c0_11, %c0_12], %12 {strides = array<i32>} : memref<16x128xf32, #tpu.memory_space<vmem>>, vector<16x128xf32>,
    } else {
    }
    %c0 = arith.constant 0 : index
    %c0_1 = arith.constant 0 : index
    %3 = vector.load %arg7[%c0, %c0_1] : memref<16x128xf32, #tpu.memory_space<vmem>>, vector<16x128xf32>
    %c0_2 = arith.constant 0 : index
    %c0_3 = arith.constant 0 : index
    %4 = vector.load %arg3[%c0_2, %c0_3] : memref<16x32xbf16, #tpu.memory_space<vmem>>, vector<16x32xbf16>
    %c0_4 = arith.constant 0 : index
    %c0_5 = arith.constant 0 : index
    %5 = vector.load %arg4[%c0_4, %c0_5] : memref<32x128xbf16, #tpu.memory_space<vmem>>, vector<32x128xbf16>
    %cst = arith.constant dense<0.000000e+00> : vector<16x128xf32>
    %6 = tpu.matmul %4, %5, %cst {dimension_numbers = #tpu.dot_dimension_numbers<[1], [0], [0], [1], [0, 0, 1, 1], [], []>} : vector<16x32xbf16>, vector<32x128xbf16>, vector<16x128xf32> -> vector<16x128xf32>
    %7 = arith.addf %3, %6 : vector<16x128xf32>
    %c0_6 = arith.constant 0 : index
    %c0_7 = arith.constant 0 : index
    %8 = vector.load %arg7[%c0_6, %c0_7] : memref<16x128xf32, #tpu.memory_space<vmem>>, vector<16x128xf32>
    tpu.vector_store %arg7[%c0_6, %c0_7], %7 {strides = array<i32>} : memref<16x128xf32, #tpu.memory_space<vmem>>, vector<16x128xf32>,
    %c0_i32_8 = arith.constant 0 : i32
    %9 = arith.cmpi eq, %arg2, %c0_i32_8 : i32
    %10 = arith.extui %9 : i1 to i32
    %c0_i32_9 = arith.constant 0 : i32
    %11 = arith.cmpi ne, %10, %c0_i32_9 : i32
    scf.if %11 {
      %c0_10 = arith.constant 0 : index
      %c0_11 = arith.constant 0 : index
      %12 = vector.load %arg7[%c0_10, %c0_11] : memref<16x128xf32, #tpu.memory_space<vmem>>, vector<16x128xf32>
      %c0_12 = arith.constant 0 : index
      %c0_13 = arith.constant 0 : index
      %13 = vector.load %arg5[%c0_12, %c0_13] : memref<1x128xf32, #tpu.memory_space<vmem>>, vector<1x128xf32>
      %14 = vector.broadcast %13 : vector<1x128xf32> to vector<16x128xf32>
      %15 = arith.addf %12, %14 : vector<16x128xf32>
      %c0_14 = arith.constant 0 : index
      %c0_15 = arith.constant 0 : index
      %16 = vector.load %arg6[%c0_14, %c0_15] : memref<16x128xf32, #tpu.memory_space<vmem>>, vector<16x128xf32>
      tpu.vector_store %arg6[%c0_14, %c0_15], %15 {strides = array<i32>} : memref<16x128xf32, #tpu.memory_space<vmem>>, vector<16x128xf32>,
    } else {
    }
    return
  }
  func.func @transform_0(%arg0: i32, %arg1: i32, %arg2: i32) -> (i32, i32) {
    %c0_i32 = arith.constant 0 : i32
    return %arg0, %arg2 : i32, i32
  }
  func.func @transform_1(%arg0: i32, %arg1: i32, %arg2: i32) -> (i32, i32) {
    %c0_i32 = arith.constant 0 : i32
    return %arg2, %arg1 : i32, i32
  }
  func.func @transform_2(%arg0: i32, %arg1: i32, %arg2: i32) -> (i32, i32) {
    %c0_i32 = arith.constant 0 : i32
    %c0_i32_0 = arith.constant 0 : i32
    return %c0_i32, %arg1 : i32, i32
  }
  func.func @transform_3(%arg0: i32, %arg1: i32, %arg2: i32) -> (i32, i32) {
    %c0_i32 = arith.constant 0 : i32
    return %arg0, %arg1 : i32, i32
  }
}

module attributes {stable_mosaic.version = 11 : i64} {
  func.func @kernel(%arg0: i32, %arg1: i32, %arg2: i32, %arg3: memref<8x32xbf16, #tpu.memory_space<vmem>>, %arg4: memref<32x128xbf16, #tpu.memory_space<vmem>>, %arg5: memref<1x128xf32, #tpu.memory_space<vmem>>, %arg6: memref<8x128xf32, #tpu.memory_space<vmem>>, %arg7: memref<8x128xf32, #tpu.memory_space<vmem>>) attributes {dimension_semantics = [#tpu.dimension_semantics<parallel>, #tpu.dimension_semantics<parallel>, #tpu.dimension_semantics<arbitrary>], iteration_bounds = array<i64: 1, 1, 1>, scalar_prefetch = 0 : i64, scratch_operands = 1 : i64, tpu.core_type = #tpu.core_type<tc>, window_params = [{transform_indices = @transform_0, window_bounds = array<i64: 8, 32>}, {transform_indices = @transform_1, window_bounds = array<i64: 32, 128>}, {transform_indices = @transform_2, window_bounds = array<i64: 1, 128>}, {transform_indices = @transform_3, window_bounds = array<i64: 8, 128>}]} {
    %c0_i32 = arith.constant 0 : i32
    %0 = arith.cmpi eq, %arg2, %c0_i32 : i32
    %1 = arith.extui %0 : i1 to i32
    %c0_i32_0 = arith.constant 0 : i32
    %2 = arith.cmpi ne, %1, %c0_i32_0 : i32
    scf.if %2 {
      %cst_10 = arith.constant 0.000000e+00 : f32
      %12 = vector.broadcast %cst_10 : f32 to vector<8x128xf32>
      %c0_11 = arith.constant 0 : index
      %c0_12 = arith.constant 0 : index
      %13 = vector.load %arg7[%c0_11, %c0_12] : memref<8x128xf32, #tpu.memory_space<vmem>>, vector<8x128xf32>
      tpu.vector_store %arg7[%c0_11, %c0_12], %12 {strides = array<i32>} : memref<8x128xf32, #tpu.memory_space<vmem>>, vector<8x128xf32>,
    } else {
    }
    %c0 = arith.constant 0 : index
    %c0_1 = arith.constant 0 : index
    %3 = vector.load %arg7[%c0, %c0_1] : memref<8x128xf32, #tpu.memory_space<vmem>>, vector<8x128xf32>
    %c0_2 = arith.constant 0 : index
    %c0_3 = arith.constant 0 : index
    %4 = vector.load %arg3[%c0_2, %c0_3] : memref<8x32xbf16, #tpu.memory_space<vmem>>, vector<8x32xbf16>
    %c0_4 = arith.constant 0 : index
    %c0_5 = arith.constant 0 : index
    %5 = vector.load %arg4[%c0_4, %c0_5] : memref<32x128xbf16, #tpu.memory_space<vmem>>, vector<32x128xbf16>
    %cst = arith.constant dense<0.000000e+00> : vector<8x128xf32>
    %6 = tpu.matmul %4, %5, %cst {dimension_numbers = #tpu.dot_dimension_numbers<[1], [0], [0], [1], [0, 0, 1, 1], [], []>} : vector<8x32xbf16>, vector<32x128xbf16>, vector<8x128xf32> -> vector<8x128xf32>
    %7 = arith.addf %3, %6 : vector<8x128xf32>
    %c0_6 = arith.constant 0 : index
    %c0_7 = arith.constant 0 : index
    %8 = vector.load %arg7[%c0_6, %c0_7] : memref<8x128xf32, #tpu.memory_space<vmem>>, vector<8x128xf32>
    tpu.vector_store %arg7[%c0_6, %c0_7], %7 {strides = array<i32>} : memref<8x128xf32, #tpu.memory_space<vmem>>, vector<8x128xf32>,
    %c0_i32_8 = arith.constant 0 : i32
    %9 = arith.cmpi eq, %arg2, %c0_i32_8 : i32
    %10 = arith.extui %9 : i1 to i32
    %c0_i32_9 = arith.constant 0 : i32
    %11 = arith.cmpi ne, %10, %c0_i32_9 : i32
    scf.if %11 {
      %c0_10 = arith.constant 0 : index
      %c0_11 = arith.constant 0 : index
      %12 = vector.load %arg7[%c0_10, %c0_11] : memref<8x128xf32, #tpu.memory_space<vmem>>, vector<8x128xf32>
      %c0_12 = arith.constant 0 : index
      %c0_13 = arith.constant 0 : index
      %13 = vector.load %arg5[%c0_12, %c0_13] : memref<1x128xf32, #tpu.memory_space<vmem>>, vector<1x128xf32>
      %14 = vector.broadcast %13 : vector<1x128xf32> to vector<8x128xf32>
      %15 = arith.addf %12, %14 : vector<8x128xf32>
      %c0_14 = arith.constant 0 : index
      %c0_15 = arith.constant 0 : index
      %16 = vector.load %arg6[%c0_14, %c0_15] : memref<8x128xf32, #tpu.memory_space<vmem>>, vector<8x128xf32>
      tpu.vector_store %arg6[%c0_14, %c0_15], %15 {strides = array<i32>} : memref<8x128xf32, #tpu.memory_space<vmem>>, vector<8x128xf32>,
    } else {
    }
    return
  }
  func.func @transform_0(%arg0: i32, %arg1: i32, %arg2: i32) -> (i32, i32) {
    %c0_i32 = arith.constant 0 : i32
    return %arg0, %arg2 : i32, i32
  }
  func.func @transform_1(%arg0: i32, %arg1: i32, %arg2: i32) -> (i32, i32) {
    %c0_i32 = arith.constant 0 : i32
    return %arg2, %arg1 : i32, i32
  }
  func.func @transform_2(%arg0: i32, %arg1: i32, %arg2: i32) -> (i32, i32) {
    %c0_i32 = arith.constant 0 : i32
    %c0_i32_0 = arith.constant 0 : i32
    return %c0_i32, %arg1 : i32, i32
  }
  func.func @transform_3(%arg0: i32, %arg1: i32, %arg2: i32) -> (i32, i32) {
    %c0_i32 = arith.constant 0 : i32
    return %arg0, %arg1 : i32, i32
  }
}

module attributes {stable_mosaic.version = 11 : i64} {
  func.func @kernel(%arg0: memref<2x8x32xf32, #tpu.memory_space<vmem>>, %arg1: memref<2x8x32xf32, #tpu.memory_space<vmem>>, %arg2: memref<6x2x10xf32, #tpu.memory_space<vmem>>, %arg3: memref<32x32xf32, #tpu.memory_space<vmem>>, %arg4: memref<1x32xf32, #tpu.memory_space<vmem>>, %arg5: memref<1x32xf32, #tpu.memory_space<vmem>>, %arg6: memref<32x128xf32, #tpu.memory_space<vmem>>, %arg7: memref<10x128xf32, #tpu.memory_space<vmem>>, %arg8: memref<32x128xf32, #tpu.memory_space<vmem>>, %arg9: memref<1x128xf32, #tpu.memory_space<vmem>>, %arg10: memref<6x2x32xf32, #tpu.memory_space<vmem>>) attributes {dimension_semantics = [], scalar_prefetch = 0 : i64, scratch_operands = 0 : i64, tpu.core_type = #tpu.core_type<tc>} {
    %c0 = arith.constant 0 : index
    %c0_0 = arith.constant 0 : index
    %c0_1 = arith.constant 0 : index
    %0 = vector.load %arg0[%c0, %c0_0, %c0_1] : memref<2x8x32xf32, #tpu.memory_space<vmem>>, vector<2x8x32xf32>
    %c0_2 = arith.constant 0 : index
    %c0_3 = arith.constant 0 : index
    %c0_4 = arith.constant 0 : index
    %1 = vector.load %arg1[%c0_2, %c0_3, %c0_4] : memref<2x8x32xf32, #tpu.memory_space<vmem>>, vector<2x8x32xf32>
    %c0_5 = arith.constant 0 : index
    %c0_6 = arith.constant 0 : index
    %2 = vector.load %arg3[%c0_5, %c0_6] : memref<32x32xf32, #tpu.memory_space<vmem>>, vector<32x32xf32>
    %c0_7 = arith.constant 0 : index
    %c0_8 = arith.constant 0 : index
    %3 = vector.load %arg4[%c0_7, %c0_8] : memref<1x32xf32, #tpu.memory_space<vmem>>, vector<1x32xf32>
    %c0_9 = arith.constant 0 : index
    %c0_10 = arith.constant 0 : index
    %4 = vector.load %arg6[%c0_9, %c0_10] : memref<32x128xf32, #tpu.memory_space<vmem>>, vector<32x128xf32>
    %c0_11 = arith.constant 0 : index
    %c0_12 = arith.constant 0 : index
    %5 = vector.load %arg7[%c0_11, %c0_12] : memref<10x128xf32, #tpu.memory_space<vmem>>, vector<10x128xf32>
    %c0_13 = arith.constant 0 : index
    %c0_14 = arith.constant 0 : index
    %6 = vector.load %arg8[%c0_13, %c0_14] : memref<32x128xf32, #tpu.memory_space<vmem>>, vector<32x128xf32>
    %c0_15 = arith.constant 0 : index
    %c0_16 = arith.constant 0 : index
    %7 = vector.load %arg9[%c0_15, %c0_16] : memref<1x128xf32, #tpu.memory_space<vmem>>, vector<1x128xf32>
    %c0_17 = arith.constant 0 : index
    %c0_18 = arith.constant 0 : index
    %8 = vector.load %arg5[%c0_17, %c0_18] : memref<1x32xf32, #tpu.memory_space<vmem>>, vector<1x32xf32>
    %9 = vector.shape_cast %8 : vector<1x32xf32> to vector<1x1x32xf32>
    %10 = vector.shape_cast %9 : vector<1x1x32xf32> to vector<1x1x32xf32>
    %11 = vector.broadcast %10 : vector<1x1x32xf32> to vector<2x8x32xf32>
    %cst = arith.constant 0.000000e+00 : f32
    %12 = vector.broadcast %cst : f32 to vector<2x32xf32>
    %cst_19 = arith.constant 0.000000e+00 : f32
    %13 = vector.broadcast %cst_19 : f32 to vector<2x32xf32>
    %c0_i32 = arith.constant 0 : i32
    %cst_20 = arith.constant dense<0.000000e+00> : vector<2x32xf32>
    %14 = tpu.matmul %12, %2, %cst_20 {dimension_numbers = #tpu.dot_dimension_numbers<[1], [0], [0], [1], [0, 0, 1, 1], [], []>} : vector<2x32xf32>, vector<32x32xf32>, vector<2x32xf32> -> vector<2x32xf32>
    %15 = vector.broadcast %3 : vector<1x32xf32> to vector<2x32xf32>
    %16 = arith.addf %14, %15 : vector<2x32xf32>
    %17 = vector.shape_cast %16 : vector<2x32xf32> to vector<2x1x32xf32>
    %18 = vector.broadcast %17 : vector<2x1x32xf32> to vector<2x8x32xf32>
    %19 = arith.addf %1, %18 : vector<2x8x32xf32>
    %20 = math.tanh %19 : vector<2x8x32xf32>
    %21 = arith.mulf %20, %11 : vector<2x8x32xf32>
    %cst_21 = arith.constant dense<0.000000e+00> : vector<2x8xf32>
    %22 = vector.multi_reduction <add>, %21, %cst_21 [2] : vector<2x8x32xf32> to vector<2x8xf32>
    %cst_22 = arith.constant dense<0xFF800000> : vector<2xf32>
    %23 = vector.multi_reduction <maximumf>, %22, %cst_22 [1] : vector<2x8xf32> to vector<2xf32>
    %24 = vector.shape_cast %23 : vector<2xf32> to vector<2x1xf32>
    %25 = vector.broadcast %24 : vector<2x1xf32> to vector<2x8xf32>
    %26 = arith.subf %22, %25 : vector<2x8xf32>
    %27 = math.exp %26 : vector<2x8xf32>
    %cst_23 = arith.constant dense<0.000000e+00> : vector<2xf32>
    %28 = vector.multi_reduction <add>, %27, %cst_23 [1] : vector<2x8xf32> to vector<2xf32>
    %29 = vector.shape_cast %28 : vector<2xf32> to vector<2x1xf32>
    %30 = tpu.reciprocal %29 {approx = true} : vector<2x1xf32> -> vector<2x1xf32>
    %31 = vector.broadcast %30 : vector<2x1xf32> to vector<2x8xf32>
    %32 = arith.mulf %27, %31 : vector<2x8xf32>
    %33 = vector.shape_cast %32 : vector<2x8xf32> to vector<2x8x1xf32>
    %34 = vector.broadcast %33 : vector<2x8x1xf32> to vector<2x8x32xf32>
    %35 = arith.mulf %34, %0 : vector<2x8x32xf32>
    %cst_24 = arith.constant dense<0.000000e+00> : vector<2x32xf32>
    %36 = vector.multi_reduction <add>, %35, %cst_24 [1] : vector<2x8x32xf32> to vector<2x32xf32>
    %37 = arith.index_cast %c0_i32 : i32 to index
    %c0_25 = arith.constant 0 : index
    %c0_26 = arith.constant 0 : index
    %38 = vector.load %arg2[%37, %c0_25, %c0_26] : memref<6x2x10xf32, #tpu.memory_space<vmem>>, vector<1x2x10xf32>
    %39 = vector.shape_cast %38 : vector<1x2x10xf32> to vector<2x10xf32>
    %cst_27 = arith.constant dense<0.000000e+00> : vector<2x128xf32>
    %40 = tpu.matmul %36, %4, %cst_27 {dimension_numbers = #tpu.dot_dimension_numbers<[1], [0], [0], [1], [0, 0, 1, 1], [], []>} : vector<2x32xf32>, vector<32x128xf32>, vector<2x128xf32> -> vector<2x128xf32>
    %cst_28 = arith.constant dense<0.000000e+00> : vector<2x128xf32>
    %41 = tpu.matmul %39, %5, %cst_28 {dimension_numbers = #tpu.dot_dimension_numbers<[1], [0], [0], [1], [0, 0, 1, 1], [], []>} : vector<2x10xf32>, vector<10x128xf32>, vector<2x128xf32> -> vector<2x128xf32>
    %42 = arith.addf %40, %41 : vector<2x128xf32>
    %cst_29 = arith.constant dense<0.000000e+00> : vector<2x128xf32>
    %43 = tpu.matmul %12, %6, %cst_29 {dimension_numbers = #tpu.dot_dimension_numbers<[1], [0], [0], [1], [0, 0, 1, 1], [], []>} : vector<2x32xf32>, vector<32x128xf32>, vector<2x128xf32> -> vector<2x128xf32>
    %44 = arith.addf %42, %43 : vector<2x128xf32>
    %45 = vector.broadcast %7 : vector<1x128xf32> to vector<2x128xf32>
    %46 = arith.addf %44, %45 : vector<2x128xf32>
    %47 = vector.extract_strided_slice %46 {offsets = [0, 0], sizes = [2, 32], strides = [1, 1]} : vector<2x128xf32> to vector<2x32xf32>
    %48 = arith.negf %47 : vector<2x32xf32>
    %49 = math.exp %48 : vector<2x32xf32>
    %cst_30 = arith.constant 1.000000e+00 : f32
    %50 = vector.broadcast %cst_30 : f32 to vector<2x32xf32>
    %51 = arith.addf %50, %49 : vector<2x32xf32>
    %52 = arith.divf %50, %51 : vector<2x32xf32>
    %53 = vector.extract_strided_slice %46 {offsets = [0, 32], sizes = [2, 32], strides = [1, 1]} : vector<2x128xf32> to vector<2x32xf32>
    %54 = arith.negf %53 : vector<2x32xf32>
    %55 = math.exp %54 : vector<2x32xf32>
    %cst_31 = arith.constant 1.000000e+00 : f32
    %56 = vector.broadcast %cst_31 : f32 to vector<2x32xf32>
    %57 = arith.addf %56, %55 : vector<2x32xf32>
    %58 = arith.divf %56, %57 : vector<2x32xf32>
    %59 = vector.extract_strided_slice %46 {offsets = [0, 64], sizes = [2, 32], strides = [1, 1]} : vector<2x128xf32> to vector<2x32xf32>
    %60 = math.tanh %59 : vector<2x32xf32>
    %61 = vector.extract_strided_slice %46 {offsets = [0, 96], sizes = [2, 32], strides = [1, 1]} : vector<2x128xf32> to vector<2x32xf32>
    %62 = arith.negf %61 : vector<2x32xf32>
    %63 = math.exp %62 : vector<2x32xf32>
    %cst_32 = arith.constant 1.000000e+00 : f32
    %64 = vector.broadcast %cst_32 : f32 to vector<2x32xf32>
    %65 = arith.addf %64, %63 : vector<2x32xf32>
    %66 = arith.divf %64, %65 : vector<2x32xf32>
    %67 = arith.mulf %58, %13 : vector<2x32xf32>
    %68 = arith.mulf %52, %60 : vector<2x32xf32>
    %69 = arith.addf %67, %68 : vector<2x32xf32>
    %70 = math.tanh %69 : vector<2x32xf32>
    %71 = arith.mulf %66, %70 : vector<2x32xf32>
    %72 = arith.index_cast %c0_i32 : i32 to index
    %c0_33 = arith.constant 0 : index
    %c0_34 = arith.constant 0 : index
    %73 = vector.load %arg10[%72, %c0_33, %c0_34] : memref<6x2x32xf32, #tpu.memory_space<vmem>>, vector<1x2x32xf32>
    %74 = vector.shape_cast %73 : vector<1x2x32xf32> to vector<2x32xf32>
    %75 = vector.shape_cast %71 : vector<2x32xf32> to vector<1x2x32xf32>
    tpu.vector_store %arg10[%72, %c0_33, %c0_34], %75 {strides = array<i32>} : memref<6x2x32xf32, #tpu.memory_space<vmem>>, vector<1x2x32xf32>,
    %c1_i32 = arith.constant 1 : i32
    %cst_35 = arith.constant dense<0.000000e+00> : vector<2x32xf32>
    %76 = tpu.matmul %71, %2, %cst_35 {dimension_numbers = #tpu.dot_dimension_numbers<[1], [0], [0], [1], [0, 0, 1, 1], [], []>} : vector<2x32xf32>, vector<32x32xf32>, vector<2x32xf32> -> vector<2x32xf32>
    %77 = vector.broadcast %3 : vector<1x32xf32> to vector<2x32xf32>
    %78 = arith.addf %76, %77 : vector<2x32xf32>
    %79 = vector.shape_cast %78 : vector<2x32xf32> to vector<2x1x32xf32>
    %80 = vector.broadcast %79 : vector<2x1x32xf32> to vector<2x8x32xf32>
    %81 = arith.addf %1, %80 : vector<2x8x32xf32>
    %82 = math.tanh %81 : vector<2x8x32xf32>
    %83 = arith.mulf %82, %11 : vector<2x8x32xf32>
    %cst_36 = arith.constant dense<0.000000e+00> : vector<2x8xf32>
    %84 = vector.multi_reduction <add>, %83, %cst_36 [2] : vector<2x8x32xf32> to vector<2x8xf32>
    %cst_37 = arith.constant dense<0xFF800000> : vector<2xf32>
    %85 = vector.multi_reduction <maximumf>, %84, %cst_37 [1] : vector<2x8xf32> to vector<2xf32>
    %86 = vector.shape_cast %85 : vector<2xf32> to vector<2x1xf32>
    %87 = vector.broadcast %86 : vector<2x1xf32> to vector<2x8xf32>
    %88 = arith.subf %84, %87 : vector<2x8xf32>
    %89 = math.exp %88 : vector<2x8xf32>
    %cst_38 = arith.constant dense<0.000000e+00> : vector<2xf32>
    %90 = vector.multi_reduction <add>, %89, %cst_38 [1] : vector<2x8xf32> to vector<2xf32>
    %91 = vector.shape_cast %90 : vector<2xf32> to vector<2x1xf32>
    %92 = tpu.reciprocal %91 {approx = true} : vector<2x1xf32> -> vector<2x1xf32>
    %93 = vector.broadcast %92 : vector<2x1xf32> to vector<2x8xf32>
    %94 = arith.mulf %89, %93 : vector<2x8xf32>
    %95 = vector.shape_cast %94 : vector<2x8xf32> to vector<2x8x1xf32>
    %96 = vector.broadcast %95 : vector<2x8x1xf32> to vector<2x8x32xf32>
    %97 = arith.mulf %96, %0 : vector<2x8x32xf32>
    %cst_39 = arith.constant dense<0.000000e+00> : vector<2x32xf32>
    %98 = vector.multi_reduction <add>, %97, %cst_39 [1] : vector<2x8x32xf32> to vector<2x32xf32>
    %99 = arith.index_cast %c1_i32 : i32 to index
    %c0_40 = arith.constant 0 : index
    %c0_41 = arith.constant 0 : index
    %100 = vector.load %arg2[%99, %c0_40, %c0_41] : memref<6x2x10xf32, #tpu.memory_space<vmem>>, vector<1x2x10xf32>
    %101 = vector.shape_cast %100 : vector<1x2x10xf32> to vector<2x10xf32>
    %cst_42 = arith.constant dense<0.000000e+00> : vector<2x128xf32>
    %102 = tpu.matmul %98, %4, %cst_42 {dimension_numbers = #tpu.dot_dimension_numbers<[1], [0], [0], [1], [0, 0, 1, 1], [], []>} : vector<2x32xf32>, vector<32x128xf32>, vector<2x128xf32> -> vector<2x128xf32>
    %cst_43 = arith.constant dense<0.000000e+00> : vector<2x128xf32>
    %103 = tpu.matmul %101, %5, %cst_43 {dimension_numbers = #tpu.dot_dimension_numbers<[1], [0], [0], [1], [0, 0, 1, 1], [], []>} : vector<2x10xf32>, vector<10x128xf32>, vector<2x128xf32> -> vector<2x128xf32>
    %104 = arith.addf %102, %103 : vector<2x128xf32>
    %cst_44 = arith.constant dense<0.000000e+00> : vector<2x128xf32>
    %105 = tpu.matmul %71, %6, %cst_44 {dimension_numbers = #tpu.dot_dimension_numbers<[1], [0], [0], [1], [0, 0, 1, 1], [], []>} : vector<2x32xf32>, vector<32x128xf32>, vector<2x128xf32> -> vector<2x128xf32>
    %106 = arith.addf %104, %105 : vector<2x128xf32>
    %107 = vector.broadcast %7 : vector<1x128xf32> to vector<2x128xf32>
    %108 = arith.addf %106, %107 : vector<2x128xf32>
    %109 = vector.extract_strided_slice %108 {offsets = [0, 0], sizes = [2, 32], strides = [1, 1]} : vector<2x128xf32> to vector<2x32xf32>
    %110 = arith.negf %109 : vector<2x32xf32>
    %111 = math.exp %110 : vector<2x32xf32>
    %cst_45 = arith.constant 1.000000e+00 : f32
    %112 = vector.broadcast %cst_45 : f32 to vector<2x32xf32>
    %113 = arith.addf %112, %111 : vector<2x32xf32>
    %114 = arith.divf %112, %113 : vector<2x32xf32>
    %115 = vector.extract_strided_slice %108 {offsets = [0, 32], sizes = [2, 32], strides = [1, 1]} : vector<2x128xf32> to vector<2x32xf32>
    %116 = arith.negf %115 : vector<2x32xf32>
    %117 = math.exp %116 : vector<2x32xf32>
    %cst_46 = arith.constant 1.000000e+00 : f32
    %118 = vector.broadcast %cst_46 : f32 to vector<2x32xf32>
    %119 = arith.addf %118, %117 : vector<2x32xf32>
    %120 = arith.divf %118, %119 : vector<2x32xf32>
    %121 = vector.extract_strided_slice %108 {offsets = [0, 64], sizes = [2, 32], strides = [1, 1]} : vector<2x128xf32> to vector<2x32xf32>
    %122 = math.tanh %121 : vector<2x32xf32>
    %123 = vector.extract_strided_slice %108 {offsets = [0, 96], sizes = [2, 32], strides = [1, 1]} : vector<2x128xf32> to vector<2x32xf32>
    %124 = arith.negf %123 : vector<2x32xf32>
    %125 = math.exp %124 : vector<2x32xf32>
    %cst_47 = arith.constant 1.000000e+00 : f32
    %126 = vector.broadcast %cst_47 : f32 to vector<2x32xf32>
    %127 = arith.addf %126, %125 : vector<2x32xf32>
    %128 = arith.divf %126, %127 : vector<2x32xf32>
    %129 = arith.mulf %120, %69 : vector<2x32xf32>
    %130 = arith.mulf %114, %122 : vector<2x32xf32>
    %131 = arith.addf %129, %130 : vector<2x32xf32>
    %132 = math.tanh %131 : vector<2x32xf32>
    %133 = arith.mulf %128, %132 : vector<2x32xf32>
    %134 = arith.index_cast %c1_i32 : i32 to index
    %c0_48 = arith.constant 0 : index
    %c0_49 = arith.constant 0 : index
    %135 = vector.load %arg10[%134, %c0_48, %c0_49] : memref<6x2x32xf32, #tpu.memory_space<vmem>>, vector<1x2x32xf32>
    %136 = vector.shape_cast %135 : vector<1x2x32xf32> to vector<2x32xf32>
    %137 = vector.shape_cast %133 : vector<2x32xf32> to vector<1x2x32xf32>
    tpu.vector_store %arg10[%134, %c0_48, %c0_49], %137 {strides = array<i32>} : memref<6x2x32xf32, #tpu.memory_space<vmem>>, vector<1x2x32xf32>,
    %c2_i32 = arith.constant 2 : i32
    %cst_50 = arith.constant dense<0.000000e+00> : vector<2x32xf32>
    %138 = tpu.matmul %133, %2, %cst_50 {dimension_numbers = #tpu.dot_dimension_numbers<[1], [0], [0], [1], [0, 0, 1, 1], [], []>} : vector<2x32xf32>, vector<32x32xf32>, vector<2x32xf32> -> vector<2x32xf32>
    %139 = vector.broadcast %3 : vector<1x32xf32> to vector<2x32xf32>
    %140 = arith.addf %138, %139 : vector<2x32xf32>
    %141 = vector.shape_cast %140 : vector<2x32xf32> to vector<2x1x32xf32>
    %142 = vector.broadcast %141 : vector<2x1x32xf32> to vector<2x8x32xf32>
    %143 = arith.addf %1, %142 : vector<2x8x32xf32>
    %144 = math.tanh %143 : vector<2x8x32xf32>
    %145 = arith.mulf %144, %11 : vector<2x8x32xf32>
    %cst_51 = arith.constant dense<0.000000e+00> : vector<2x8xf32>
    %146 = vector.multi_reduction <add>, %145, %cst_51 [2] : vector<2x8x32xf32> to vector<2x8xf32>
    %cst_52 = arith.constant dense<0xFF800000> : vector<2xf32>
    %147 = vector.multi_reduction <maximumf>, %146, %cst_52 [1] : vector<2x8xf32> to vector<2xf32>
    %148 = vector.shape_cast %147 : vector<2xf32> to vector<2x1xf32>
    %149 = vector.broadcast %148 : vector<2x1xf32> to vector<2x8xf32>
    %150 = arith.subf %146, %149 : vector<2x8xf32>
    %151 = math.exp %150 : vector<2x8xf32>
    %cst_53 = arith.constant dense<0.000000e+00> : vector<2xf32>
    %152 = vector.multi_reduction <add>, %151, %cst_53 [1] : vector<2x8xf32> to vector<2xf32>
    %153 = vector.shape_cast %152 : vector<2xf32> to vector<2x1xf32>
    %154 = tpu.reciprocal %153 {approx = true} : vector<2x1xf32> -> vector<2x1xf32>
    %155 = vector.broadcast %154 : vector<2x1xf32> to vector<2x8xf32>
    %156 = arith.mulf %151, %155 : vector<2x8xf32>
    %157 = vector.shape_cast %156 : vector<2x8xf32> to vector<2x8x1xf32>
    %158 = vector.broadcast %157 : vector<2x8x1xf32> to vector<2x8x32xf32>
    %159 = arith.mulf %158, %0 : vector<2x8x32xf32>
    %cst_54 = arith.constant dense<0.000000e+00> : vector<2x32xf32>
    %160 = vector.multi_reduction <add>, %159, %cst_54 [1] : vector<2x8x32xf32> to vector<2x32xf32>
    %161 = arith.index_cast %c2_i32 : i32 to index
    %c0_55 = arith.constant 0 : index
    %c0_56 = arith.constant 0 : index
    %162 = vector.load %arg2[%161, %c0_55, %c0_56] : memref<6x2x10xf32, #tpu.memory_space<vmem>>, vector<1x2x10xf32>
    %163 = vector.shape_cast %162 : vector<1x2x10xf32> to vector<2x10xf32>
    %cst_57 = arith.constant dense<0.000000e+00> : vector<2x128xf32>
    %164 = tpu.matmul %160, %4, %cst_57 {dimension_numbers = #tpu.dot_dimension_numbers<[1], [0], [0], [1], [0, 0, 1, 1], [], []>} : vector<2x32xf32>, vector<32x128xf32>, vector<2x128xf32> -> vector<2x128xf32>
    %cst_58 = arith.constant dense<0.000000e+00> : vector<2x128xf32>
    %165 = tpu.matmul %163, %5, %cst_58 {dimension_numbers = #tpu.dot_dimension_numbers<[1], [0], [0], [1], [0, 0, 1, 1], [], []>} : vector<2x10xf32>, vector<10x128xf32>, vector<2x128xf32> -> vector<2x128xf32>
    %166 = arith.addf %164, %165 : vector<2x128xf32>
    %cst_59 = arith.constant dense<0.000000e+00> : vector<2x128xf32>
    %167 = tpu.matmul %133, %6, %cst_59 {dimension_numbers = #tpu.dot_dimension_numbers<[1], [0], [0], [1], [0, 0, 1, 1], [], []>} : vector<2x32xf32>, vector<32x128xf32>, vector<2x128xf32> -> vector<2x128xf32>
    %168 = arith.addf %166, %167 : vector<2x128xf32>
    %169 = vector.broadcast %7 : vector<1x128xf32> to vector<2x128xf32>
    %170 = arith.addf %168, %169 : vector<2x128xf32>
    %171 = vector.extract_strided_slice %170 {offsets = [0, 0], sizes = [2, 32], strides = [1, 1]} : vector<2x128xf32> to vector<2x32xf32>
    %172 = arith.negf %171 : vector<2x32xf32>
    %173 = math.exp %172 : vector<2x32xf32>
    %cst_60 = arith.constant 1.000000e+00 : f32
    %174 = vector.broadcast %cst_60 : f32 to vector<2x32xf32>
    %175 = arith.addf %174, %173 : vector<2x32xf32>
    %176 = arith.divf %174, %175 : vector<2x32xf32>
    %177 = vector.extract_strided_slice %170 {offsets = [0, 32], sizes = [2, 32], strides = [1, 1]} : vector<2x128xf32> to vector<2x32xf32>
    %178 = arith.negf %177 : vector<2x32xf32>
    %179 = math.exp %178 : vector<2x32xf32>
    %cst_61 = arith.constant 1.000000e+00 : f32
    %180 = vector.broadcast %cst_61 : f32 to vector<2x32xf32>
    %181 = arith.addf %180, %179 : vector<2x32xf32>
    %182 = arith.divf %180, %181 : vector<2x32xf32>
    %183 = vector.extract_strided_slice %170 {offsets = [0, 64], sizes = [2, 32], strides = [1, 1]} : vector<2x128xf32> to vector<2x32xf32>
    %184 = math.tanh %183 : vector<2x32xf32>
    %185 = vector.extract_strided_slice %170 {offsets = [0, 96], sizes = [2, 32], strides = [1, 1]} : vector<2x128xf32> to vector<2x32xf32>
    %186 = arith.negf %185 : vector<2x32xf32>
    %187 = math.exp %186 : vector<2x32xf32>
    %cst_62 = arith.constant 1.000000e+00 : f32
    %188 = vector.broadcast %cst_62 : f32 to vector<2x32xf32>
    %189 = arith.addf %188, %187 : vector<2x32xf32>
    %190 = arith.divf %188, %189 : vector<2x32xf32>
    %191 = arith.mulf %182, %131 : vector<2x32xf32>
    %192 = arith.mulf %176, %184 : vector<2x32xf32>
    %193 = arith.addf %191, %192 : vector<2x32xf32>
    %194 = math.tanh %193 : vector<2x32xf32>
    %195 = arith.mulf %190, %194 : vector<2x32xf32>
    %196 = arith.index_cast %c2_i32 : i32 to index
    %c0_63 = arith.constant 0 : index
    %c0_64 = arith.constant 0 : index
    %197 = vector.load %arg10[%196, %c0_63, %c0_64] : memref<6x2x32xf32, #tpu.memory_space<vmem>>, vector<1x2x32xf32>
    %198 = vector.shape_cast %197 : vector<1x2x32xf32> to vector<2x32xf32>
    %199 = vector.shape_cast %195 : vector<2x32xf32> to vector<1x2x32xf32>
    tpu.vector_store %arg10[%196, %c0_63, %c0_64], %199 {strides = array<i32>} : memref<6x2x32xf32, #tpu.memory_space<vmem>>, vector<1x2x32xf32>,
    %c3_i32 = arith.constant 3 : i32
    %cst_65 = arith.constant dense<0.000000e+00> : vector<2x32xf32>
    %200 = tpu.matmul %195, %2, %cst_65 {dimension_numbers = #tpu.dot_dimension_numbers<[1], [0], [0], [1], [0, 0, 1, 1], [], []>} : vector<2x32xf32>, vector<32x32xf32>, vector<2x32xf32> -> vector<2x32xf32>
    %201 = vector.broadcast %3 : vector<1x32xf32> to vector<2x32xf32>
    %202 = arith.addf %200, %201 : vector<2x32xf32>
    %203 = vector.shape_cast %202 : vector<2x32xf32> to vector<2x1x32xf32>
    %204 = vector.broadcast %203 : vector<2x1x32xf32> to vector<2x8x32xf32>
    %205 = arith.addf %1, %204 : vector<2x8x32xf32>
    %206 = math.tanh %205 : vector<2x8x32xf32>
    %207 = arith.mulf %206, %11 : vector<2x8x32xf32>
    %cst_66 = arith.constant dense<0.000000e+00> : vector<2x8xf32>
    %208 = vector.multi_reduction <add>, %207, %cst_66 [2] : vector<2x8x32xf32> to vector<2x8xf32>
    %cst_67 = arith.constant dense<0xFF800000> : vector<2xf32>
    %209 = vector.multi_reduction <maximumf>, %208, %cst_67 [1] : vector<2x8xf32> to vector<2xf32>
    %210 = vector.shape_cast %209 : vector<2xf32> to vector<2x1xf32>
    %211 = vector.broadcast %210 : vector<2x1xf32> to vector<2x8xf32>
    %212 = arith.subf %208, %211 : vector<2x8xf32>
    %213 = math.exp %212 : vector<2x8xf32>
    %cst_68 = arith.constant dense<0.000000e+00> : vector<2xf32>
    %214 = vector.multi_reduction <add>, %213, %cst_68 [1] : vector<2x8xf32> to vector<2xf32>
    %215 = vector.shape_cast %214 : vector<2xf32> to vector<2x1xf32>
    %216 = tpu.reciprocal %215 {approx = true} : vector<2x1xf32> -> vector<2x1xf32>
    %217 = vector.broadcast %216 : vector<2x1xf32> to vector<2x8xf32>
    %218 = arith.mulf %213, %217 : vector<2x8xf32>
    %219 = vector.shape_cast %218 : vector<2x8xf32> to vector<2x8x1xf32>
    %220 = vector.broadcast %219 : vector<2x8x1xf32> to vector<2x8x32xf32>
    %221 = arith.mulf %220, %0 : vector<2x8x32xf32>
    %cst_69 = arith.constant dense<0.000000e+00> : vector<2x32xf32>
    %222 = vector.multi_reduction <add>, %221, %cst_69 [1] : vector<2x8x32xf32> to vector<2x32xf32>
    %223 = arith.index_cast %c3_i32 : i32 to index
    %c0_70 = arith.constant 0 : index
    %c0_71 = arith.constant 0 : index
    %224 = vector.load %arg2[%223, %c0_70, %c0_71] : memref<6x2x10xf32, #tpu.memory_space<vmem>>, vector<1x2x10xf32>
    %225 = vector.shape_cast %224 : vector<1x2x10xf32> to vector<2x10xf32>
    %cst_72 = arith.constant dense<0.000000e+00> : vector<2x128xf32>
    %226 = tpu.matmul %222, %4, %cst_72 {dimension_numbers = #tpu.dot_dimension_numbers<[1], [0], [0], [1], [0, 0, 1, 1], [], []>} : vector<2x32xf32>, vector<32x128xf32>, vector<2x128xf32> -> vector<2x128xf32>
    %cst_73 = arith.constant dense<0.000000e+00> : vector<2x128xf32>
    %227 = tpu.matmul %225, %5, %cst_73 {dimension_numbers = #tpu.dot_dimension_numbers<[1], [0], [0], [1], [0, 0, 1, 1], [], []>} : vector<2x10xf32>, vector<10x128xf32>, vector<2x128xf32> -> vector<2x128xf32>
    %228 = arith.addf %226, %227 : vector<2x128xf32>
    %cst_74 = arith.constant dense<0.000000e+00> : vector<2x128xf32>
    %229 = tpu.matmul %195, %6, %cst_74 {dimension_numbers = #tpu.dot_dimension_numbers<[1], [0], [0], [1], [0, 0, 1, 1], [], []>} : vector<2x32xf32>, vector<32x128xf32>, vector<2x128xf32> -> vector<2x128xf32>
    %230 = arith.addf %228, %229 : vector<2x128xf32>
    %231 = vector.broadcast %7 : vector<1x128xf32> to vector<2x128xf32>
    %232 = arith.addf %230, %231 : vector<2x128xf32>
    %233 = vector.extract_strided_slice %232 {offsets = [0, 0], sizes = [2, 32], strides = [1, 1]} : vector<2x128xf32> to vector<2x32xf32>
    %234 = arith.negf %233 : vector<2x32xf32>
    %235 = math.exp %234 : vector<2x32xf32>
    %cst_75 = arith.constant 1.000000e+00 : f32
    %236 = vector.broadcast %cst_75 : f32 to vector<2x32xf32>
    %237 = arith.addf %236, %235 : vector<2x32xf32>
    %238 = arith.divf %236, %237 : vector<2x32xf32>
    %239 = vector.extract_strided_slice %232 {offsets = [0, 32], sizes = [2, 32], strides = [1, 1]} : vector<2x128xf32> to vector<2x32xf32>
    %240 = arith.negf %239 : vector<2x32xf32>
    %241 = math.exp %240 : vector<2x32xf32>
    %cst_76 = arith.constant 1.000000e+00 : f32
    %242 = vector.broadcast %cst_76 : f32 to vector<2x32xf32>
    %243 = arith.addf %242, %241 : vector<2x32xf32>
    %244 = arith.divf %242, %243 : vector<2x32xf32>
    %245 = vector.extract_strided_slice %232 {offsets = [0, 64], sizes = [2, 32], strides = [1, 1]} : vector<2x128xf32> to vector<2x32xf32>
    %246 = math.tanh %245 : vector<2x32xf32>
    %247 = vector.extract_strided_slice %232 {offsets = [0, 96], sizes = [2, 32], strides = [1, 1]} : vector<2x128xf32> to vector<2x32xf32>
    %248 = arith.negf %247 : vector<2x32xf32>
    %249 = math.exp %248 : vector<2x32xf32>
    %cst_77 = arith.constant 1.000000e+00 : f32
    %250 = vector.broadcast %cst_77 : f32 to vector<2x32xf32>
    %251 = arith.addf %250, %249 : vector<2x32xf32>
    %252 = arith.divf %250, %251 : vector<2x32xf32>
    %253 = arith.mulf %244, %193 : vector<2x32xf32>
    %254 = arith.mulf %238, %246 : vector<2x32xf32>
    %255 = arith.addf %253, %254 : vector<2x32xf32>
    %256 = math.tanh %255 : vector<2x32xf32>
    %257 = arith.mulf %252, %256 : vector<2x32xf32>
    %258 = arith.index_cast %c3_i32 : i32 to index
    %c0_78 = arith.constant 0 : index
    %c0_79 = arith.constant 0 : index
    %259 = vector.load %arg10[%258, %c0_78, %c0_79] : memref<6x2x32xf32, #tpu.memory_space<vmem>>, vector<1x2x32xf32>
    %260 = vector.shape_cast %259 : vector<1x2x32xf32> to vector<2x32xf32>
    %261 = vector.shape_cast %257 : vector<2x32xf32> to vector<1x2x32xf32>
    tpu.vector_store %arg10[%258, %c0_78, %c0_79], %261 {strides = array<i32>} : memref<6x2x32xf32, #tpu.memory_space<vmem>>, vector<1x2x32xf32>,
    %c4_i32 = arith.constant 4 : i32
    %cst_80 = arith.constant dense<0.000000e+00> : vector<2x32xf32>
    %262 = tpu.matmul %257, %2, %cst_80 {dimension_numbers = #tpu.dot_dimension_numbers<[1], [0], [0], [1], [0, 0, 1, 1], [], []>} : vector<2x32xf32>, vector<32x32xf32>, vector<2x32xf32> -> vector<2x32xf32>
    %263 = vector.broadcast %3 : vector<1x32xf32> to vector<2x32xf32>
    %264 = arith.addf %262, %263 : vector<2x32xf32>
    %265 = vector.shape_cast %264 : vector<2x32xf32> to vector<2x1x32xf32>
    %266 = vector.broadcast %265 : vector<2x1x32xf32> to vector<2x8x32xf32>
    %267 = arith.addf %1, %266 : vector<2x8x32xf32>
    %268 = math.tanh %267 : vector<2x8x32xf32>
    %269 = arith.mulf %268, %11 : vector<2x8x32xf32>
    %cst_81 = arith.constant dense<0.000000e+00> : vector<2x8xf32>
    %270 = vector.multi_reduction <add>, %269, %cst_81 [2] : vector<2x8x32xf32> to vector<2x8xf32>
    %cst_82 = arith.constant dense<0xFF800000> : vector<2xf32>
    %271 = vector.multi_reduction <maximumf>, %270, %cst_82 [1] : vector<2x8xf32> to vector<2xf32>
    %272 = vector.shape_cast %271 : vector<2xf32> to vector<2x1xf32>
    %273 = vector.broadcast %272 : vector<2x1xf32> to vector<2x8xf32>
    %274 = arith.subf %270, %273 : vector<2x8xf32>
    %275 = math.exp %274 : vector<2x8xf32>
    %cst_83 = arith.constant dense<0.000000e+00> : vector<2xf32>
    %276 = vector.multi_reduction <add>, %275, %cst_83 [1] : vector<2x8xf32> to vector<2xf32>
    %277 = vector.shape_cast %276 : vector<2xf32> to vector<2x1xf32>
    %278 = tpu.reciprocal %277 {approx = true} : vector<2x1xf32> -> vector<2x1xf32>
    %279 = vector.broadcast %278 : vector<2x1xf32> to vector<2x8xf32>
    %280 = arith.mulf %275, %279 : vector<2x8xf32>
    %281 = vector.shape_cast %280 : vector<2x8xf32> to vector<2x8x1xf32>
    %282 = vector.broadcast %281 : vector<2x8x1xf32> to vector<2x8x32xf32>
    %283 = arith.mulf %282, %0 : vector<2x8x32xf32>
    %cst_84 = arith.constant dense<0.000000e+00> : vector<2x32xf32>
    %284 = vector.multi_reduction <add>, %283, %cst_84 [1] : vector<2x8x32xf32> to vector<2x32xf32>
    %285 = arith.index_cast %c4_i32 : i32 to index
    %c0_85 = arith.constant 0 : index
    %c0_86 = arith.constant 0 : index
    %286 = vector.load %arg2[%285, %c0_85, %c0_86] : memref<6x2x10xf32, #tpu.memory_space<vmem>>, vector<1x2x10xf32>
    %287 = vector.shape_cast %286 : vector<1x2x10xf32> to vector<2x10xf32>
    %cst_87 = arith.constant dense<0.000000e+00> : vector<2x128xf32>
    %288 = tpu.matmul %284, %4, %cst_87 {dimension_numbers = #tpu.dot_dimension_numbers<[1], [0], [0], [1], [0, 0, 1, 1], [], []>} : vector<2x32xf32>, vector<32x128xf32>, vector<2x128xf32> -> vector<2x128xf32>
    %cst_88 = arith.constant dense<0.000000e+00> : vector<2x128xf32>
    %289 = tpu.matmul %287, %5, %cst_88 {dimension_numbers = #tpu.dot_dimension_numbers<[1], [0], [0], [1], [0, 0, 1, 1], [], []>} : vector<2x10xf32>, vector<10x128xf32>, vector<2x128xf32> -> vector<2x128xf32>
    %290 = arith.addf %288, %289 : vector<2x128xf32>
    %cst_89 = arith.constant dense<0.000000e+00> : vector<2x128xf32>
    %291 = tpu.matmul %257, %6, %cst_89 {dimension_numbers = #tpu.dot_dimension_numbers<[1], [0], [0], [1], [0, 0, 1, 1], [], []>} : vector<2x32xf32>, vector<32x128xf32>, vector<2x128xf32> -> vector<2x128xf32>
    %292 = arith.addf %290, %291 : vector<2x128xf32>
    %293 = vector.broadcast %7 : vector<1x128xf32> to vector<2x128xf32>
    %294 = arith.addf %292, %293 : vector<2x128xf32>
    %295 = vector.extract_strided_slice %294 {offsets = [0, 0], sizes = [2, 32], strides = [1, 1]} : vector<2x128xf32> to vector<2x32xf32>
    %296 = arith.negf %295 : vector<2x32xf32>
    %297 = math.exp %296 : vector<2x32xf32>
    %cst_90 = arith.constant 1.000000e+00 : f32
    %298 = vector.broadcast %cst_90 : f32 to vector<2x32xf32>
    %299 = arith.addf %298, %297 : vector<2x32xf32>
    %300 = arith.divf %298, %299 : vector<2x32xf32>
    %301 = vector.extract_strided_slice %294 {offsets = [0, 32], sizes = [2, 32], strides = [1, 1]} : vector<2x128xf32> to vector<2x32xf32>
    %302 = arith.negf %301 : vector<2x32xf32>
    %303 = math.exp %302 : vector<2x32xf32>
    %cst_91 = arith.constant 1.000000e+00 : f32
    %304 = vector.broadcast %cst_91 : f32 to vector<2x32xf32>
    %305 = arith.addf %304, %303 : vector<2x32xf32>
    %306 = arith.divf %304, %305 : vector<2x32xf32>
    %307 = vector.extract_strided_slice %294 {offsets = [0, 64], sizes = [2, 32], strides = [1, 1]} : vector<2x128xf32> to vector<2x32xf32>
    %308 = math.tanh %307 : vector<2x32xf32>
    %309 = vector.extract_strided_slice %294 {offsets = [0, 96], sizes = [2, 32], strides = [1, 1]} : vector<2x128xf32> to vector<2x32xf32>
    %310 = arith.negf %309 : vector<2x32xf32>
    %311 = math.exp %310 : vector<2x32xf32>
    %cst_92 = arith.constant 1.000000e+00 : f32
    %312 = vector.broadcast %cst_92 : f32 to vector<2x32xf32>
    %313 = arith.addf %312, %311 : vector<2x32xf32>
    %314 = arith.divf %312, %313 : vector<2x32xf32>
    %315 = arith.mulf %306, %255 : vector<2x32xf32>
    %316 = arith.mulf %300, %308 : vector<2x32xf32>
    %317 = arith.addf %315, %316 : vector<2x32xf32>
    %318 = math.tanh %317 : vector<2x32xf32>
    %319 = arith.mulf %314, %318 : vector<2x32xf32>
    %320 = arith.index_cast %c4_i32 : i32 to index
    %c0_93 = arith.constant 0 : index
    %c0_94 = arith.constant 0 : index
    %321 = vector.load %arg10[%320, %c0_93, %c0_94] : memref<6x2x32xf32, #tpu.memory_space<vmem>>, vector<1x2x32xf32>
    %322 = vector.shape_cast %321 : vector<1x2x32xf32> to vector<2x32xf32>
    %323 = vector.shape_cast %319 : vector<2x32xf32> to vector<1x2x32xf32>
    tpu.vector_store %arg10[%320, %c0_93, %c0_94], %323 {strides = array<i32>} : memref<6x2x32xf32, #tpu.memory_space<vmem>>, vector<1x2x32xf32>,
    %c5_i32 = arith.constant 5 : i32
    %cst_95 = arith.constant dense<0.000000e+00> : vector<2x32xf32>
    %324 = tpu.matmul %319, %2, %cst_95 {dimension_numbers = #tpu.dot_dimension_numbers<[1], [0], [0], [1], [0, 0, 1, 1], [], []>} : vector<2x32xf32>, vector<32x32xf32>, vector<2x32xf32> -> vector<2x32xf32>
    %325 = vector.broadcast %3 : vector<1x32xf32> to vector<2x32xf32>
    %326 = arith.addf %324, %325 : vector<2x32xf32>
    %327 = vector.shape_cast %326 : vector<2x32xf32> to vector<2x1x32xf32>
    %328 = vector.broadcast %327 : vector<2x1x32xf32> to vector<2x8x32xf32>
    %329 = arith.addf %1, %328 : vector<2x8x32xf32>
    %330 = math.tanh %329 : vector<2x8x32xf32>
    %331 = arith.mulf %330, %11 : vector<2x8x32xf32>
    %cst_96 = arith.constant dense<0.000000e+00> : vector<2x8xf32>
    %332 = vector.multi_reduction <add>, %331, %cst_96 [2] : vector<2x8x32xf32> to vector<2x8xf32>
    %cst_97 = arith.constant dense<0xFF800000> : vector<2xf32>
    %333 = vector.multi_reduction <maximumf>, %332, %cst_97 [1] : vector<2x8xf32> to vector<2xf32>
    %334 = vector.shape_cast %333 : vector<2xf32> to vector<2x1xf32>
    %335 = vector.broadcast %334 : vector<2x1xf32> to vector<2x8xf32>
    %336 = arith.subf %332, %335 : vector<2x8xf32>
    %337 = math.exp %336 : vector<2x8xf32>
    %cst_98 = arith.constant dense<0.000000e+00> : vector<2xf32>
    %338 = vector.multi_reduction <add>, %337, %cst_98 [1] : vector<2x8xf32> to vector<2xf32>
    %339 = vector.shape_cast %338 : vector<2xf32> to vector<2x1xf32>
    %340 = tpu.reciprocal %339 {approx = true} : vector<2x1xf32> -> vector<2x1xf32>
    %341 = vector.broadcast %340 : vector<2x1xf32> to vector<2x8xf32>
    %342 = arith.mulf %337, %341 : vector<2x8xf32>
    %343 = vector.shape_cast %342 : vector<2x8xf32> to vector<2x8x1xf32>
    %344 = vector.broadcast %343 : vector<2x8x1xf32> to vector<2x8x32xf32>
    %345 = arith.mulf %344, %0 : vector<2x8x32xf32>
    %cst_99 = arith.constant dense<0.000000e+00> : vector<2x32xf32>
    %346 = vector.multi_reduction <add>, %345, %cst_99 [1] : vector<2x8x32xf32> to vector<2x32xf32>
    %347 = arith.index_cast %c5_i32 : i32 to index
    %c0_100 = arith.constant 0 : index
    %c0_101 = arith.constant 0 : index
    %348 = vector.load %arg2[%347, %c0_100, %c0_101] : memref<6x2x10xf32, #tpu.memory_space<vmem>>, vector<1x2x10xf32>
    %349 = vector.shape_cast %348 : vector<1x2x10xf32> to vector<2x10xf32>
    %cst_102 = arith.constant dense<0.000000e+00> : vector<2x128xf32>
    %350 = tpu.matmul %346, %4, %cst_102 {dimension_numbers = #tpu.dot_dimension_numbers<[1], [0], [0], [1], [0, 0, 1, 1], [], []>} : vector<2x32xf32>, vector<32x128xf32>, vector<2x128xf32> -> vector<2x128xf32>
    %cst_103 = arith.constant dense<0.000000e+00> : vector<2x128xf32>
    %351 = tpu.matmul %349, %5, %cst_103 {dimension_numbers = #tpu.dot_dimension_numbers<[1], [0], [0], [1], [0, 0, 1, 1], [], []>} : vector<2x10xf32>, vector<10x128xf32>, vector<2x128xf32> -> vector<2x128xf32>
    %352 = arith.addf %350, %351 : vector<2x128xf32>
    %cst_104 = arith.constant dense<0.000000e+00> : vector<2x128xf32>
    %353 = tpu.matmul %319, %6, %cst_104 {dimension_numbers = #tpu.dot_dimension_numbers<[1], [0], [0], [1], [0, 0, 1, 1], [], []>} : vector<2x32xf32>, vector<32x128xf32>, vector<2x128xf32> -> vector<2x128xf32>
    %354 = arith.addf %352, %353 : vector<2x128xf32>
    %355 = vector.broadcast %7 : vector<1x128xf32> to vector<2x128xf32>
    %356 = arith.addf %354, %355 : vector<2x128xf32>
    %357 = vector.extract_strided_slice %356 {offsets = [0, 0], sizes = [2, 32], strides = [1, 1]} : vector<2x128xf32> to vector<2x32xf32>
    %358 = arith.negf %357 : vector<2x32xf32>
    %359 = math.exp %358 : vector<2x32xf32>
    %cst_105 = arith.constant 1.000000e+00 : f32
    %360 = vector.broadcast %cst_105 : f32 to vector<2x32xf32>
    %361 = arith.addf %360, %359 : vector<2x32xf32>
    %362 = arith.divf %360, %361 : vector<2x32xf32>
    %363 = vector.extract_strided_slice %356 {offsets = [0, 32], sizes = [2, 32], strides = [1, 1]} : vector<2x128xf32> to vector<2x32xf32>
    %364 = arith.negf %363 : vector<2x32xf32>
    %365 = math.exp %364 : vector<2x32xf32>
    %cst_106 = arith.constant 1.000000e+00 : f32
    %366 = vector.broadcast %cst_106 : f32 to vector<2x32xf32>
    %367 = arith.addf %366, %365 : vector<2x32xf32>
    %368 = arith.divf %366, %367 : vector<2x32xf32>
    %369 = vector.extract_strided_slice %356 {offsets = [0, 64], sizes = [2, 32], strides = [1, 1]} : vector<2x128xf32> to vector<2x32xf32>
    %370 = math.tanh %369 : vector<2x32xf32>
    %371 = vector.extract_strided_slice %356 {offsets = [0, 96], sizes = [2, 32], strides = [1, 1]} : vector<2x128xf32> to vector<2x32xf32>
    %372 = arith.negf %371 : vector<2x32xf32>
    %373 = math.exp %372 : vector<2x32xf32>
    %cst_107 = arith.constant 1.000000e+00 : f32
    %374 = vector.broadcast %cst_107 : f32 to vector<2x32xf32>
    %375 = arith.addf %374, %373 : vector<2x32xf32>
    %376 = arith.divf %374, %375 : vector<2x32xf32>
    %377 = arith.mulf %368, %317 : vector<2x32xf32>
    %378 = arith.mulf %362, %370 : vector<2x32xf32>
    %379 = arith.addf %377, %378 : vector<2x32xf32>
    %380 = math.tanh %379 : vector<2x32xf32>
    %381 = arith.mulf %376, %380 : vector<2x32xf32>
    %382 = arith.index_cast %c5_i32 : i32 to index
    %c0_108 = arith.constant 0 : index
    %c0_109 = arith.constant 0 : index
    %383 = vector.load %arg10[%382, %c0_108, %c0_109] : memref<6x2x32xf32, #tpu.memory_space<vmem>>, vector<1x2x32xf32>
    %384 = vector.shape_cast %383 : vector<1x2x32xf32> to vector<2x32xf32>
    %385 = vector.shape_cast %381 : vector<2x32xf32> to vector<1x2x32xf32>
    tpu.vector_store %arg10[%382, %c0_108, %c0_109], %385 {strides = array<i32>} : memref<6x2x32xf32, #tpu.memory_space<vmem>>, vector<1x2x32xf32>,
    %c6_i32 = arith.constant 6 : i32
    return
  }
}

</mosaic_0001>

<bundles_post_ra>
// kernel: forward.22
= control target key start
LH: loop header
LB: loop body
LE: loop exit
PB: predicated region body
PF: predicated region fallthrough
CT: control target
= control target key end

     0   :  { %s1164_s12 = smov 0   ;;  %s1166_s13 = smov 0   ;;  %s1309_s0 = inlined_call_operand.vmem [shape: bf16[1024,9], index: 0, kind: input, shape index: {}]   ;;  %s1310_s1 = inlined_call_operand.vmem [shape: bf16[9,128], index: 1, kind: input, shape index: {}]   ;;  %s1311_s2 = inlined_call_operand.vmem [shape: f32[1,128], index: 2, kind: input, shape index: {}]   ;;  %s1312_s3 = inlined_call_operand.vmem [shape: f32[1024,128], index: 3, kind: output, shape index: {}]  }
   0x1   :  { %s1168_s14 = smov 0  }
   0x2 LB: > { %s32_s15 = sadd.s32 1, %s1137_s13  ;;  %p983_p0 = scmp.ge.s32.totalorder %s1141_s14, 1  ;;  %s1141_s14 = sphi %s1168_s14, %s13_s14   ;;  %s1137_s13 = sphi %s1166_s13, %s1314_s13   ;;  %s1133_s12 = sphi %s1164_s12, %s1313_s12  }
   0x3   : > { %p34_p1 = scmp.ge.s32.totalorder %s32_s15, 4  ;;  %p188_p2 = scmp.lt.s32.totalorder %s1141_s14, 5 }
   0x5   : > { %s1316_s15 = smov (%p34_p1, %s32_s15), 0  ;;  %p189_p3 = pnand %p983_p0, %p188_p2 }
   0x6   : > { %v1102_v0 = vld [vmem:[%s1310_s1] sm:$0x1f] (!%p189_p3)   ;;  %vm496_vm0 = vcmask (!%p189_p3), 1043456   ;;  %vm497_vm1 = vcmask (!%p189_p3), 1044480   ;;  %s984_s18 = sshll.u32 (!%p189_p3), %s1133_s12, 5  ;;  %v1143_v1 = vmov (!%p189_p3), 65535  }
   0x7   : > { %192 = sbr.rel (%p189_p3) target bundleno = 264 (0x108), region = 32  ;;  %v498_v2 = vsel (!%p189_p3), %vm496_vm0, 4294967295, %v1143_v1  ;;  %p230_p4 = scmp.lt.s32.totalorder (!%p189_p3), %s984_s18, 127  ;;  %vm447_vm2 = vcmask (!%p189_p3), 72704   ;;  %v1228_v21 = vld [vmem:[%s1311_s2] ss:$0 sm:$0xff] (!%p189_p3) }
   0x8   : > { %v499_v3 = vsel (!%p189_p3), %vm497_vm1, %v498_v2, 0 }
   0x9   : > { %v501_v4 = vand.u32 (!%p189_p3), %v1102_v0, %v499_v3 }
   0xb   : > { %1041 = vmatprep.subr.bf16.mxu0 (!%p189_p3), %v501_v4  ;;  %1075 = vmatprep.subr.bf16.mxu1 (!%p189_p3), %v501_v4 }
   0xc   : > { %1042 = vmatpush3.bf16.msra.mxu0 (!%p189_p3), %v501_v4  ;;  %1076 = vmatpush3.bf16.msra.mxu1 (!%p189_p3), %v501_v4 }
   0xe   : > { %s1318_s18 = smov (!%p230_p4, %s984_s18), 127 }
   0xf   : > { %s985_s19 = sshll.u32 %s1318_s18, 2  ;;  %s987_s25 = sshll.u32 %s1318_s18, 3 }
  0x10   : > { %s1191_s22 = scalar_lea.vmem %s1309_s0, %s985_s19  ;;  %s1235_s28 = scalar_lea.vmem %s1312_s3, %s987_s25 }
  0x11   : > { %v1103_v5 = vld [vmem:[%s1191_s22] sm:$0xff]   ;;  %v1105_v7 = vld [vmem:[%s1191_s22 + $0x8] sm:$0xff]   ;;  %v1107_v9 = vld [vmem:[%s1191_s22 + $0x10] sm:$0xff]  }
  0x12   : > { %v1104_v6 = vld [vmem:[%s1191_s22 + $0x40] sm:$0xff]   ;;  %1043 = vmatprep.mubr.msk.bf16.mxu0 %vm447_vm2, %v1103_v5  ;;  %v1106_v8 = vld [vmem:[%s1191_s22 + $0x48] sm:$0xff]   ;;  %v1108_v10 = vld [vmem:[%s1191_s22 + $0x50] sm:$0xff]  }
  0x13   : > { %1059 = vmatprep.mubr.msk.bf16.mxu1 %vm447_vm2, %v1104_v6  ;;  %1044 = vmatmul.mubr.msk.bf16.vlgmr.msra.gmra.mrb[0].mxu0 %vm447_vm2, %v1105_v7  ;;  %v1109_v11 = vld [vmem:[%s1191_s22 + $0x18] sm:$0xff]   ;;  %v1111_v13 = vld [vmem:[%s1191_s22 + $0x20] sm:$0xff]   ;;  %v1113_v15 = vld [vmem:[%s1191_s22 + $0x28] sm:$0xff]  }
  0x14   : > { %1060 = vmatmul.mubr.msk.bf16.vlgmr.msra.gmra.mrb[0].mxu1 %vm447_vm2, %v1106_v8  ;;  %1047 = vmatprep.mubr.msk.bf16.mxu0 %vm447_vm2, %v1107_v9  ;;  %v1110_v12 = vld [vmem:[%s1191_s22 + $0x58] sm:$0xff]   ;;  %v1112_v14 = vld [vmem:[%s1191_s22 + $0x60] sm:$0xff]   ;;  %v1114_v16 = vld [vmem:[%s1191_s22 + $0x68] sm:$0xff]  }
  0x15   : > { %1063 = vmatprep.mubr.msk.bf16.mxu1 %vm447_vm2, %v1108_v10  ;;  %v1115_v17 = vld [vmem:[%s1191_s22 + $0x30] sm:$0xff]   ;;  %v1117_v19 = vld [vmem:[%s1191_s22 + $0x38] sm:$0xff]  }
  0x16   : > { %v1116_v18 = vld [vmem:[%s1191_s22 + $0x70] sm:$0xff]   ;;  %v1118_v20 = vld [vmem:[%s1191_s22 + $0x78] sm:$0xff]  }
  0x1b   : > { %1048 = vmatmul.mubr.msk.bf16.gmra.mrb[4].mxu0 %vm447_vm2, %v1109_v11 }
  0x1c   : > { %1064 = vmatmul.mubr.msk.bf16.gmra.mrb[4].mxu1 %vm447_vm2, %v1110_v12  ;;  %1051 = vmatprep.mubr.msk.bf16.mxu0 %vm447_vm2, %v1111_v13 }
  0x1d   : > { %1067 = vmatprep.mubr.msk.bf16.mxu1 %vm447_vm2, %v1112_v14 }
  0x23   : > { %1052 = vmatmul.mubr.msk.bf16.gmra.mrb[8].mxu0 %vm447_vm2, %v1113_v15 }
  0x24   : > { %1068 = vmatmul.mubr.msk.bf16.gmra.mrb[8].mxu1 %vm447_vm2, %v1114_v16  ;;  %1055 = vmatprep.mubr.msk.bf16.mxu0 %vm447_vm2, %v1115_v17 }
  0x25   : > { %1071 = vmatprep.mubr.msk.bf16.mxu1 %vm447_vm2, %v1116_v18 }
  0x2b   : > { %1056 = vmatmul.mubr.msk.bf16.gmra.mrb[12].mxu0 %vm447_vm2, %v1117_v19 }
  0x2c   : > { %1072 = vmatmul.mubr.msk.bf16.gmra.mrb[12].mxu1 %vm447_vm2, %v1118_v20 }
  0xe6   : > { %v1045_v22 = vpop.f32.mrb[0].mxu0 }
  0xe7   : > { %v772_v23 = vadd.f32 %v1045_v22, %v1228_v21  ;;  %v1061_v24 = vpop.f32.mrb[0].mxu1  ;;  %v537_v25 = vpop.f32.mrb[1].mxu0 }
  0xe8   : > { %v788_v26 = vadd.f32 %v1061_v24, %v1228_v21  ;;  %v770_v27 = vadd.f32 %v1228_v21, %v537_v25  ;;  %v601_v28 = vpop.f32.mrb[1].mxu1  ;;  %v1046_v29 = vpop.f32.mrb[2].mxu0 }
  0xe9   : > { %v804_v30 = vmax.f32 %v772_v23, 0.0  ;;  %v786_v31 = vadd.f32 %v1228_v21, %v601_v28  ;;  %v773_v32 = vadd.f32 %v1046_v29, %v1228_v21  ;;  %v1062_v33 = vpop.f32.mrb[2].mxu1  ;;  %v540_v34 = vpop.f32.mrb[3].mxu0 }
  0xea   : > { %v820_v35 = vmax.f32 %v788_v26, 0.0  ;;  %v802_v36 = vmax.f32 %v770_v27, 0.0  ;;  %v789_v37 = vadd.f32 %v1062_v33, %v1228_v21  ;;  %v771_v38 = vadd.f32 %v1228_v21, %v540_v34  ;;  %v604_v39 = vpop.f32.mrb[3].mxu1 }
  0xeb   : > { %836 = vst [vmem:[%s1235_s28 + $0x10] sm:$0xff] %v804_v30  ;;  %v818_v40 = vmax.f32 %v786_v31, 0.0  ;;  %v805_v41 = vmax.f32 %v773_v32, 0.0  ;;  %v787_v42 = vadd.f32 %v1228_v21, %v604_v39 }
  0xec   : > { %852 = vst [vmem:[%s1235_s28 + $0x90] sm:$0xff] %v820_v35  ;;  %834 = vst [vmem:[%s1235_s28] sm:$0xff] %v802_v36  ;;  %v821_v43 = vmax.f32 %v789_v37, 0.0  ;;  %v803_v44 = vmax.f32 %v771_v38, 0.0 }
  0xed   : > { %850 = vst [vmem:[%s1235_s28 + $0x80] sm:$0xff] %v818_v40  ;;  %837 = vst [vmem:[%s1235_s28 + $0x18] sm:$0xff] %v805_v41  ;;  %v819_v45 = vmax.f32 %v787_v42, 0.0 }
  0xee   : > { %853 = vst [vmem:[%s1235_s28 + $0x98] sm:$0xff] %v821_v43  ;;  %835 = vst [vmem:[%s1235_s28 + $0x8] sm:$0xff] %v803_v44  ;;  %v1049_v46 = vpop.f32.mrb[4].mxu0 }
  0xef   : > { %851 = vst [vmem:[%s1235_s28 + $0x88] sm:$0xff] %v819_v45  ;;  %v776_v47 = vadd.f32 %v1049_v46, %v1228_v21  ;;  %v1065_v48 = vpop.f32.mrb[4].mxu1  ;;  %v553_v49 = vpop.f32.mrb[5].mxu0 }
  0xf0   : > { %v792_v50 = vadd.f32 %v1065_v48, %v1228_v21  ;;  %v774_v51 = vadd.f32 %v1228_v21, %v553_v49  ;;  %v617_v52 = vpop.f32.mrb[5].mxu1  ;;  %v1050_v53 = vpop.f32.mrb[6].mxu0 }
  0xf1   : > { %v808_v54 = vmax.f32 %v776_v47, 0.0  ;;  %v790_v55 = vadd.f32 %v1228_v21, %v617_v52  ;;  %v777_v56 = vadd.f32 %v1050_v53, %v1228_v21  ;;  %v1066_v57 = vpop.f32.mrb[6].mxu1  ;;  %v556_v58 = vpop.f32.mrb[7].mxu0 }
  0xf2   : > { %v824_v59 = vmax.f32 %v792_v50, 0.0  ;;  %v806_v60 = vmax.f32 %v774_v51, 0.0  ;;  %v793_v61 = vadd.f32 %v1066_v57, %v1228_v21  ;;  %v775_v62 = vadd.f32 %v1228_v21, %v556_v58  ;;  %v620_v63 = vpop.f32.mrb[7].mxu1 }
  0xf3   : > { %840 = vst [vmem:[%s1235_s28 + $0x30] sm:$0xff] %v808_v54  ;;  %v822_v0 = vmax.f32 %v790_v55, 0.0  ;;  %v809_v1 = vmax.f32 %v777_v56, 0.0  ;;  %v791_v2 = vadd.f32 %v1228_v21, %v620_v63 }
  0xf4   : > { %856 = vst [vmem:[%s1235_s28 + $0xb0] sm:$0xff] %v824_v59  ;;  %838 = vst [vmem:[%s1235_s28 + $0x20] sm:$0xff] %v806_v60  ;;  %v825_v3 = vmax.f32 %v793_v61, 0.0  ;;  %v807_v4 = vmax.f32 %v775_v62, 0.0 }
  0xf5   : > { %854 = vst [vmem:[%s1235_s28 + $0xa0] sm:$0xff] %v822_v0  ;;  %841 = vst [vmem:[%s1235_s28 + $0x38] sm:$0xff] %v809_v1  ;;  %v823_v5 = vmax.f32 %v791_v2, 0.0 }
  0xf6   : > { %857 = vst [vmem:[%s1235_s28 + $0xb8] sm:$0xff] %v825_v3  ;;  %839 = vst [vmem:[%s1235_s28 + $0x28] sm:$0xff] %v807_v4  ;;  %v1053_v6 = vpop.f32.mrb[8].mxu0 }
  0xf7   : > { %855 = vst [vmem:[%s1235_s28 + $0xa8] sm:$0xff] %v823_v5  ;;  %v780_v7 = vadd.f32 %v1053_v6, %v1228_v21  ;;  %v1069_v8 = vpop.f32.mrb[8].mxu1  ;;  %v569_v9 = vpop.f32.mrb[9].mxu0 }
  0xf8   : > { %v796_v10 = vadd.f32 %v1069_v8, %v1228_v21  ;;  %v778_v11 = vadd.f32 %v1228_v21, %v569_v9  ;;  %v633_v12 = vpop.f32.mrb[9].mxu1  ;;  %v1054_v13 = vpop.f32.mrb[10].mxu0 }
  0xf9   : > { %v812_v14 = vmax.f32 %v780_v7, 0.0  ;;  %v794_v15 = vadd.f32 %v1228_v21, %v633_v12  ;;  %v781_v16 = vadd.f32 %v1054_v13, %v1228_v21  ;;  %v1070_v17 = vpop.f32.mrb[10].mxu1  ;;  %v572_v18 = vpop.f32.mrb[11].mxu0 }
  0xfa   : > { %v828_v19 = vmax.f32 %v796_v10, 0.0  ;;  %v810_v20 = vmax.f32 %v778_v11, 0.0  ;;  %v797_v22 = vadd.f32 %v1070_v17, %v1228_v21  ;;  %v779_v23 = vadd.f32 %v1228_v21, %v572_v18  ;;  %v636_v24 = vpop.f32.mrb[11].mxu1 }
  0xfb   : > { %844 = vst [vmem:[%s1235_s28 + $0x50] sm:$0xff] %v812_v14  ;;  %v826_v25 = vmax.f32 %v794_v15, 0.0  ;;  %v813_v26 = vmax.f32 %v781_v16, 0.0  ;;  %v795_v27 = vadd.f32 %v1228_v21, %v636_v24 }
  0xfc   : > { %860 = vst [vmem:[%s1235_s28 + $0xd0] sm:$0xff] %v828_v19  ;;  %842 = vst [vmem:[%s1235_s28 + $0x40] sm:$0xff] %v810_v20  ;;  %v829_v28 = vmax.f32 %v797_v22, 0.0  ;;  %v811_v29 = vmax.f32 %v779_v23, 0.0 }
  0xfd   : > { %858 = vst [vmem:[%s1235_s28 + $0xc0] sm:$0xff] %v826_v25  ;;  %845 = vst [vmem:[%s1235_s28 + $0x58] sm:$0xff] %v813_v26  ;;  %v827_v30 = vmax.f32 %v795_v27, 0.0 }
  0xfe   : > { %861 = vst [vmem:[%s1235_s28 + $0xd8] sm:$0xff] %v829_v28  ;;  %843 = vst [vmem:[%s1235_s28 + $0x48] sm:$0xff] %v811_v29  ;;  %v1057_v31 = vpop.f32.mrb[12].mxu0 }
  0xff   : > { %859 = vst [vmem:[%s1235_s28 + $0xc8] sm:$0xff] %v827_v30  ;;  %v784_v32 = vadd.f32 %v1057_v31, %v1228_v21  ;;  %v1073_v33 = vpop.f32.mrb[12].mxu1  ;;  %v585_v34 = vpop.f32.mrb[13].mxu0 }
 0x100   : > { %v800_v35 = vadd.f32 %v1073_v33, %v1228_v21  ;;  %v782_v36 = vadd.f32 %v1228_v21, %v585_v34  ;;  %v649_v37 = vpop.f32.mrb[13].mxu1  ;;  %v1058_v38 = vpop.f32.mrb[14].mxu0 }
 0x101   : > { %v816_v39 = vmax.f32 %v784_v32, 0.0  ;;  %v798_v40 = vadd.f32 %v1228_v21, %v649_v37  ;;  %v785_v41 = vadd.f32 %v1058_v38, %v1228_v21  ;;  %v1074_v42 = vpop.f32.mrb[14].mxu1  ;;  %v588_v43 = vpop.f32.mrb[15].mxu0 }
 0x102   : > { %v832_v44 = vmax.f32 %v800_v35, 0.0  ;;  %v814_v45 = vmax.f32 %v782_v36, 0.0  ;;  %v801_v46 = vadd.f32 %v1074_v42, %v1228_v21  ;;  %v783_v47 = vadd.f32 %v1228_v21, %v588_v43  ;;  %v652_v48 = vpop.f32.mrb[15].mxu1 }
 0x103   : > { %848 = vst [vmem:[%s1235_s28 + $0x70] sm:$0xff] %v816_v39  ;;  %v830_v49 = vmax.f32 %v798_v40, 0.0  ;;  %v817_v50 = vmax.f32 %v785_v41, 0.0  ;;  %v799_v51 = vadd.f32 %v1228_v21, %v652_v48 }
 0x104   : > { %864 = vst [vmem:[%s1235_s28 + $0xf0] sm:$0xff] %v832_v44  ;;  %846 = vst [vmem:[%s1235_s28 + $0x60] sm:$0xff] %v814_v45  ;;  %v833_v52 = vmax.f32 %v801_v46, 0.0  ;;  %v815_v53 = vmax.f32 %v783_v47, 0.0 }
 0x105   : > { %862 = vst [vmem:[%s1235_s28 + $0xe0] sm:$0xff] %v830_v49  ;;  %849 = vst [vmem:[%s1235_s28 + $0x78] sm:$0xff] %v817_v50  ;;  %v831_v54 = vmax.f32 %v799_v51, 0.0 }
 0x106   : > { %865 = vst [vmem:[%s1235_s28 + $0xf8] sm:$0xff] %v833_v52  ;;  %847 = vst [vmem:[%s1235_s28 + $0x68] sm:$0xff] %v815_v53 }
 0x107   : > { %863 = vst [vmem:[%s1235_s28 + $0xe8] sm:$0xff] %v831_v54 }
 0x108 PF: > { %s13_s14 = sadd.s32 1, %s1141_s14   ;;  %s1313_s12 = smov %s1137_s13 }
 0x109   : > { %p10_p5 = scmp.ge.s32.totalorder %s13_s14, 6   ;;  %s1314_s13 = smov %s1316_s15 }
 0x10b   :  { %12 = sbr.rel (!%p10_p5) target bundleno = 2 (0x2), region = 76 }

// kernel: forward.23
= control target key start
LH: loop header
LB: loop body
LE: loop exit
PB: predicated region body
PF: predicated region fallthrough
CT: control target
= control target key end

     0   :  { %vm531_vm0 = vcmask 261120   ;;  %s1852_s1 = inlined_call_operand.vmem [shape: bf16[288,128], index: 1, kind: input, shape index: {}]   ;;  %s1853_s0 = inlined_call_operand.vmem [shape: bf16[256,288], index: 0, kind: input, shape index: {}]   ;;  %s1854_s2 = inlined_call_operand.vmem [shape: f32[1,128], index: 2, kind: input, shape index: {}]   ;;  %s1855_s3 = inlined_call_operand.vmem [shape: f32[256,128], index: 3, kind: output, shape index: {}]  }
   0x1   :  { %v1373_v0 = vld [vmem:[%s1852_s1 + $0x40] sm:$0xff]   ;;  %v1375_v2 = vld [vmem:[%s1852_s1 + $0x48] sm:$0xff]   ;;  %v1377_v4 = vld [vmem:[%s1852_s1 + $0x50] sm:$0xff]  }
   0x2   :  { %v1374_v1 = vld [vmem:[%s1852_s1] sm:$0xff]   ;;  %1191 = vmatprep.subr.bf16.mxu0 %v1373_v0  ;;  %1357 = vmatprep.subr.bf16.mxu1 %v1373_v0  ;;  %v1376_v3 = vld [vmem:[%s1852_s1 + $0x8] sm:$0xff]   ;;  %v1378_v5 = vld [vmem:[%s1852_s1 + $0x10] sm:$0xff]  }
   0x3   :  { %1192 = vmatpush3.bf16.msra.mxu0 %v1374_v1  ;;  %1365 = vmatpush3.bf16.msra.mxu1 %v1374_v1  ;;  %v1379_v6 = vld [vmem:[%s1852_s1 + $0x58] sm:$0xff]   ;;  %v1381_v8 = vld [vmem:[%s1852_s1 + $0x60] sm:$0xff]   ;;  %v1383_v10 = vld [vmem:[%s1852_s1 + $0x68] sm:$0xff]  }
   0x4   :  { %1193 = vmatprep.subr.bf16.mxu0 %v1375_v2  ;;  %1358 = vmatprep.subr.bf16.mxu1 %v1375_v2  ;;  %v1380_v7 = vld [vmem:[%s1852_s1 + $0x18] sm:$0xff]   ;;  %v1382_v9 = vld [vmem:[%s1852_s1 + $0x20] sm:$0xff]   ;;  %v1384_v13 = vld [vmem:[%s1852_s1 + $0x28] sm:$0xff]  }
   0x5   :  { %v1391_v11 = vld [vmem:[%s1853_s0 + $0x4] ss:$12 sps:$4 sm:$0xff]   ;;  %v1387_v16 = vld [vmem:[%s1852_s1 + $0x78] sm:$0xff]   ;;  %v1389_v19 = vld [vmem:[%s1853_s0] ss:$12 sps:$4 sm:$0xff]  }
   0x6   :  { %v1394_v12 = vld [vmem:[%s1853_s0 + $0x124] ss:$12 sps:$4 sm:$0xff]   ;;  %612 = vmatprep.mubr.bf16.mxu0 %v1391_v11  ;;  %v1388_v17 = vld [vmem:[%s1852_s1 + $0x38] sm:$0xff]   ;;  %v1392_v20 = vld [vmem:[%s1853_s0 + $0x120] ss:$12 sps:$4 sm:$0xff]  }
   0x7   :  { %1194 = vmatpush3.bf16.msra.mxu0 %v1376_v3  ;;  %1366 = vmatpush3.bf16.msra.mxu1 %v1376_v3  ;;  %v1385_v14 = vld [vmem:[%s1852_s1 + $0x70] sm:$0xff]   ;;  %v1395_v18 = vld [vmem:[%s1852_s1 + $0x80] sm:$0xff]   ;;  %v1396_v21 = vld [vmem:[%s1853_s0 + $0x1c] ss:$12 sps:$4 sm:$0xff]  }
   0x8   :  { %1195 = vmatprep.subr.bf16.mxu0 %v1377_v4  ;;  %1359 = vmatprep.subr.bf16.mxu1 %v1377_v4  ;;  %v1386_v15 = vld [vmem:[%s1852_s1 + $0x30] sm:$0xff]   ;;  %v1398_v22 = vld [vmem:[%s1853_s0 + $0x13c] ss:$12 sps:$4 sm:$0xff]   ;;  %v1400_v24 = vld [vmem:[%s1853_s0 + $0x18] ss:$12 sps:$4 sm:$0xff]  }
   0x9   :  { %708 = vmatprep.mubr.bf16.mxu1 %v1394_v12  ;;  %v1408_v23 = vld [vmem:[%s1852_s1 + $0x88] sm:$0xff]   ;;  %v1401_v25 = vld [vmem:[%s1853_s0 + $0x138] ss:$12 sps:$4 sm:$0xff]   ;;  %v1402_v26 = vld [vmem:[%s1853_s0 + $0x34] ss:$12 sps:$4 sm:$0xff]  }
   0xa   :  { %v1404_v27 = vld [vmem:[%s1853_s0 + $0x154] ss:$12 sps:$4 sm:$0xff]   ;;  %v1406_v28 = vld [vmem:[%s1853_s0 + $0x30] ss:$12 sps:$4 sm:$0xff]   ;;  %v1409_v30 = vld [vmem:[%s1853_s0 + $0x4c] ss:$12 sps:$4 sm:$0xff]  }
   0xb   :  { %1196 = vmatpush3.bf16.msra.mxu0 %v1378_v5  ;;  %1367 = vmatpush3.bf16.msra.mxu1 %v1378_v5  ;;  %v1407_v29 = vld [vmem:[%s1853_s0 + $0x150] ss:$12 sps:$4 sm:$0xff]   ;;  %v1411_v31 = vld [vmem:[%s1853_s0 + $0x16c] ss:$12 sps:$4 sm:$0xff]   ;;  %v1413_v32 = vld [vmem:[%s1853_s0 + $0x48] ss:$12 sps:$4 sm:$0xff]  }
   0xc   :  { %1197 = vmatprep.subr.bf16.mxu0 %v1379_v6  ;;  %1360 = vmatprep.subr.bf16.mxu1 %v1379_v6  ;;  %v1414_v33 = vld [vmem:[%s1853_s0 + $0x168] ss:$12 sps:$4 sm:$0xff]   ;;  %v1415_v34 = vld [vmem:[%s1853_s0 + $0x64] ss:$12 sps:$4 sm:$0xff]   ;;  %v1418_v36 = vld [vmem:[%s1853_s0 + $0x60] ss:$12 sps:$4 sm:$0xff]  }
   0xd   :  { %v1417_v35 = vld [vmem:[%s1853_s0 + $0x8] ss:$12 sps:$4 sm:$0xff]   ;;  %v1419_v37 = vld [vmem:[%s1853_s0 + $0x20] ss:$12 sps:$4 sm:$0xff]   ;;  %v1422_v39 = vld [vmem:[%s1853_s0 + $0x38] ss:$12 sps:$4 sm:$0xff]  }
   0xe   :  { %v1420_v38 = vld [vmem:[%s1853_s0 + $0x7c] ss:$12 sps:$4 sm:$0xff]   ;;  %v1423_v40 = vld [vmem:[%s1853_s0 + $0x78] ss:$12 sps:$4 sm:$0xff]   ;;  %v1425_v42 = vld [vmem:[%s1853_s0 + $0x94] ss:$12 sps:$4 sm:$0xff]  }
   0xf   :  { %1198 = vmatpush3.bf16.msra.mxu0 %v1380_v7  ;;  %1368 = vmatpush3.bf16.msra.mxu1 %v1380_v7  ;;  %v1424_v41 = vld [vmem:[%s1853_s0 + $0x50] ss:$12 sps:$4 sm:$0xff]   ;;  %v1427_v43 = vld [vmem:[%s1853_s0 + $0x68] ss:$12 sps:$4 sm:$0xff]   ;;  %v1429_v45 = vld [vmem:[%s1853_s0 + $0x80] ss:$12 sps:$4 sm:$0xff]  }
  0x10   :  { %1199 = vmatprep.subr.bf16.mxu0 %v1381_v8  ;;  %1361 = vmatprep.subr.bf16.mxu1 %v1381_v8  ;;  %v1428_v44 = vld [vmem:[%s1853_s0 + $0x90] ss:$12 sps:$4 sm:$0xff]   ;;  %v1430_v46 = vld [vmem:[%s1853_s0 + $0xac] ss:$12 sps:$4 sm:$0xff]   ;;  %v1433_v48 = vld [vmem:[%s1853_s0 + $0xa8] ss:$12 sps:$4 sm:$0xff]  }
  0x11   :  { %v1432_v47 = vld [vmem:[%s1853_s0 + $0x98] ss:$12 sps:$4 sm:$0xff]   ;;  %v1434_v49 = vld [vmem:[%s1853_s0 + $0xb0] ss:$12 sps:$4 sm:$0xff]   ;;  %v1437_v51 = vld [vmem:[%s1853_s0 + $0xc8] ss:$12 sps:$4 sm:$0xff]  }
  0x12   :  { %v1435_v50 = vld [vmem:[%s1853_s0 + $0xc4] ss:$12 sps:$4 sm:$0xff]   ;;  %v1438_v52 = vld [vmem:[%s1853_s0 + $0xc0] ss:$12 sps:$4 sm:$0xff]   ;;  %v1440_v54 = vld [vmem:[%s1853_s0 + $0xdc] ss:$12 sps:$4 sm:$0xff]  }
  0x13   :  { %1200 = vmatpush3.bf16.msra.mxu0 %v1382_v9  ;;  %1369 = vmatpush3.bf16.msra.mxu1 %v1382_v9  ;;  %v1439_v53 = vld [vmem:[%s1853_s0 + $0xe0] ss:$12 sps:$4 sm:$0xff]   ;;  %v1442_v55 = vld [vmem:[%s1853_s0 + $0xf8] ss:$12 sps:$4 sm:$0xff]   ;;  %v1444_v57 = vld [vmem:[%s1853_s0 + $0x110] ss:$12 sps:$4 sm:$0xff]  }
  0x14   :  { %1201 = vmatprep.subr.bf16.mxu0 %v1383_v10  ;;  %1362 = vmatprep.subr.bf16.mxu1 %v1383_v10  ;;  %v1443_v56 = vld [vmem:[%s1853_s0 + $0xd8] ss:$12 sps:$4 sm:$0xff]   ;;  %v1445_v58 = vld [vmem:[%s1853_s0 + $0xf4] ss:$12 sps:$4 sm:$0xff]   ;;  %v1448_v60 = vld [vmem:[%s1853_s0 + $0xf0] ss:$12 sps:$4 sm:$0xff]  }
  0x15   :  { %v1447_v59 = vld [vmem:[%s1853_s0 + $0x128] ss:$12 sps:$4 sm:$0xff]   ;;  %v1449_v61 = vld [vmem:[%s1853_s0 + $0x140] ss:$12 sps:$4 sm:$0xff]   ;;  %v1452_v63 = vld [vmem:[%s1853_s0 + $0x158] ss:$12 sps:$4 sm:$0xff]  }
  0x16   :  { %v1450_v62 = vld [vmem:[%s1853_s0 + $0x10c] ss:$12 sps:$4 sm:$0xff]   ;;  %v1453_v0 = vld [vmem:[%s1853_s0 + $0x108] ss:$12 sps:$4 sm:$0xff]   ;;  %v1454_v1 = vld [vmem:[%s1853_s0 + $0x170] ss:$12 sps:$4 sm:$0xff]  }
  0x17   :  { %1202 = vmatpush3.bf16.msra.mxu0 %v1384_v13  ;;  %1370 = vmatpush3.bf16.msra.mxu1 %v1384_v13 }
  0x18   :  { %1203 = vmatprep.subr.bf16.mxu0 %v1385_v14  ;;  %1363 = vmatprep.subr.bf16.mxu1 %v1385_v14 }
  0x1b   :  { %1204 = vmatpush3.bf16.msra.mxu0 %v1386_v15  ;;  %1371 = vmatpush3.bf16.msra.mxu1 %v1386_v15 }
  0x1c   :  { %1205 = vmatprep.subr.bf16.mxu0 %v1387_v16  ;;  %1364 = vmatprep.subr.bf16.mxu1 %v1387_v16 }
  0x1f   :  { %1206 = vmatpush3.bf16.msra.mxu0 %v1388_v17  ;;  %1372 = vmatpush3.bf16.msra.mxu1 %v1388_v17 }
  0x20   :  { %1321 = vmatprep.subr.bf16.mxu1 %v1395_v18 }
  0x22   :  { %613 = vmatmul.mubr.bf16.vlgmr.msra.gmra.mrb[0].mxu0 %v1389_v19  ;;  %709 = vmatmul.mubr.bf16.vlgmr.msra.gmra.mrb[0].mxu1 %v1392_v20 }
  0x23   :  { %1322 = vmatpush3.bf16.msra.mxu1 %v1395_v18  ;;  %620 = vmatprep.mubr.bf16.mxu0 %v1396_v21 }
  0x24   :  { %716 = vmatprep.mubr.bf16.mxu1 %v1398_v22  ;;  %1323 = vmatprep.subr.bf16.mxu1 %v1408_v23 }
  0x27   :  { %1324 = vmatpush3.bf16.msra.mxu1 %v1408_v23 }
  0x2a   :  { %621 = vmatmul.mubr.bf16.gmra.mrb[4].mxu0 %v1400_v24  ;;  %717 = vmatmul.mubr.bf16.gmra.mrb[4].mxu1 %v1401_v25 }
  0x2b   :  { %628 = vmatprep.mubr.bf16.mxu0 %v1402_v26  ;;  %724 = vmatprep.mubr.bf16.mxu1 %v1404_v27 }
  0x32   :  { %629 = vmatmul.mubr.bf16.gmra.mrb[8].mxu0 %v1406_v28  ;;  %725 = vmatmul.mubr.bf16.gmra.mrb[8].mxu1 %v1407_v29 }
  0x33   :  { %636 = vmatprep.mubr.bf16.mxu0 %v1409_v30  ;;  %732 = vmatprep.mubr.bf16.mxu1 %v1411_v31 }
  0x3a   :  { %637 = vmatmul.mubr.bf16.gmra.mrb[12].mxu0 %v1413_v32  ;;  %733 = vmatmul.mubr.bf16.gmra.mrb[12].mxu1 %v1414_v33 }
  0x3b   :  { %644 = vmatprep.mubr.bf16.mxu0 %v1415_v34  ;;  %1325 = vmatprep.mubr.msk.bf16.mxu1 %vm531_vm0, %v1417_v35 }
  0x42   :  { %645 = vmatmul.mubr.bf16.gmra.mrb[16].mxu0 %v1418_v36  ;;  %1326 = vmatmul.mubr.msk.bf16.vlgmr.msra.gmra.mrb[16].mxu1 %vm531_vm0, %v1419_v37 }
  0x43   :  { %652 = vmatprep.mubr.bf16.mxu0 %v1420_v38  ;;  %1329 = vmatprep.mubr.msk.bf16.mxu1 %vm531_vm0, %v1422_v39 }
  0x4a   :  { %653 = vmatmul.mubr.bf16.gmra.mrb[20].mxu0 %v1423_v40  ;;  %1330 = vmatmul.mubr.msk.bf16.gmra.mrb[20].mxu1 %vm531_vm0, %v1424_v41 }
  0x4b   :  { %660 = vmatprep.mubr.bf16.mxu0 %v1425_v42  ;;  %1333 = vmatprep.mubr.msk.bf16.mxu1 %vm531_vm0, %v1427_v43 }
  0x52   :  { %661 = vmatmul.mubr.bf16.gmra.mrb[24].mxu0 %v1428_v44  ;;  %1334 = vmatmul.mubr.msk.bf16.gmra.mrb[24].mxu1 %vm531_vm0, %v1429_v45 }
  0x53   :  { %668 = vmatprep.mubr.bf16.mxu0 %v1430_v46  ;;  %1337 = vmatprep.mubr.msk.bf16.mxu1 %vm531_vm0, %v1432_v47 }
  0x5a   :  { %669 = vmatmul.mubr.bf16.gmra.mrb[28].mxu0 %v1433_v48  ;;  %1338 = vmatmul.mubr.msk.bf16.gmra.mrb[28].mxu1 %vm531_vm0, %v1434_v49 }
  0x5b   :  { %676 = vmatprep.mubr.bf16.mxu0 %v1435_v50  ;;  %1341 = vmatprep.mubr.msk.bf16.mxu1 %vm531_vm0, %v1437_v51 }
  0x62   :  { %677 = vmatmul.mubr.bf16.gmra.mrb[32].mxu0 %v1438_v52  ;;  %1342 = vmatmul.mubr.msk.bf16.gmra.mrb[32].mxu1 %vm531_vm0, %v1439_v53  ;;  %v1708_v52 = vld [vmem:[%s1854_s2] ss:$0 sm:$0xff] }
  0x63   :  { %684 = vmatprep.mubr.bf16.mxu0 %v1440_v54  ;;  %1345 = vmatprep.mubr.msk.bf16.mxu1 %vm531_vm0, %v1442_v55 }
  0x6a   :  { %685 = vmatmul.mubr.bf16.gmra.mrb[36].mxu0 %v1443_v56  ;;  %1346 = vmatmul.mubr.msk.bf16.gmra.mrb[36].mxu1 %vm531_vm0, %v1444_v57 }
  0x6b   :  { %692 = vmatprep.mubr.bf16.mxu0 %v1445_v58  ;;  %1349 = vmatprep.mubr.msk.bf16.mxu1 %vm531_vm0, %v1447_v59 }
  0x72   :  { %693 = vmatmul.mubr.bf16.gmra.mrb[40].mxu0 %v1448_v60  ;;  %1350 = vmatmul.mubr.msk.bf16.gmra.mrb[40].mxu1 %vm531_vm0, %v1449_v61 }
  0x73   :  { %700 = vmatprep.mubr.bf16.mxu0 %v1450_v62  ;;  %1353 = vmatprep.mubr.msk.bf16.mxu1 %vm531_vm0, %v1452_v63 }
  0x7a   :  { %701 = vmatmul.mubr.bf16.gmra.mrb[44].mxu0 %v1453_v0  ;;  %1354 = vmatmul.mubr.msk.bf16.gmra.mrb[44].mxu1 %vm531_vm0, %v1454_v1 }
  0xf5   :  { %v1207_v2 = vpop.f32.mrb[0].mxu0  ;;  %v1279_v3 = vpop.f32.mrb[0].mxu1 }
  0xf6   :  { %v1208_v4 = vpop.f32.mrb[1].mxu0  ;;  %v1280_v5 = vpop.f32.mrb[1].mxu1 }
  0xf7   :  { %v1209_v6 = vadd.f32 %v1208_v4, %v1207_v2  ;;  %v1689_v7 = vadd.f32 %v1280_v5, %v1279_v3  ;;  %v1210_v8 = vpop.f32.mrb[2].mxu0  ;;  %v1282_v9 = vpop.f32.mrb[2].mxu1 }
  0xf8   :  { %v1211_v10 = vpop.f32.mrb[3].mxu0  ;;  %v1283_v11 = vpop.f32.mrb[3].mxu1 }
  0xf9   :  { %v1212_v12 = vadd.f32 %v1211_v10, %v1210_v8  ;;  %v1691_v13 = vadd.f32 %v1283_v11, %v1282_v9 }
  0xfd   :  { %v1213_v14 = vpop.f32.mrb[4].mxu0  ;;  %v1285_v15 = vpop.f32.mrb[4].mxu1 }
  0xfe   :  { %v1214_v16 = vpop.f32.mrb[5].mxu0  ;;  %v1286_v17 = vpop.f32.mrb[5].mxu1 }
  0xff   :  { %v1215_v18 = vadd.f32 %v1214_v16, %v1213_v14  ;;  %v1693_v19 = vadd.f32 %v1286_v17, %v1285_v15  ;;  %v1216_v20 = vpop.f32.mrb[6].mxu0  ;;  %v1288_v21 = vpop.f32.mrb[6].mxu1 }
 0x100   :  { %v1217_v22 = vpop.f32.mrb[7].mxu0  ;;  %v1289_v23 = vpop.f32.mrb[7].mxu1 }
 0x101   :  { %v1218_v24 = vadd.f32 %v1217_v22, %v1216_v20  ;;  %v1695_v25 = vadd.f32 %v1289_v23, %v1288_v21 }
 0x105   :  { %v1219_v26 = vpop.f32.mrb[8].mxu0  ;;  %v1291_v27 = vpop.f32.mrb[8].mxu1 }
 0x106   :  { %v1220_v28 = vpop.f32.mrb[9].mxu0  ;;  %v1292_v29 = vpop.f32.mrb[9].mxu1 }
 0x107   :  { %v1221_v30 = vadd.f32 %v1220_v28, %v1219_v26  ;;  %v1697_v31 = vadd.f32 %v1292_v29, %v1291_v27  ;;  %v1222_v32 = vpop.f32.mrb[10].mxu0  ;;  %v1294_v33 = vpop.f32.mrb[10].mxu1 }
 0x108   :  { %v1223_v34 = vpop.f32.mrb[11].mxu0  ;;  %v1295_v35 = vpop.f32.mrb[11].mxu1 }
 0x109   :  { %v1224_v36 = vadd.f32 %v1223_v34, %v1222_v32  ;;  %v1699_v37 = vadd.f32 %v1295_v35, %v1294_v33 }
 0x10d   :  { %v1225_v38 = vpop.f32.mrb[12].mxu0  ;;  %v1297_v39 = vpop.f32.mrb[12].mxu1 }
 0x10e   :  { %v1226_v40 = vpop.f32.mrb[13].mxu0  ;;  %v1298_v41 = vpop.f32.mrb[13].mxu1 }
 0x10f   :  { %v1227_v42 = vadd.f32 %v1226_v40, %v1225_v38  ;;  %v1701_v43 = vadd.f32 %v1298_v41, %v1297_v39  ;;  %v1228_v44 = vpop.f32.mrb[14].mxu0  ;;  %v1300_v45 = vpop.f32.mrb[14].mxu1 }
 0x110   :  { %v1229_v46 = vpop.f32.mrb[15].mxu0  ;;  %v1301_v47 = vpop.f32.mrb[15].mxu1 }
 0x111   :  { %v1230_v48 = vadd.f32 %v1229_v46, %v1228_v44  ;;  %v1703_v49 = vadd.f32 %v1301_v47, %v1300_v45 }
 0x115   :  { %v1231_v50 = vpop.f32.mrb[16].mxu0  ;;  %v1327_v51 = vpop.f32.mrb[16].mxu1 }
 0x116   :  { %v784_v53 = vadd.f32 %v1327_v51, %v1215_v18  ;;  %v1232_v54 = vpop.f32.mrb[17].mxu0  ;;  %v775_v55 = vpop.f32.mrb[17].mxu1 }
 0x117   :  { %v1233_v56 = vadd.f32 %v1232_v54, %v1231_v50  ;;  %v776_v57 = vadd.f32 %v1209_v6, %v775_v55  ;;  %v1234_v58 = vpop.f32.mrb[18].mxu0  ;;  %v1328_v59 = vpop.f32.mrb[18].mxu1 }
 0x118   :  { %v1010_v60 = vadd.f32 %v1708_v52, %v784_v53  ;;  %v787_v61 = vadd.f32 %v1328_v59, %v1218_v24  ;;  %v1235_v62 = vpop.f32.mrb[19].mxu0  ;;  %v778_v63 = vpop.f32.mrb[19].mxu1 }
 0x119   :  { %v1008_v0 = vadd.f32 %v1708_v52, %v776_v57  ;;  %v1236_v1 = vadd.f32 %v1235_v62, %v1234_v58  ;;  %v779_v2 = vadd.f32 %v1212_v12, %v778_v63 }
 0x11a   :  { %v1042_v3 = vmax.f32 %v1010_v60, 0.0  ;;  %v1011_v4 = vadd.f32 %v1708_v52, %v787_v61 }
 0x11b   :  { %v1040_v5 = vmax.f32 %v1008_v0, 0.0  ;;  %v1009_v8 = vadd.f32 %v1708_v52, %v779_v2 }
 0x11c   :  { %1074 = vst [vmem:[%s1855_s3 + $0x10] sm:$0xff] %v1042_v3  ;;  %v1043_v6 = vmax.f32 %v1011_v4, 0.0 }
 0x11d   :  { %1072 = vst [vmem:[%s1855_s3] sm:$0xff] %v1040_v5  ;;  %v1041_v9 = vmax.f32 %v1009_v8, 0.0  ;;  %v1237_v10 = vpop.f32.mrb[20].mxu0  ;;  %v1331_v11 = vpop.f32.mrb[20].mxu1 }
 0x11e   :  { %1075 = vst [vmem:[%s1855_s3 + $0x18] sm:$0xff] %v1043_v6  ;;  %v800_v12 = vadd.f32 %v1331_v11, %v1227_v42  ;;  %v1238_v14 = vpop.f32.mrb[21].mxu0  ;;  %v791_v15 = vpop.f32.mrb[21].mxu1 }
 0x11f   :  { %1073 = vst [vmem:[%s1855_s3 + $0x8] sm:$0xff] %v1041_v9  ;;  %v1239_v16 = vadd.f32 %v1238_v14, %v1237_v10  ;;  %v792_v17 = vadd.f32 %v1221_v30, %v791_v15  ;;  %v1240_v18 = vpop.f32.mrb[22].mxu0  ;;  %v1332_v20 = vpop.f32.mrb[22].mxu1 }
 0x120   :  { %v1014_v21 = vadd.f32 %v1708_v52, %v800_v12  ;;  %v803_v22 = vadd.f32 %v1332_v20, %v1230_v48  ;;  %v1241_v23 = vpop.f32.mrb[23].mxu0  ;;  %v794_v24 = vpop.f32.mrb[23].mxu1 }
 0x121   :  { %v1012_v26 = vadd.f32 %v1708_v52, %v792_v17  ;;  %v1242_v27 = vadd.f32 %v1241_v23, %v1240_v18  ;;  %v795_v28 = vadd.f32 %v1224_v36, %v794_v24 }
 0x122   :  { %v1046_v29 = vmax.f32 %v1014_v21, 0.0  ;;  %v1015_v32 = vadd.f32 %v1708_v52, %v803_v22 }
 0x123   :  { %v1044_v33 = vmax.f32 %v1012_v26, 0.0  ;;  %v1013_v34 = vadd.f32 %v1708_v52, %v795_v28 }
 0x124   :  { %1078 = vst [vmem:[%s1855_s3 + $0x30] sm:$0xff] %v1046_v29  ;;  %v1047_v30 = vmax.f32 %v1015_v32, 0.0 }
 0x125   :  { %1076 = vst [vmem:[%s1855_s3 + $0x20] sm:$0xff] %v1044_v33  ;;  %v1045_v35 = vmax.f32 %v1013_v34, 0.0  ;;  %v1243_v38 = vpop.f32.mrb[24].mxu0  ;;  %v1335_v39 = vpop.f32.mrb[24].mxu1 }
 0x126   :  { %1079 = vst [vmem:[%s1855_s3 + $0x38] sm:$0xff] %v1047_v30  ;;  %v816_v36 = vadd.f32 %v1335_v39, %v1239_v16  ;;  %v1244_v40 = vpop.f32.mrb[25].mxu0  ;;  %v807_v41 = vpop.f32.mrb[25].mxu1 }
 0x127   :  { %1077 = vst [vmem:[%s1855_s3 + $0x28] sm:$0xff] %v1045_v35  ;;  %v1245_v42 = vadd.f32 %v1244_v40, %v1243_v38  ;;  %v808_v44 = vadd.f32 %v1233_v56, %v807_v41  ;;  %v1246_v45 = vpop.f32.mrb[26].mxu0  ;;  %v1336_v46 = vpop.f32.mrb[26].mxu1 }
 0x128   :  { %v1018_v47 = vadd.f32 %v1708_v52, %v816_v36  ;;  %v819_v48 = vadd.f32 %v1336_v46, %v1242_v27  ;;  %v1247_v50 = vpop.f32.mrb[27].mxu0  ;;  %v810_v51 = vpop.f32.mrb[27].mxu1 }
 0x129   :  { %v1016_v53 = vadd.f32 %v1708_v52, %v808_v44  ;;  %v1248_v54 = vadd.f32 %v1247_v50, %v1246_v45  ;;  %v811_v55 = vadd.f32 %v1236_v1, %v810_v51 }
 0x12a   :  { %v1050_v57 = vmax.f32 %v1018_v47, 0.0  ;;  %v1019_v58 = vadd.f32 %v1708_v52, %v819_v48 }
 0x12b   :  { %v1048_v59 = vmax.f32 %v1016_v53, 0.0  ;;  %v1017_v60 = vadd.f32 %v1708_v52, %v811_v55 }
 0x12c   :  { %1082 = vst [vmem:[%s1855_s3 + $0x50] sm:$0xff] %v1050_v57  ;;  %v1051_v56 = vmax.f32 %v1019_v58, 0.0 }
 0x12d   :  { %1080 = vst [vmem:[%s1855_s3 + $0x40] sm:$0xff] %v1048_v59  ;;  %v1049_v61 = vmax.f32 %v1017_v60, 0.0  ;;  %v1249_v62 = vpop.f32.mrb[28].mxu0  ;;  %v1339_v63 = vpop.f32.mrb[28].mxu1 }
 0x12e   :  { %1083 = vst [vmem:[%s1855_s3 + $0x58] sm:$0xff] %v1051_v56  ;;  %v1250_v0 = vpop.f32.mrb[29].mxu0  ;;  %v823_v1 = vpop.f32.mrb[29].mxu1 }
 0x12f   :  { %1081 = vst [vmem:[%s1855_s3 + $0x48] sm:$0xff] %v1049_v61  ;;  %v1251_v2 = vadd.f32 %v1250_v0, %v1249_v62  ;;  %v824_v3 = vadd.f32 %v1245_v42, %v823_v1  ;;  %v1252_v4 = vpop.f32.mrb[30].mxu0  ;;  %v1340_v5 = vpop.f32.mrb[30].mxu1 }
 0x130   :  { %v1253_v8 = vpop.f32.mrb[31].mxu0  ;;  %v826_v6 = vpop.f32.mrb[31].mxu1 }
 0x131   :  { %v832_v9 = vadd.f32 %v1339_v63, %v1251_v2  ;;  %v1020_v10 = vadd.f32 %v1708_v52, %v824_v3  ;;  %v1254_v11 = vadd.f32 %v1253_v8, %v1252_v4  ;;  %v827_v12 = vadd.f32 %v1248_v54, %v826_v6 }
 0x133   :  { %v1022_v14 = vadd.f32 %v1708_v52, %v832_v9  ;;  %v1052_v15 = vmax.f32 %v1020_v10, 0.0  ;;  %v835_v16 = vadd.f32 %v1340_v5, %v1254_v11  ;;  %v1021_v17 = vadd.f32 %v1708_v52, %v827_v12 }
 0x135   :  { %v1054_v18 = vmax.f32 %v1022_v14, 0.0  ;;  %1084 = vst [vmem:[%s1855_s3 + $0x60] sm:$0xff] %v1052_v15  ;;  %v1023_v20 = vadd.f32 %v1708_v52, %v835_v16  ;;  %v1053_v21 = vmax.f32 %v1021_v17, 0.0  ;;  %v1255_v22 = vpop.f32.mrb[32].mxu0  ;;  %v1343_v23 = vpop.f32.mrb[32].mxu1 }
 0x136   :  { %v1256_v24 = vpop.f32.mrb[33].mxu0  ;;  %v839_v26 = vpop.f32.mrb[33].mxu1 }
 0x137   :  { %1086 = vst [vmem:[%s1855_s3 + $0x70] sm:$0xff] %v1054_v18  ;;  %v1055_v27 = vmax.f32 %v1023_v20, 0.0  ;;  %1085 = vst [vmem:[%s1855_s3 + $0x68] sm:$0xff] %v1053_v21  ;;  %v1257_v28 = vadd.f32 %v1256_v24, %v1255_v22  ;;  %v1258_v29 = vpop.f32.mrb[34].mxu0  ;;  %v1344_v32 = vpop.f32.mrb[34].mxu1 }
 0x138   :  { %v1259_v33 = vpop.f32.mrb[35].mxu0  ;;  %v842_v34 = vpop.f32.mrb[35].mxu1 }
 0x139   :  { %1087 = vst [vmem:[%s1855_s3 + $0x78] sm:$0xff] %v1055_v27  ;;  %v840_v30 = vadd.f32 %v1257_v28, %v839_v26  ;;  %v1260_v35 = vadd.f32 %v1259_v33, %v1258_v29 }
 0x13b   :  { %v1024_v38 = vadd.f32 %v1708_v52, %v840_v30  ;;  %v843_v39 = vadd.f32 %v1260_v35, %v842_v34 }
 0x13d   :  { %v1056_v36 = vmax.f32 %v1024_v38, 0.0  ;;  %v1025_v40 = vadd.f32 %v1708_v52, %v843_v39  ;;  %v1261_v41 = vpop.f32.mrb[36].mxu0  ;;  %v1776_v42 = vpop.f32.mrb[36].mxu1 }
 0x13e   :  { %v1262_v44 = vpop.f32.mrb[37].mxu0  ;;  %v855_v45 = vpop.f32.mrb[37].mxu1 }
 0x13f   :  { %1088 = vst [vmem:[%s1855_s3 + $0x80] sm:$0xff] %v1056_v36  ;;  %v1057_v46 = vmax.f32 %v1025_v40, 0.0  ;;  %v1263_v47 = vadd.f32 %v1262_v44, %v1261_v41  ;;  %v1264_v48 = vpop.f32.mrb[38].mxu0  ;;  %v1781_v50 = vpop.f32.mrb[38].mxu1 }
 0x140   :  { %v1265_v51 = vpop.f32.mrb[39].mxu0  ;;  %v858_v53 = vpop.f32.mrb[39].mxu1 }
 0x141   :  { %1089 = vst [vmem:[%s1855_s3 + $0x88] sm:$0xff] %v1057_v46  ;;  %v848_v54 = vadd.f32 %v1343_v23, %v1263_v47  ;;  %v1266_v55 = vadd.f32 %v1265_v51, %v1264_v48 }
 0x143   :  { %v1026_v57 = vadd.f32 %v1708_v52, %v848_v54  ;;  %v851_v58 = vadd.f32 %v1344_v32, %v1266_v55 }
 0x145   :  { %v1058_v59 = vmax.f32 %v1026_v57, 0.0  ;;  %v1027_v60 = vadd.f32 %v1708_v52, %v851_v58  ;;  %v1267_v56 = vpop.f32.mrb[40].mxu0  ;;  %v1351_v61 = vpop.f32.mrb[40].mxu1 }
 0x146   :  { %v880_v62 = vadd.f32 %v1351_v61, %v1693_v19  ;;  %v1268_v63 = vpop.f32.mrb[41].mxu0  ;;  %v871_v0 = vpop.f32.mrb[41].mxu1 }
 0x147   :  { %1090 = vst [vmem:[%s1855_s3 + $0x90] sm:$0xff] %v1058_v59  ;;  %v1059_v1 = vmax.f32 %v1027_v60, 0.0  ;;  %v1269_v2 = vadd.f32 %v1268_v63, %v1267_v56  ;;  %v872_v3 = vadd.f32 %v1689_v7, %v871_v0  ;;  %v1270_v4 = vpop.f32.mrb[42].mxu0  ;;  %v1352_v5 = vpop.f32.mrb[42].mxu1 }
 0x148   :  { %v1034_v8 = vadd.f32 %v1708_v52, %v880_v62  ;;  %v883_v6 = vadd.f32 %v1352_v5, %v1695_v25  ;;  %v1271_v9 = vpop.f32.mrb[43].mxu0  ;;  %v874_v10 = vpop.f32.mrb[43].mxu1 }
 0x149   :  { %1091 = vst [vmem:[%s1855_s3 + $0x98] sm:$0xff] %v1059_v1  ;;  %v856_v19 = vadd.f32 %v1269_v2, %v855_v45  ;;  %v1032_v11 = vadd.f32 %v1708_v52, %v872_v3  ;;  %v1272_v12 = vadd.f32 %v1271_v9, %v1270_v4  ;;  %v875_v14 = vadd.f32 %v1691_v13, %v874_v10 }
 0x14a   :  { %v1066_v15 = vmax.f32 %v1034_v8, 0.0  ;;  %v1035_v7 = vadd.f32 %v1708_v52, %v883_v6 }
 0x14b   :  { %v1028_v16 = vadd.f32 %v1708_v52, %v856_v19  ;;  %v1064_v17 = vmax.f32 %v1032_v11, 0.0  ;;  %v859_v18 = vadd.f32 %v1272_v12, %v858_v53  ;;  %v1033_v25 = vadd.f32 %v1708_v52, %v875_v14 }
 0x14c   :  { %1098 = vst [vmem:[%s1855_s3 + $0xd0] sm:$0xff] %v1066_v15  ;;  %v1067_v20 = vmax.f32 %v1035_v7, 0.0 }
 0x14d   :  { %v1060_v21 = vmax.f32 %v1028_v16, 0.0  ;;  %1096 = vst [vmem:[%s1855_s3 + $0xc0] sm:$0xff] %v1064_v17  ;;  %v1029_v13 = vadd.f32 %v1708_v52, %v859_v18  ;;  %v1065_v22 = vmax.f32 %v1033_v25, 0.0  ;;  %v1273_v23 = vpop.f32.mrb[44].mxu0  ;;  %v1355_v24 = vpop.f32.mrb[44].mxu1 }
 0x14e   :  { %1099 = vst [vmem:[%s1855_s3 + $0xd8] sm:$0xff] %v1067_v20  ;;  %v896_v26 = vadd.f32 %v1355_v24, %v1701_v43  ;;  %v1274_v27 = vpop.f32.mrb[45].mxu0  ;;  %v887_v28 = vpop.f32.mrb[45].mxu1 }
 0x14f   :  { %1092 = vst [vmem:[%s1855_s3 + $0xa0] sm:$0xff] %v1060_v21  ;;  %v1061_v29 = vmax.f32 %v1029_v13, 0.0  ;;  %1097 = vst [vmem:[%s1855_s3 + $0xc8] sm:$0xff] %v1065_v22  ;;  %v1275_v32 = vadd.f32 %v1274_v27, %v1273_v23  ;;  %v888_v33 = vadd.f32 %v1697_v31, %v887_v28  ;;  %v1276_v34 = vpop.f32.mrb[46].mxu0  ;;  %v1356_v30 = vpop.f32.mrb[46].mxu1 }
 0x150   :  { %v1038_v35 = vadd.f32 %v1708_v52, %v896_v26  ;;  %v899_v43 = vadd.f32 %v1356_v30, %v1703_v49  ;;  %v1277_v38 = vpop.f32.mrb[47].mxu0  ;;  %v890_v39 = vpop.f32.mrb[47].mxu1 }
 0x151   :  { %1093 = vst [vmem:[%s1855_s3 + $0xa8] sm:$0xff] %v1061_v29  ;;  %v864_v36 = vadd.f32 %v1776_v42, %v1275_v32  ;;  %v1036_v40 = vadd.f32 %v1708_v52, %v888_v33  ;;  %v1278_v41 = vadd.f32 %v1277_v38, %v1276_v34  ;;  %v891_v44 = vadd.f32 %v1699_v37, %v890_v39 }
 0x152   :  { %v1070_v31 = vmax.f32 %v1038_v35, 0.0  ;;  %v1039_v45 = vadd.f32 %v1708_v52, %v899_v43 }
 0x153   :  { %v1030_v46 = vadd.f32 %v1708_v52, %v864_v36  ;;  %v1068_v47 = vmax.f32 %v1036_v40, 0.0  ;;  %v867_v49 = vadd.f32 %v1781_v50, %v1278_v41  ;;  %v1037_v48 = vadd.f32 %v1708_v52, %v891_v44 }
 0x154   :  { %1102 = vst [vmem:[%s1855_s3 + $0xf0] sm:$0xff] %v1070_v31  ;;  %v1071_v42 = vmax.f32 %v1039_v45, 0.0 }
 0x155   :  { %v1062_v51 = vmax.f32 %v1030_v46, 0.0  ;;  %1100 = vst [vmem:[%s1855_s3 + $0xe0] sm:$0xff] %v1068_v47  ;;  %v1031_v37 = vadd.f32 %v1708_v52, %v867_v49  ;;  %v1069_v53 = vmax.f32 %v1037_v48, 0.0 }
 0x156   :  { %1103 = vst [vmem:[%s1855_s3 + $0xf8] sm:$0xff] %v1071_v42 }
 0x157   :  { %1094 = vst [vmem:[%s1855_s3 + $0xb0] sm:$0xff] %v1062_v51  ;;  %v1063_v50 = vmax.f32 %v1031_v37, 0.0  ;;  %1101 = vst [vmem:[%s1855_s3 + $0xe8] sm:$0xff] %v1069_v53 }
 0x159   :  { %1095 = vst [vmem:[%s1855_s3 + $0xb8] sm:$0xff] %v1063_v50 }

// kernel: forward.24
= control target key start
LH: loop header
LB: loop body
LE: loop exit
PB: predicated region body
PF: predicated region fallthrough
CT: control target
= control target key end

     0   :  { %v147_v0 = vmov 0.0   ;;  %vm148_vm0 = vmmov 0   ;;  %vm54_vm1 = vcmask 523264   ;;  %s190_s1 = inlined_call_operand.vmem [shape: bf16[64,128], index: 1, kind: input, shape index: {}]   ;;  %s191_s0 = inlined_call_operand.vmem [shape: bf16[8,64], index: 0, kind: input, shape index: {}]   ;;  %s192_s2 = inlined_call_operand.vmem [shape: f32[1,128], index: 2, kind: input, shape index: {}]   ;;  %s193_s3 = inlined_call_operand.vmem [shape: f32[8,128], index: 3, kind: output, shape index: {}]  }
   0x1   :  { %129 = vmatprep.subr.bf16.mxu0 %v147_v0  ;;  %v143_v1 = vld [vmem:[%s190_s1] sm:$0xff]   ;;  %137 = vmatprep.mubr.msk.bf16.mxu0 %vm148_vm0, %v147_v0  ;;  %v144_v2 = vld [vmem:[%s190_s1 + $0x8] sm:$0xff]   ;;  %v145_v3 = vld [vmem:[%s190_s1 + $0x10] sm:$0xff]  }
   0x2   :  { %130 = vmatpush3.bf16.msra.mxu0 %v143_v1  ;;  %v146_v4 = vld [vmem:[%s190_s1 + $0x18] sm:$0xff]   ;;  %v21_v5 = vld [vmem:[%s191_s0] sm:$0xf] }
   0x3   :  { %131 = vmatprep.subr.bf16.mxu0 %v147_v0  ;;  %v123_v6 = vld [vmem:[%s192_s2] ss:$0 sm:$0xff] }
   0x6   :  { %132 = vmatpush3.bf16.msra.mxu0 %v144_v2 }
   0x7   :  { %133 = vmatprep.subr.bf16.mxu0 %v147_v0 }
   0xa   :  { %134 = vmatpush3.bf16.msra.mxu0 %v145_v3 }
   0xb   :  { %135 = vmatprep.subr.bf16.mxu0 %v147_v0 }
   0xe   :  { %136 = vmatpush3.bf16.msra.mxu0 %v146_v4 }
  0x11   :  { %138 = vmatmul.mubr.msk.bf16.vlgmr.msra.gmra.mrb[0].mxu0 %vm54_vm1, %v21_v5 }
  0xe4   :  { %v92_v7 = vpop.f32.mrb[0].mxu0 }
  0xe5   :  { %v111_v8 = vadd.f32 %v123_v6, %v92_v7  ;;  %v139_v9 = vpop.f32.mrb[1].mxu0 }
  0xe6   :  { %v95_v10 = vpop.f32.mrb[2].mxu0 }
  0xe7   :  { %v112_v11 = vmax.f32 %v111_v8, 0.0  ;;  %v140_v12 = vpop.f32.mrb[3].mxu0 }
  0xe9   :  { %113 = vst [vmem:[%s193_s3] sm:$0xff] %v112_v11 }

// kernel: forward.25
= control target key start
LH: loop header
LB: loop body
LE: loop exit
PB: predicated region body
PF: predicated region fallthrough
CT: control target
= control target key end

     0   :  { %v131_v0 = vmov 0.0   ;;  %vm132_vm0 = vmmov 0   ;;  %vm38_vm1 = vcmask 261120   ;;  %s168_s1 = inlined_call_operand.vmem [shape: bf16[32,128], index: 1, kind: input, shape index: {}]   ;;  %s169_s0 = inlined_call_operand.vmem [shape: bf16[8,32], index: 0, kind: input, shape index: {}]   ;;  %s170_s2 = inlined_call_operand.vmem [shape: f32[1,128], index: 2, kind: input, shape index: {}]   ;;  %s171_s3 = inlined_call_operand.vmem [shape: f32[8,128], index: 3, kind: output, shape index: {}]  }
   0x1   :  { %115 = vmatprep.subr.bf16.mxu0 %v131_v0  ;;  %v125_v1 = vld [vmem:[%s168_s1] sm:$0xff]   ;;  %119 = vmatprep.mubr.msk.bf16.mxu0 %vm132_vm0, %v131_v0  ;;  %v126_v2 = vld [vmem:[%s168_s1 + $0x8] sm:$0xff]  }
   0x2   :  { %116 = vmatpush3.bf16.msra.mxu0 %v125_v1  ;;  %v21_v3 = vld [vmem:[%s169_s0] sm:$0xf] }
   0x3   :  { %117 = vmatprep.subr.bf16.mxu0 %v131_v0  ;;  %v110_v4 = vld [vmem:[%s170_s2] ss:$0 sm:$0xff] }
   0x6   :  { %118 = vmatpush3.bf16.msra.mxu0 %v126_v2 }
   0x9   :  { %120 = vmatmul.mubr.msk.bf16.vlgmr.msra.gmra.mrb[0].mxu0 %vm38_vm1, %v21_v3 }
  0xdc   :  { %v76_v5 = vpop.f32.mrb[0].mxu0 }
  0xdd   :  { %v95_v6 = vadd.f32 %v110_v4, %v76_v5  ;;  %v121_v7 = vpop.f32.mrb[1].mxu0 }
  0xde   :  { %v79_v8 = vpop.f32.mrb[2].mxu0 }
  0xdf   :  { %v111_v9 = vmul.f32 -1.442695, %v95_v6  ;;  %v122_v10 = vpop.f32.mrb[3].mxu0 }
  0xe1   :  { %127 = vpow2.f32 %v111_v9 }
  0xeb   :  { %v128_v11 = vpop.eup %127 }
  0xec   :  { %v99_v12 = vadd.f32 1.0, %v128_v11 }
  0xee   :  { %129 = vrcp.f32 %v99_v12 }
  0xf8   :  { %v130_v13 = vpop.eup %129 }
  0xf9   :  { %102 = vst [vmem:[%s171_s3] sm:$0xff] %v130_v13 }

// kernel: forward.32
= control target key start
LH: loop header
LB: loop body
LE: loop exit
PB: predicated region body
PF: predicated region fallthrough
CT: control target
= control target key end

     0   :  { %v251_v1 = vmov 0   ;;  %vm97_vm0 = vcmask 523264   ;;  %v186_v11 = vlaneseq  ;;  %s329_s1 = inlined_call_operand.vmem [shape: bf16[64,256], index: 1, kind: input, shape index: {}]   ;;  %s330_s0 = inlined_call_operand.vmem [shape: bf16[32,64], index: 0, kind: input, shape index: {}]   ;;  %s331_s2 = inlined_call_operand.vmem [shape: f32[1,256], index: 2, kind: input, shape index: {}]   ;;  %s332_s3 = inlined_call_operand.vmem [shape: f32[32,256], index: 3, kind: output, shape index: {}]  }
   0x1   :  { %v237_v0 = vld [vmem:[%s329_s1 + $0x4] ss:$8 sps:$4 sm:$0xff]   ;;  %136 = vmatprep.mubr.bf16.mxu0 %v251_v1  ;;  %146 = vmatprep.mubr.bf16.mxu1 %v251_v1  ;;  %v239_v2 = vld [vmem:[%s329_s1] ss:$8 sps:$4 sm:$0xff]   ;;  %v240_v3 = vld [vmem:[%s329_s1 + $0x14] ss:$8 sps:$4 sm:$0xff]  }
   0x2   :  { %104 = vmatprep.subr.bf16.mxu0 %v237_v0  ;;  %228 = vmatprep.subr.bf16.mxu1 %v237_v0  ;;  %v242_v4 = vld [vmem:[%s329_s1 + $0x10] ss:$8 sps:$4 sm:$0xff]   ;;  %v243_v5 = vld [vmem:[%s329_s1 + $0x24] ss:$8 sps:$4 sm:$0xff]   ;;  %v245_v6 = vld [vmem:[%s329_s1 + $0x20] ss:$8 sps:$4 sm:$0xff]  }
   0x3   :  { %105 = vmatpush1.bf16.msra.mxu0 %v239_v2  ;;  %232 = vmatpush1.bf16.msra.mxu1 %v239_v2  ;;  %v246_v7 = vld [vmem:[%s329_s1 + $0x34] ss:$8 sps:$4 sm:$0xff]   ;;  %v248_v8 = vld [vmem:[%s329_s1 + $0x30] ss:$8 sps:$4 sm:$0xff]   ;;  %v249_v9 = vld [vmem:[%s330_s0] sm:$0xff]   ;;  %v187_v12 = vshrl.u32 %v186_v11, 7 }
   0x4   :  { %106 = vmatprep.subr.bf16.mxu0 %v240_v3  ;;  %229 = vmatprep.subr.bf16.mxu1 %v240_v3  ;;  %v250_v10 = vld [vmem:[%s330_s0 + $0x8] sm:$0xff]   ;;  %v184_v14 = vld [vmem:[%s331_s2] sm:$0x3] }
   0x5   :  { %v188_v13 = vsub.s32 0, %v187_v12  ;;  %v192_v15 = vsub.s32 1, %v187_v12 }
   0x7   :  { %107 = vmatpush1.bf16.msra.mxu0 %v242_v4  ;;  %233 = vmatpush1.bf16.msra.mxu1 %v242_v4  ;;  %v189_v16 = vrot.slane %v184_v14, %v188_v13  ;;  %v193_v17 = vrot.slane %v184_v14, %v192_v15 }
   0x8   :  { %108 = vmatprep.subr.bf16.mxu0 %v243_v5  ;;  %230 = vmatprep.subr.bf16.mxu1 %v243_v5 }
   0xb   :  { %109 = vmatpush1.bf16.msra.mxu0 %v245_v6  ;;  %234 = vmatpush1.bf16.msra.mxu1 %v245_v6 }
   0xc   :  { %110 = vmatprep.subr.bf16.mxu0 %v246_v7  ;;  %231 = vmatprep.subr.bf16.mxu1 %v246_v7 }
   0xf   :  { %111 = vmatpush1.bf16.msra.mxu0 %v248_v8  ;;  %235 = vmatpush1.bf16.msra.mxu1 %v248_v8 }
  0x12   :  { %226 = vmatmul.mubr.msk.bf16.vlgmr.msra.gmra.mrb[0].mxu0 %vm97_vm0, %v249_v9  ;;  %227 = vmatmul.mubr.msk.bf16.vlgmr.msra.gmra.mrb[0].mxu1 %vm97_vm0, %v250_v10 }
  0xe5   :  { %v138_v18 = vpop.f32.mrb[0].mxu0  ;;  %v148_v19 = vpop.f32.mrb[0].mxu1 }
  0xe6   :  { %v196_v20 = vadd.f32 %v189_v16, %v138_v18  ;;  %v200_v21 = vadd.f32 %v189_v16, %v148_v19  ;;  %v140_v22 = vpop.f32.mrb[1].mxu0  ;;  %v150_v23 = vpop.f32.mrb[1].mxu1 }
  0xe7   :  { %v197_v24 = vadd.f32 %v193_v17, %v140_v22  ;;  %v201_v25 = vadd.f32 %v193_v17, %v150_v23  ;;  %v142_v26 = vpop.f32.mrb[2].mxu0  ;;  %v152_v27 = vpop.f32.mrb[2].mxu1 }
  0xe8   :  { %204 = vst [vmem:[%s332_s3] sm:$0xff] %v196_v20  ;;  %208 = vst [vmem:[%s332_s3 + $0x20] sm:$0xff] %v200_v21  ;;  %v198_v28 = vadd.f32 %v189_v16, %v142_v26  ;;  %v202_v29 = vadd.f32 %v189_v16, %v152_v27  ;;  %v144_v30 = vpop.f32.mrb[3].mxu0  ;;  %v154_v31 = vpop.f32.mrb[3].mxu1 }
  0xe9   :  { %205 = vst [vmem:[%s332_s3 + $0x8] sm:$0xff] %v197_v24  ;;  %209 = vst [vmem:[%s332_s3 + $0x28] sm:$0xff] %v201_v25  ;;  %v199_v32 = vadd.f32 %v193_v17, %v144_v30  ;;  %v203_v33 = vadd.f32 %v193_v17, %v154_v31 }
  0xea   :  { %206 = vst [vmem:[%s332_s3 + $0x10] sm:$0xff] %v198_v28  ;;  %210 = vst [vmem:[%s332_s3 + $0x30] sm:$0xff] %v202_v29 }
  0xeb   :  { %207 = vst [vmem:[%s332_s3 + $0x18] sm:$0xff] %v199_v32  ;;  %211 = vst [vmem:[%s332_s3 + $0x38] sm:$0xff] %v203_v33 }

// kernel: forward.34
= control target key start
LH: loop header
LB: loop body
LE: loop exit
PB: predicated region body
PF: predicated region fallthrough
CT: control target
= control target key end

     0   :  { %vm73_vm0 = vcmask 523264   ;;  %s249_s1 = inlined_call_operand.vmem [shape: bf16[64,128], index: 1, kind: input, shape index: {}]   ;;  %s250_s0 = inlined_call_operand.vmem [shape: bf16[32,64], index: 0, kind: input, shape index: {}]   ;;  %s251_s2 = inlined_call_operand.vmem [shape: f32[1,128], index: 2, kind: input, shape index: {}]   ;;  %s252_s3 = inlined_call_operand.vmem [shape: f32[32,128], index: 3, kind: output, shape index: {}]  }
   0x1   :  { %v190_v0 = vld [vmem:[%s249_s1] sm:$0xff]   ;;  %v191_v1 = vld [vmem:[%s249_s1 + $0x8] sm:$0xff]   ;;  %v192_v2 = vld [vmem:[%s249_s1 + $0x10] sm:$0xff]  }
   0x2   :  { %178 = vmatprep.subr.bf16.mxu0 %v190_v0  ;;  %v194_v3 = vld [vmem:[%s250_s0] sm:$0xff]   ;;  %v193_v4 = vld [vmem:[%s249_s1 + $0x18] sm:$0xff]   ;;  %v195_v5 = vld [vmem:[%s250_s0 + $0x8] sm:$0xff]  }
   0x3   :  { %179 = vmatpush3.bf16.msra.mxu0 %v190_v0  ;;  %186 = vmatprep.mubr.msk.bf16.mxu0 %vm73_vm0, %v194_v3  ;;  %v171_v6 = vld [vmem:[%s251_s2] ss:$0 sm:$0xff] }
   0x4   :  { %180 = vmatprep.subr.bf16.mxu0 %v191_v1 }
   0x7   :  { %181 = vmatpush3.bf16.msra.mxu0 %v191_v1 }
   0x8   :  { %182 = vmatprep.subr.bf16.mxu0 %v192_v2 }
   0xb   :  { %183 = vmatpush3.bf16.msra.mxu0 %v192_v2 }
   0xc   :  { %184 = vmatprep.subr.bf16.mxu0 %v193_v4 }
   0xf   :  { %185 = vmatpush3.bf16.msra.mxu0 %v193_v4 }
  0x12   :  { %187 = vmatmul.mubr.msk.bf16.vlgmr.msra.gmra.mrb[0].mxu0 %vm73_vm0, %v195_v5 }
  0xe5   :  { %v188_v7 = vpop.f32.mrb[0].mxu0 }
  0xe6   :  { %v153_v8 = vadd.f32 %v188_v7, %v171_v6  ;;  %v114_v9 = vpop.f32.mrb[1].mxu0 }
  0xe7   :  { %v151_v10 = vadd.f32 %v171_v6, %v114_v9  ;;  %v189_v11 = vpop.f32.mrb[2].mxu0 }
  0xe8   :  { %157 = vst [vmem:[%s252_s3 + $0x10] sm:$0xff] %v153_v8  ;;  %v154_v12 = vadd.f32 %v189_v11, %v171_v6  ;;  %v117_v13 = vpop.f32.mrb[3].mxu0 }
  0xe9   :  { %155 = vst [vmem:[%s252_s3] sm:$0xff] %v151_v10  ;;  %v152_v14 = vadd.f32 %v171_v6, %v117_v13 }
  0xea   :  { %158 = vst [vmem:[%s252_s3 + $0x18] sm:$0xff] %v154_v12 }
  0xeb   :  { %156 = vst [vmem:[%s252_s3 + $0x8] sm:$0xff] %v152_v14 }

// kernel: forward.35
= control target key start
LH: loop header
LB: loop body
LE: loop exit
PB: predicated region body
PF: predicated region fallthrough
CT: control target
= control target key end

     0   :  { %v213_v1 = vmov 0   ;;  %vm73_vm0 = vcmask 261120   ;;  %v162_v7 = vlaneseq  ;;  %s279_s1 = inlined_call_operand.vmem [shape: bf16[32,256], index: 1, kind: input, shape index: {}]   ;;  %s280_s0 = inlined_call_operand.vmem [shape: bf16[32,32], index: 0, kind: input, shape index: {}]   ;;  %s281_s2 = inlined_call_operand.vmem [shape: f32[1,256], index: 2, kind: input, shape index: {}]   ;;  %s282_s3 = inlined_call_operand.vmem [shape: f32[32,256], index: 3, kind: output, shape index: {}]  }
   0x1   :  { %v205_v0 = vld [vmem:[%s279_s1 + $0x4] ss:$8 sps:$4 sm:$0xff]   ;;  %112 = vmatprep.mubr.bf16.mxu0 %v213_v1  ;;  %122 = vmatprep.mubr.bf16.mxu1 %v213_v1  ;;  %v207_v2 = vld [vmem:[%s279_s1] ss:$8 sps:$4 sm:$0xff]   ;;  %v208_v3 = vld [vmem:[%s279_s1 + $0x14] ss:$8 sps:$4 sm:$0xff]  }
   0x2   :  { %80 = vmatprep.subr.bf16.mxu0 %v205_v0  ;;  %200 = vmatprep.subr.bf16.mxu1 %v205_v0  ;;  %v210_v4 = vld [vmem:[%s279_s1 + $0x10] ss:$8 sps:$4 sm:$0xff]   ;;  %v211_v5 = vld [vmem:[%s280_s0] sm:$0xff]   ;;  %v212_v6 = vld [vmem:[%s280_s0 + $0x8] sm:$0xff]   ;;  %v163_v8 = vshrl.u32 %v162_v7, 7 }
   0x3   :  { %81 = vmatpush1.bf16.msra.mxu0 %v207_v2  ;;  %202 = vmatpush1.bf16.msra.mxu1 %v207_v2  ;;  %v160_v10 = vld [vmem:[%s281_s2] sm:$0x3] }
   0x4   :  { %82 = vmatprep.subr.bf16.mxu0 %v208_v3  ;;  %201 = vmatprep.subr.bf16.mxu1 %v208_v3  ;;  %v164_v9 = vsub.s32 0, %v163_v8  ;;  %v168_v11 = vsub.s32 1, %v163_v8 }
   0x6   :  { %v165_v12 = vrot.slane %v160_v10, %v164_v9  ;;  %v169_v13 = vrot.slane %v160_v10, %v168_v11 }
   0x7   :  { %83 = vmatpush1.bf16.msra.mxu0 %v210_v4  ;;  %203 = vmatpush1.bf16.msra.mxu1 %v210_v4 }
   0xa   :  { %198 = vmatmul.mubr.msk.bf16.vlgmr.msra.gmra.mrb[0].mxu0 %vm73_vm0, %v211_v5  ;;  %199 = vmatmul.mubr.msk.bf16.vlgmr.msra.gmra.mrb[0].mxu1 %vm73_vm0, %v212_v6 }
  0xdd   :  { %v114_v14 = vpop.f32.mrb[0].mxu0  ;;  %v124_v15 = vpop.f32.mrb[0].mxu1 }
  0xde   :  { %v172_v16 = vadd.f32 %v165_v12, %v114_v14  ;;  %v176_v17 = vadd.f32 %v165_v12, %v124_v15  ;;  %v116_v18 = vpop.f32.mrb[1].mxu0  ;;  %v126_v19 = vpop.f32.mrb[1].mxu1 }
  0xdf   :  { %v173_v20 = vadd.f32 %v169_v13, %v116_v18  ;;  %v177_v21 = vadd.f32 %v169_v13, %v126_v19  ;;  %v118_v22 = vpop.f32.mrb[2].mxu0  ;;  %v128_v23 = vpop.f32.mrb[2].mxu1 }
  0xe0   :  { %180 = vst [vmem:[%s282_s3] sm:$0xff] %v172_v16  ;;  %184 = vst [vmem:[%s282_s3 + $0x20] sm:$0xff] %v176_v17  ;;  %v174_v24 = vadd.f32 %v165_v12, %v118_v22  ;;  %v178_v25 = vadd.f32 %v165_v12, %v128_v23  ;;  %v120_v26 = vpop.f32.mrb[3].mxu0  ;;  %v130_v27 = vpop.f32.mrb[3].mxu1 }
  0xe1   :  { %181 = vst [vmem:[%s282_s3 + $0x8] sm:$0xff] %v173_v20  ;;  %185 = vst [vmem:[%s282_s3 + $0x28] sm:$0xff] %v177_v21  ;;  %v175_v28 = vadd.f32 %v169_v13, %v120_v26  ;;  %v179_v29 = vadd.f32 %v169_v13, %v130_v27 }
  0xe2   :  { %182 = vst [vmem:[%s282_s3 + $0x10] sm:$0xff] %v174_v24  ;;  %186 = vst [vmem:[%s282_s3 + $0x30] sm:$0xff] %v178_v25 }
  0xe3   :  { %183 = vst [vmem:[%s282_s3 + $0x18] sm:$0xff] %v175_v28  ;;  %187 = vst [vmem:[%s282_s3 + $0x38] sm:$0xff] %v179_v29 }

// kernel: forward.43
= control target key start
LH: loop header
LB: loop body
LE: loop exit
PB: predicated region body
PF: predicated region fallthrough
CT: control target
= control target key end

     0   :  { %vm79_vm0 = vcmask 261120   ;;  %s315_s1 = inlined_call_operand.vmem [shape: bf16[32,128], index: 1, kind: input, shape index: {}]   ;;  %s316_s0 = inlined_call_operand.vmem [shape: bf16[64,32], index: 0, kind: input, shape index: {}]   ;;  %s317_s2 = inlined_call_operand.vmem [shape: f32[1,128], index: 2, kind: input, shape index: {}]   ;;  %s318_s3 = inlined_call_operand.vmem [shape: f32[64,128], index: 3, kind: output, shape index: {}]  }
   0x1   :  { %v244_v0 = vld [vmem:[%s315_s1] sm:$0xff]   ;;  %v245_v1 = vld [vmem:[%s315_s1 + $0x8] sm:$0xff]   ;;  %v247_v3 = vld [vmem:[%s316_s0 + $0x10] sm:$0xff]  }
   0x2   :  { %228 = vmatprep.subr.bf16.mxu0 %v244_v0  ;;  %240 = vmatprep.subr.bf16.mxu1 %v244_v0  ;;  %v246_v2 = vld [vmem:[%s316_s0] sm:$0xff]   ;;  %v248_v4 = vld [vmem:[%s316_s0 + $0x8] sm:$0xff]   ;;  %v249_v5 = vld [vmem:[%s316_s0 + $0x18] sm:$0xff]  }
   0x3   :  { %229 = vmatpush3.bf16.msra.mxu0 %v244_v0  ;;  %242 = vmatpush3.bf16.msra.mxu1 %v244_v0  ;;  %v221_v6 = vld [vmem:[%s317_s2] ss:$0 sm:$0xff] }
   0x4   :  { %230 = vmatprep.subr.bf16.mxu0 %v245_v1  ;;  %241 = vmatprep.subr.bf16.mxu1 %v245_v1 }
   0x5   :  { %232 = vmatprep.mubr.msk.bf16.mxu0 %vm79_vm0, %v246_v2  ;;  %236 = vmatprep.mubr.msk.bf16.mxu1 %vm79_vm0, %v247_v3 }
   0x7   :  { %231 = vmatpush3.bf16.msra.mxu0 %v245_v1  ;;  %243 = vmatpush3.bf16.msra.mxu1 %v245_v1 }
   0xa   :  { %233 = vmatmul.mubr.msk.bf16.vlgmr.msra.gmra.mrb[0].mxu0 %vm79_vm0, %v248_v4  ;;  %237 = vmatmul.mubr.msk.bf16.vlgmr.msra.gmra.mrb[0].mxu1 %vm79_vm0, %v249_v5 }
  0xdd   :  { %v234_v7 = vpop.f32.mrb[0].mxu0  ;;  %v238_v8 = vpop.f32.mrb[0].mxu1 }
  0xde   :  { %v193_v9 = vadd.f32 %v234_v7, %v221_v6  ;;  %v197_v10 = vadd.f32 %v238_v8, %v221_v6  ;;  %v126_v11 = vpop.f32.mrb[1].mxu0  ;;  %v142_v12 = vpop.f32.mrb[1].mxu1 }
  0xdf   :  { %v191_v13 = vadd.f32 %v221_v6, %v126_v11  ;;  %v195_v14 = vadd.f32 %v221_v6, %v142_v12  ;;  %v235_v15 = vpop.f32.mrb[2].mxu0  ;;  %v239_v16 = vpop.f32.mrb[2].mxu1 }
  0xe0   :  { %201 = vst [vmem:[%s318_s3 + $0x10] sm:$0xff] %v193_v9  ;;  %205 = vst [vmem:[%s318_s3 + $0x30] sm:$0xff] %v197_v10  ;;  %v194_v17 = vadd.f32 %v235_v15, %v221_v6  ;;  %v198_v18 = vadd.f32 %v239_v16, %v221_v6  ;;  %v129_v19 = vpop.f32.mrb[3].mxu0  ;;  %v145_v20 = vpop.f32.mrb[3].mxu1 }
  0xe1   :  { %199 = vst [vmem:[%s318_s3] sm:$0xff] %v191_v13  ;;  %203 = vst [vmem:[%s318_s3 + $0x20] sm:$0xff] %v195_v14  ;;  %v192_v21 = vadd.f32 %v221_v6, %v129_v19  ;;  %v196_v22 = vadd.f32 %v221_v6, %v145_v20 }
  0xe2   :  { %202 = vst [vmem:[%s318_s3 + $0x18] sm:$0xff] %v194_v17  ;;  %206 = vst [vmem:[%s318_s3 + $0x38] sm:$0xff] %v198_v18 }
  0xe3   :  { %200 = vst [vmem:[%s318_s3 + $0x8] sm:$0xff] %v192_v21  ;;  %204 = vst [vmem:[%s318_s3 + $0x28] sm:$0xff] %v196_v22 }

// kernel: forward.33
= control target key start
LH: loop header
LB: loop body
LE: loop exit
PB: predicated region body
PF: predicated region fallthrough
CT: control target
= control target key end

     0   :  { %v1276_v3 = vmov 0.0   ;;  %s1277_s18 = smov 64   ;;  %vm143_vm0 = vcmask 257024   ;;  %vm30_vm1 = vcmask 523264   ;;  %s1278_s20 = smov 96   ;;  %s1593_s1 = inlined_call_operand.vmem [shape: f32[64,256], index: 1, kind: input, shape index: {}]   ;;  %s1594_s0 = inlined_call_operand.vmem [shape: f32[8,4,256], index: 0, kind: input, shape index: {}]   ;;  %s1595_s2 = inlined_call_operand.vmem [shape: f32[8,4,32], index: 2, kind: output, shape index: {0}]   ;;  %s1596_s3 = inlined_call_operand.vmem [shape: f32[8,4,32], index: 3, kind: output, shape index: {1}]  }
   0x1   :  { %v14_v0 = vld [vmem:[%s1593_s1 + $0x8] sm:$0xff]  ;;  %v16_v1 = vld [vmem:[%s1593_s1 + $0x18] sm:$0xff]  ;;  %v13_v2 = vld [vmem:[%s1593_s1] sm:$0xff]  ;;  %98 = vmatprep.mubr.f32.mxu0 %v1276_v3  ;;  %219 = vmatprep.mubr.f32.mxu1 %v1276_v3 }
   0x2   :  { %v1310_v4 = vpack.c.bf16 %v16_v1, %v14_v0  ;;  %v15_v5 = vld [vmem:[%s1593_s1 + $0x10] sm:$0xff]  ;;  %v18_v6 = vld [vmem:[%s1593_s1 + $0x28] sm:$0xff]  ;;  %v20_v7 = vld [vmem:[%s1593_s1 + $0x38] sm:$0xff] }
   0x3   :  { %v1321_v8 = vpack.c.bf16 %v15_v5, %v13_v2  ;;  %v1323_v9 = vpack.c.bf16 %v20_v7, %v18_v6  ;;  %v17_v10 = vld [vmem:[%s1593_s1 + $0x20] sm:$0xff]  ;;  %v19_v11 = vld [vmem:[%s1593_s1 + $0x30] sm:$0xff]  ;;  %v22_v12 = vld [vmem:[%s1593_s1 + $0x48] sm:$0xff] }
   0x4   :  { %1050 = vmatprep.subr.bf16.mxu0 %v1310_v4  ;;  %v24_v13 = vld [vmem:[%s1593_s1 + $0x58] sm:$0xff]  ;;  %1066 = vmatprep.subr.bf16.mxu1 %v1310_v4  ;;  %v1340_v14 = vpack.c.bf16 %v19_v11, %v17_v10  ;;  %v21_v16 = vld [vmem:[%s1593_s1 + $0x40] sm:$0xff]  ;;  %v23_v17 = vld [vmem:[%s1593_s1 + $0x50] sm:$0xff] }
   0x5   :  { %1052 = vmatpush1.bf16.msra.mxu0 %v1321_v8  ;;  %1068 = vmatpush1.bf16.msra.mxu1 %v1321_v8  ;;  %v1344_v15 = vpack.c.bf16 %v24_v13, %v22_v12  ;;  %v26_v18 = vld [vmem:[%s1593_s1 + $0x68] sm:$0xff]  ;;  %v28_v19 = vld [vmem:[%s1593_s1 + $0x78] sm:$0xff]  ;;  %v1360_v20 = vpack.c.bf16 %v23_v17, %v21_v16  ;;  %v25_v22 = vld [vmem:[%s1593_s1 + $0x60] sm:$0xff] }
   0x6   :  { %1054 = vmatprep.subr.bf16.mxu0 %v1323_v9  ;;  %1070 = vmatprep.subr.bf16.mxu1 %v1323_v9  ;;  %v1364_v21 = vpack.c.bf16 %v28_v19, %v26_v18  ;;  %v27_v23 = vld [vmem:[%s1593_s1 + $0x70] sm:$0xff]  ;;  %v29_v26 = vld [vmem:[%s1594_s0] sm:$0xff]  ;;  %v1008_v50 = vld [vmem:[%s1594_s0 + $0x8] sm:$0xff] }
   0x7   :  { %v1374_v24 = vpack.c.bf16 %v27_v23, %v25_v22  ;;  %v1014_v16 = vld [vmem:[%s1594_s0 + $0x10] sm:$0xff] }
   0x9   :  { %1056 = vmatpush1.bf16.msra.mxu0 %v1340_v14  ;;  %1072 = vmatpush1.bf16.msra.mxu1 %v1340_v14 }
   0xa   :  { %1058 = vmatprep.subr.bf16.mxu0 %v1344_v15  ;;  %1074 = vmatprep.subr.bf16.mxu1 %v1344_v15 }
   0xd   :  { %1060 = vmatpush1.bf16.msra.mxu0 %v1360_v20  ;;  %1076 = vmatpush1.bf16.msra.mxu1 %v1360_v20 }
   0xe   :  { %1062 = vmatprep.subr.bf16.mxu0 %v1364_v21  ;;  %1078 = vmatprep.subr.bf16.mxu1 %v1364_v21 }
  0x11   :  { %1064 = vmatpush1.bf16.msra.mxu0 %v1374_v24  ;;  %1080 = vmatpush1.bf16.msra.mxu1 %v1374_v24 }
  0x12   :  { %1082 = vmatprep.subr.bf16.mxu0 %v1310_v4  ;;  %1098 = vmatprep.subr.bf16.mxu1 %v1310_v4 }
  0x14   :  { %99 = vmatmul.mubr.f32.vlgmr.msra.gmra.mrb[0].mxu0 %v1276_v3 }
  0x15   :  { %1084 = vmatpush1.bf16.msra.mxu0 %v1321_v8  ;;  %340 = vmatprep.mubr.f32.mxu0 %v1276_v3 }
  0x16   :  { %1086 = vmatprep.subr.bf16.mxu0 %v1323_v9 }
  0x19   :  { %1088 = vmatpush1.bf16.msra.mxu0 %v1340_v14 }
  0x1a   :  { %1090 = vmatprep.subr.bf16.mxu0 %v1344_v15 }
  0x1d   :  { %1092 = vmatpush1.bf16.msra.mxu0 %v1360_v20 }
  0x1e   :  { %1094 = vmatprep.subr.bf16.mxu0 %v1364_v21 }
  0x21   :  { %1096 = vmatpush1.bf16.msra.mxu0 %v1374_v24 }
  0x22   :  { %1114 = vmatprep.subr.bf16.mxu0 %v1310_v4 }
  0xe7   :  { %v100_v25 = vpop.f32.mrb[0].mxu0 }
  0xe8   :  { %v102_v27 = vpop.f32.mrb[1].mxu0 }
  0xe9   :  { %v107_v28 = vcombine.low %v100_v25, %v102_v27 }
  0xeb   :  { %v109_v29 = vadd.f32 %v107_v28, %v29_v26 }
  0xed   :  { %v1005_v30 = vmul.f32 -1.442695, %v109_v29  ;;  %v117_v31 = vrot.slane %v109_v29, 4 }
  0xef   :  { %1180 = vpow2.f32 %v1005_v30 }
  0xf0   :  { %1182 = vtanh.f32 %v117_v31 }
  0xf9   :  { %v1181_v32 = vpop.eup %1180 }
  0xfa   :  { %v113_v33 = vadd.f32 1.0, %v1181_v32  ;;  %v1183_v34 = vpop.eup %1182 }
  0xfc   :  { %1184 = vrcp.f32 %v113_v33 }
 0x106   :  { %v1185_v35 = vpop.eup %1184 }
 0x107   :  { %v131_v36 = vmul.f32 %v1185_v35, %v1183_v34  ;;  %v130_v37 = vmul.f32 0.0, %v1185_v35 }
 0x109   :  { %133 = vrot.lane.b32.xlu0 %v131_v36, %s1277_s18 }
 0x10d   :  { %120 = vrot.lane.b32.xlu0 %v109_v29, %s1277_s18 }
 0x17b   :  { %v134_v38 = vpop.permute.xlu0 %133 }
 0x17c   :  { %v136_v39 = vadd.f32 %v134_v38, %v130_v37 }
 0x17e   :  { %1186 = vtanh.f32 %v136_v39 }
 0x17f   :  { %v121_v41 = vpop.permute.xlu0 %120 }
 0x180   :  { %v122_v42 = vrot.slane %v121_v41, 4 }
 0x182   :  { %v1006_v43 = vmul.f32 -1.442695, %v122_v42 }
 0x184   :  { %1188 = vpow2.f32 %v1006_v43  ;;  %v1020_v43 = vld [vmem:[%s1594_s0 + $0x18] sm:$0xff] }
 0x188   :  { %v1187_v40 = vpop.eup %1186 }
 0x189   :  { %139 = vrot.lane.b32.xlu1 %v1187_v40, %s1277_s18 }
 0x18e   :  { %v1189_v44 = vpop.eup %1188 }
 0x18f   :  { %v127_v45 = vadd.f32 1.0, %v1189_v44 }
 0x191   :  { %1190 = vrcp.f32 %v127_v45 }
 0x19b   :  { %v1191_v46 = vpop.eup %1190 }
 0x1fb   :  { %v140_v47 = vpop.permute.xlu1 %139 }
 0x1fc   :  { %v1399_v48 = vmul.f32 %v1191_v46, %v140_v47 }
 0x1fe   :  { %144 = vst.msk [vmem:[%s1595_s2] sm:$0xf] %vm143_vm0, %v1399_v48  ;;  %1009 = vmatmul.mubr.msk.f32.vlgmr.msra.gmra.mrb[0].mxu1 %vm30_vm1, %v1399_v48 }
 0x1ff   :  { %1100 = vmatpush1.bf16.msra.mxu1 %v1321_v8  ;;  %461 = vmatprep.mubr.f32.mxu1 %v1276_v3 }
 0x200   :  { %1102 = vmatprep.subr.bf16.mxu1 %v1323_v9 }
 0x203   :  { %1104 = vmatpush1.bf16.msra.mxu1 %v1340_v14 }
 0x204   :  { %1106 = vmatprep.subr.bf16.mxu1 %v1344_v15 }
 0x207   :  { %1108 = vmatpush1.bf16.msra.mxu1 %v1360_v20 }
 0x208   :  { %1110 = vmatprep.subr.bf16.mxu1 %v1364_v21 }
 0x20b   :  { %1112 = vmatpush1.bf16.msra.mxu1 %v1374_v24 }
 0x20c   :  { %1130 = vmatprep.subr.bf16.mxu1 %v1310_v4 }
 0x2d1   :  { %v221_v49 = vpop.f32.mrb[0].mxu1 }
 0x2d2   :  { %v223_v51 = vpop.f32.mrb[1].mxu1 }
 0x2d3   :  { %v228_v52 = vcombine.low %v221_v49, %v223_v51 }
 0x2d5   :  { %v230_v53 = vadd.f32 %v1008_v50, %v228_v52 }
 0x2d7   :  { %v1010_v54 = vmul.f32 -1.442695, %v230_v53  ;;  %241 = vrot.lane.b32.xlu0 %v230_v53, %s1277_s18  ;;  %v238_v55 = vrot.slane %v230_v53, 4 }
 0x2d9   :  { %1192 = vpow2.f32 %v1010_v54 }
 0x2da   :  { %1194 = vtanh.f32 %v238_v55 }
 0x2e3   :  { %v1193_v56 = vpop.eup %1192 }
 0x2e4   :  { %v234_v57 = vadd.f32 1.0, %v1193_v56  ;;  %v1195_v58 = vpop.eup %1194 }
 0x2e6   :  { %1196 = vrcp.f32 %v234_v57 }
 0x2f0   :  { %v1197_v59 = vpop.eup %1196 }
 0x2f1   :  { %v252_v60 = vmul.f32 %v1197_v59, %v1195_v58  ;;  %v251_v61 = vmul.f32 %v1197_v59, %v136_v39 }
 0x2f3   :  { %254 = vrot.lane.b32.xlu1 %v252_v60, %s1277_s18 }
 0x349   :  { %v242_v1 = vpop.permute.xlu0 %241 }
 0x34a   :  { %v243_v2 = vrot.slane %v242_v1, 4 }
 0x34c   :  { %v1011_v5 = vmul.f32 -1.442695, %v243_v2 }
 0x365   :  { %v255_v62 = vpop.permute.xlu1 %254 }
 0x366   :  { %v257_v63 = vadd.f32 %v255_v62, %v251_v61 }
 0x368   :  { %1198 = vtanh.f32 %v257_v63 }
 0x369   :  { %1200 = vpow2.f32 %v1011_v5  ;;  %v1026_v5 = vld [vmem:[%s1594_s0 + $0x20] sm:$0xff] }
 0x372   :  { %v1199_v0 = vpop.eup %1198 }
 0x373   :  { %260 = vrot.lane.b32.xlu1 %v1199_v0, %s1277_s18  ;;  %v1201_v6 = vpop.eup %1200 }
 0x374   :  { %v248_v7 = vadd.f32 1.0, %v1201_v6 }
 0x376   :  { %1202 = vrcp.f32 %v248_v7 }
 0x380   :  { %v1203_v10 = vpop.eup %1202 }
 0x3e5   :  { %v261_v11 = vpop.permute.xlu1 %260 }
 0x3e6   :  { %v1423_v12 = vmul.f32 %v1203_v10, %v261_v11 }
 0x3e8   :  { %1012 = vst.msk [vmem:[%s1595_s2 + $0x4] sm:$0xf] %vm143_vm0, %v1423_v12  ;;  %1015 = vmatmul.mubr.msk.f32.vlgmr.msra.gmra.mrb[2].mxu0 %vm30_vm1, %v1423_v12 }
 0x3e9   :  { %1116 = vmatpush1.bf16.msra.mxu0 %v1321_v8  ;;  %582 = vmatprep.mubr.f32.mxu0 %v1276_v3 }
 0x3ea   :  { %1118 = vmatprep.subr.bf16.mxu0 %v1323_v9 }
 0x3ed   :  { %1120 = vmatpush1.bf16.msra.mxu0 %v1340_v14 }
 0x3ee   :  { %1122 = vmatprep.subr.bf16.mxu0 %v1344_v15 }
 0x3f1   :  { %1124 = vmatpush1.bf16.msra.mxu0 %v1360_v20 }
 0x3f2   :  { %1126 = vmatprep.subr.bf16.mxu0 %v1364_v21 }
 0x3f5   :  { %1128 = vmatpush1.bf16.msra.mxu0 %v1374_v24 }
 0x3f6   :  { %1146 = vmatprep.subr.bf16.mxu0 %v1310_v4 }
 0x4bb   :  { %v342_v13 = vpop.f32.mrb[2].mxu0 }
 0x4bc   :  { %v344_v17 = vpop.f32.mrb[3].mxu0 }
 0x4bd   :  { %v349_v18 = vcombine.low %v342_v13, %v344_v17 }
 0x4bf   :  { %v351_v19 = vadd.f32 %v1014_v16, %v349_v18 }
 0x4c1   :  { %v1016_v22 = vmul.f32 -1.442695, %v351_v19  ;;  %362 = vrot.lane.b32.xlu1 %v351_v19, %s1277_s18  ;;  %v359_v23 = vrot.slane %v351_v19, 4 }
 0x4c3   :  { %1204 = vpow2.f32 %v1016_v22 }
 0x4c4   :  { %1206 = vtanh.f32 %v359_v23 }
 0x4cd   :  { %v1205_v25 = vpop.eup %1204 }
 0x4ce   :  { %v355_v26 = vadd.f32 1.0, %v1205_v25  ;;  %v1207_v27 = vpop.eup %1206 }
 0x4d0   :  { %1208 = vrcp.f32 %v355_v26 }
 0x4da   :  { %v1209_v28 = vpop.eup %1208 }
 0x4db   :  { %v373_v29 = vmul.f32 %v1209_v28, %v1207_v27  ;;  %v372_v30 = vmul.f32 %v1209_v28, %v257_v63 }
 0x4dd   :  { %375 = vrot.lane.b32.xlu0 %v373_v29, %s1277_s18 }
 0x533   :  { %v363_v34 = vpop.permute.xlu1 %362 }
 0x534   :  { %v364_v35 = vrot.slane %v363_v34, 4 }
 0x536   :  { %v1017_v36 = vmul.f32 -1.442695, %v364_v35 }
 0x54f   :  { %v376_v31 = vpop.permute.xlu0 %375 }
 0x550   :  { %v378_v32 = vadd.f32 %v376_v31, %v372_v30 }
 0x552   :  { %1210 = vtanh.f32 %v378_v32 }
 0x553   :  { %1212 = vpow2.f32 %v1017_v36 }
 0x55c   :  { %v1211_v33 = vpop.eup %1210 }
 0x55d   :  { %381 = vrot.lane.b32.xlu0 %v1211_v33, %s1277_s18  ;;  %v1213_v37 = vpop.eup %1212 }
 0x55e   :  { %v369_v38 = vadd.f32 1.0, %v1213_v37  ;;  %v1032_v37 = vld [vmem:[%s1594_s0 + $0x28] sm:$0xff] }
 0x560   :  { %1214 = vrcp.f32 %v369_v38 }
 0x56a   :  { %v1215_v39 = vpop.eup %1214 }
 0x5cf   :  { %v382_v40 = vpop.permute.xlu0 %381 }
 0x5d0   :  { %v1447_v41 = vmul.f32 %v1215_v39, %v382_v40 }
 0x5d2   :  { %1018 = vst.msk [vmem:[%s1595_s2 + $0x8] sm:$0xf] %vm143_vm0, %v1447_v41  ;;  %1021 = vmatmul.mubr.msk.f32.vlgmr.msra.gmra.mrb[2].mxu1 %vm30_vm1, %v1447_v41 }
 0x5d3   :  { %1132 = vmatpush1.bf16.msra.mxu1 %v1321_v8  ;;  %703 = vmatprep.mubr.f32.mxu1 %v1276_v3 }
 0x5d4   :  { %1134 = vmatprep.subr.bf16.mxu1 %v1323_v9 }
 0x5d7   :  { %1136 = vmatpush1.bf16.msra.mxu1 %v1340_v14 }
 0x5d8   :  { %1138 = vmatprep.subr.bf16.mxu1 %v1344_v15 }
 0x5db   :  { %1140 = vmatpush1.bf16.msra.mxu1 %v1360_v20 }
 0x5dc   :  { %1142 = vmatprep.subr.bf16.mxu1 %v1364_v21 }
 0x5df   :  { %1144 = vmatpush1.bf16.msra.mxu1 %v1374_v24 }
 0x5e0   :  { %1162 = vmatprep.subr.bf16.mxu1 %v1310_v4 }
 0x6a5   :  { %v463_v42 = vpop.f32.mrb[2].mxu1 }
 0x6a6   :  { %v465_v44 = vpop.f32.mrb[3].mxu1 }
 0x6a7   :  { %v470_v45 = vcombine.low %v463_v42, %v465_v44 }
 0x6a9   :  { %v472_v46 = vadd.f32 %v1020_v43, %v470_v45 }
 0x6ab   :  { %v1022_v47 = vmul.f32 -1.442695, %v472_v46  ;;  %483 = vrot.lane.b32.xlu0 %v472_v46, %s1277_s18  ;;  %v480_v49 = vrot.slane %v472_v46, 4 }
 0x6ad   :  { %1216 = vpow2.f32 %v1022_v47 }
 0x6ae   :  { %1218 = vtanh.f32 %v480_v49 }
 0x6b7   :  { %v1217_v50 = vpop.eup %1216 }
 0x6b8   :  { %v476_v51 = vadd.f32 1.0, %v1217_v50  ;;  %v1219_v52 = vpop.eup %1218 }
 0x6ba   :  { %1220 = vrcp.f32 %v476_v51 }
 0x6c4   :  { %v1221_v53 = vpop.eup %1220 }
 0x6c5   :  { %v494_v4 = vmul.f32 %v1221_v53, %v1219_v52  ;;  %v493_v54 = vmul.f32 %v1221_v53, %v378_v32 }
 0x6c7   :  { %496 = vrot.lane.b32.xlu1 %v494_v4, %s1277_s18 }
 0x71d   :  { %v484_v58 = vpop.permute.xlu0 %483 }
 0x71e   :  { %v485_v59 = vrot.slane %v484_v58, 4 }
 0x720   :  { %v1023_v60 = vmul.f32 -1.442695, %v485_v59 }
 0x739   :  { %v497_v55 = vpop.permute.xlu1 %496 }
 0x73a   :  { %v499_v56 = vadd.f32 %v497_v55, %v493_v54  ;;  %v1038_v54 = vld [vmem:[%s1594_s0 + $0x30] sm:$0xff] }
 0x73c   :  { %1222 = vtanh.f32 %v499_v56 }
 0x73d   :  { %1224 = vpow2.f32 %v1023_v60 }
 0x746   :  { %v1223_v57 = vpop.eup %1222 }
 0x747   :  { %502 = vrot.lane.b32.xlu1 %v1223_v57, %s1277_s18  ;;  %v1225_v61 = vpop.eup %1224 }
 0x748   :  { %v490_v62 = vadd.f32 1.0, %v1225_v61 }
 0x74a   :  { %1226 = vrcp.f32 %v490_v62 }
 0x754   :  { %v1227_v63 = vpop.eup %1226 }
 0x7b9   :  { %v503_v0 = vpop.permute.xlu1 %502 }
 0x7ba   :  { %v1471_v1 = vmul.f32 %v1227_v63, %v503_v0 }
 0x7bc   :  { %1024 = vst.msk [vmem:[%s1595_s2 + $0xc] sm:$0xf] %vm143_vm0, %v1471_v1  ;;  %1027 = vmatmul.mubr.msk.f32.vlgmr.msra.gmra.mrb[4].mxu0 %vm30_vm1, %v1471_v1 }
 0x7bd   :  { %1148 = vmatpush1.bf16.msra.mxu0 %v1321_v8  ;;  %824 = vmatprep.mubr.f32.mxu0 %v1276_v3 }
 0x7be   :  { %1150 = vmatprep.subr.bf16.mxu0 %v1323_v9 }
 0x7c1   :  { %1152 = vmatpush1.bf16.msra.mxu0 %v1340_v14 }
 0x7c2   :  { %1154 = vmatprep.subr.bf16.mxu0 %v1344_v15 }
 0x7c5   :  { %1156 = vmatpush1.bf16.msra.mxu0 %v1360_v20 }
 0x7c6   :  { %1158 = vmatprep.subr.bf16.mxu0 %v1364_v21 }
 0x7c9   :  { %1160 = vmatpush1.bf16.msra.mxu0 %v1374_v24 }
 0x88f   :  { %v584_v2 = vpop.f32.mrb[4].mxu0 }
 0x890   :  { %v586_v6 = vpop.f32.mrb[5].mxu0 }
 0x891   :  { %v591_v7 = vcombine.low %v584_v2, %v586_v6 }
 0x893   :  { %v593_v10 = vadd.f32 %v1026_v5, %v591_v7 }
 0x895   :  { %v1028_v11 = vmul.f32 -1.442695, %v593_v10  ;;  %604 = vrot.lane.b32.xlu1 %v593_v10, %s1277_s18  ;;  %v601_v13 = vrot.slane %v593_v10, 4 }
 0x897   :  { %1228 = vpow2.f32 %v1028_v11 }
 0x898   :  { %1230 = vtanh.f32 %v601_v13 }
 0x8a1   :  { %v1229_v16 = vpop.eup %1228 }
 0x8a2   :  { %v597_v17 = vadd.f32 1.0, %v1229_v16  ;;  %v1231_v18 = vpop.eup %1230 }
 0x8a4   :  { %1232 = vrcp.f32 %v597_v17 }
 0x8ae   :  { %v1233_v19 = vpop.eup %1232 }
 0x8af   :  { %v615_v22 = vmul.f32 %v1233_v19, %v1231_v18  ;;  %v614_v23 = vmul.f32 %v1233_v19, %v499_v56 }
 0x8b1   :  { %617 = vrot.lane.b32.xlu0 %v615_v22, %s1277_s18 }
 0x907   :  { %v605_v28 = vpop.permute.xlu1 %604 }
 0x908   :  { %v606_v29 = vrot.slane %v605_v28, 4 }
 0x90a   :  { %v1029_v30 = vmul.f32 -1.442695, %v606_v29 }
 0x923   :  { %v618_v25 = vpop.permute.xlu0 %617 }
 0x924   :  { %v620_v26 = vadd.f32 %v618_v25, %v614_v23  ;;  %v1044_v25 = vld [vmem:[%s1594_s0 + $0x38] sm:$0xff] }
 0x926   :  { %1234 = vtanh.f32 %v620_v26 }
 0x927   :  { %1236 = vpow2.f32 %v1029_v30 }
 0x930   :  { %v1235_v27 = vpop.eup %1234 }
 0x931   :  { %623 = vrot.lane.b32.xlu0 %v1235_v27, %s1277_s18  ;;  %v1237_v31 = vpop.eup %1236 }
 0x932   :  { %v611_v32 = vadd.f32 1.0, %v1237_v31 }
 0x934   :  { %1238 = vrcp.f32 %v611_v32 }
 0x93e   :  { %v1239_v33 = vpop.eup %1238 }
 0x9a3   :  { %v624_v34 = vpop.permute.xlu0 %623 }
 0x9a4   :  { %v1494_v35 = vmul.f32 %v1239_v33, %v624_v34 }
 0x9a6   :  { %1030 = vst.msk [vmem:[%s1595_s2 + $0x10] sm:$0xf] %vm143_vm0, %v1494_v35  ;;  %1033 = vmatmul.mubr.msk.f32.vlgmr.msra.gmra.mrb[4].mxu1 %vm30_vm1, %v1494_v35 }
 0x9a7   :  { %1164 = vmatpush1.bf16.msra.mxu1 %v1321_v8  ;;  %945 = vmatprep.mubr.f32.mxu1 %v1276_v3 }
 0x9a8   :  { %1166 = vmatprep.subr.bf16.mxu1 %v1323_v9 }
 0x9ab   :  { %1168 = vmatpush1.bf16.msra.mxu1 %v1340_v14 }
 0x9ac   :  { %1170 = vmatprep.subr.bf16.mxu1 %v1344_v15 }
 0x9af   :  { %1172 = vmatpush1.bf16.msra.mxu1 %v1360_v20 }
 0x9b0   :  { %1174 = vmatprep.subr.bf16.mxu1 %v1364_v21 }
 0x9b3   :  { %1176 = vmatpush1.bf16.msra.mxu1 %v1374_v24 }
 0xa79   :  { %v705_v36 = vpop.f32.mrb[4].mxu1 }
 0xa7a   :  { %v707_v8 = vpop.f32.mrb[5].mxu1 }
 0xa7b   :  { %v712_v38 = vcombine.low %v705_v36, %v707_v8 }
 0xa7d   :  { %v714_v3 = vadd.f32 %v1032_v37, %v712_v38 }
 0xa7f   :  { %v1034_v39 = vmul.f32 -1.442695, %v714_v3  ;;  %725 = vrot.lane.b32.xlu0 %v714_v3, %s1277_s18  ;;  %v722_v9 = vrot.slane %v714_v3, 4 }
 0xa81   :  { %1240 = vpow2.f32 %v1034_v39 }
 0xa82   :  { %1242 = vtanh.f32 %v722_v9 }
 0xa8b   :  { %v1241_v14 = vpop.eup %1240 }
 0xa8c   :  { %v718_v15 = vadd.f32 1.0, %v1241_v14  ;;  %v1243_v20 = vpop.eup %1242 }
 0xa8e   :  { %1244 = vrcp.f32 %v718_v15 }
 0xa98   :  { %v1245_v21 = vpop.eup %1244 }
 0xa99   :  { %v736_v24 = vmul.f32 %v1245_v21, %v1243_v20  ;;  %v735_v40 = vmul.f32 %v1245_v21, %v620_v26 }
 0xa9b   :  { %738 = vrot.lane.b32.xlu1 %v736_v24, %s1277_s18 }
 0xaf1   :  { %v726_v45 = vpop.permute.xlu0 %725 }
 0xaf2   :  { %v727_v46 = vrot.slane %v726_v45, 4 }
 0xaf4   :  { %v1035_v47 = vmul.f32 -1.442695, %v727_v46 }
 0xb0d   :  { %v739_v42 = vpop.permute.xlu1 %738 }
 0xb0e   :  { %v741_v43 = vadd.f32 %v739_v42, %v735_v40 }
 0xb10   :  { %1246 = vtanh.f32 %v741_v43 }
 0xb11   :  { %1248 = vpow2.f32 %v1035_v47 }
 0xb1a   :  { %v1247_v44 = vpop.eup %1246 }
 0xb1b   :  { %744 = vrot.lane.b32.xlu1 %v1247_v44, %s1277_s18  ;;  %v1249_v49 = vpop.eup %1248 }
 0xb1c   :  { %v732_v50 = vadd.f32 1.0, %v1249_v49 }
 0xb1e   :  { %1250 = vrcp.f32 %v732_v50 }
 0xb28   :  { %v1251_v51 = vpop.eup %1250 }
 0xb8d   :  { %v745_v52 = vpop.permute.xlu1 %744 }
 0xb8e   :  { %v1517_v53 = vmul.f32 %v1251_v51, %v745_v52 }
 0xb90   :  { %1036 = vst.msk [vmem:[%s1595_s2 + $0x14] sm:$0xf] %vm143_vm0, %v1517_v53  ;;  %1039 = vmatmul.mubr.msk.f32.vlgmr.msra.gmra.mrb[6].mxu0 %vm30_vm1, %v1517_v53 }
 0xc63   :  { %v826_v4 = vpop.f32.mrb[6].mxu0 }
 0xc64   :  { %v828_v55 = vpop.f32.mrb[7].mxu0 }
 0xc65   :  { %v833_v56 = vcombine.low %v826_v4, %v828_v55 }
 0xc67   :  { %v835_v57 = vadd.f32 %v1038_v54, %v833_v56 }
 0xc69   :  { %v1040_v58 = vmul.f32 -1.442695, %v835_v57  ;;  %846 = vrot.lane.b32.xlu1 %v835_v57, %s1277_s18  ;;  %v843_v59 = vrot.slane %v835_v57, 4 }
 0xc6b   :  { %1252 = vpow2.f32 %v1040_v58 }
 0xc6c   :  { %1254 = vtanh.f32 %v843_v59 }
 0xc75   :  { %v1253_v60 = vpop.eup %1252 }
 0xc76   :  { %v839_v61 = vadd.f32 1.0, %v1253_v60  ;;  %v1255_v62 = vpop.eup %1254 }
 0xc78   :  { %1256 = vrcp.f32 %v839_v61 }
 0xc82   :  { %v1257_v63 = vpop.eup %1256 }
 0xc83   :  { %v857_v0 = vmul.f32 %v1257_v63, %v1255_v62  ;;  %v856_v2 = vmul.f32 %v1257_v63, %v741_v43 }
 0xc85   :  { %859 = vrot.lane.b32.xlu0 %v857_v0, %s1277_s18 }
 0xcdb   :  { %v847_v10 = vpop.permute.xlu1 %846 }
 0xcdc   :  { %v848_v11 = vrot.slane %v847_v10, 4 }
 0xcde   :  { %v1041_v13 = vmul.f32 -1.442695, %v848_v11 }
 0xcf7   :  { %v860_v5 = vpop.permute.xlu0 %859 }
 0xcf8   :  { %v862_v6 = vadd.f32 %v860_v5, %v856_v2 }
 0xcfa   :  { %1258 = vtanh.f32 %v862_v6 }
 0xcfb   :  { %1260 = vpow2.f32 %v1041_v13 }
 0xd04   :  { %v1259_v7 = vpop.eup %1258 }
 0xd05   :  { %865 = vrot.lane.b32.xlu0 %v1259_v7, %s1277_s18  ;;  %v1261_v16 = vpop.eup %1260 }
 0xd06   :  { %v853_v17 = vadd.f32 1.0, %v1261_v16 }
 0xd08   :  { %1262 = vrcp.f32 %v853_v17 }
 0xd12   :  { %v1263_v18 = vpop.eup %1262 }
 0xd77   :  { %v866_v19 = vpop.permute.xlu0 %865 }
 0xd78   :  { %v868_v22 = vmul.f32 %v1263_v18, %v866_v19 }
 0xd7a   :  { %1042 = vst.msk [vmem:[%s1595_s2 + $0x18] sm:$0xf] %vm143_vm0, %v868_v22  ;;  %1045 = vmatmul.mubr.msk.f32.vlgmr.msra.gmra.mrb[6].mxu1 %vm30_vm1, %v868_v22 }
 0xe4d   :  { %v947_v23 = vpop.f32.mrb[6].mxu1 }
 0xe4e   :  { %v949_v26 = vpop.f32.mrb[7].mxu1 }
 0xe4f   :  { %v954_v27 = vcombine.low %v947_v23, %v949_v26 }
 0xe51   :  { %v956_v28 = vadd.f32 %v1044_v25, %v954_v27 }
 0xe53   :  { %v1046_v29 = vmul.f32 -1.442695, %v956_v28  ;;  %967 = vrot.lane.b32.xlu0 %v956_v28, %s1277_s18  ;;  %v964_v30 = vrot.slane %v956_v28, 4 }
 0xe55   :  { %1264 = vpow2.f32 %v1046_v29 }
 0xe56   :  { %1266 = vtanh.f32 %v964_v30 }
 0xe57   :  { %146 = vrot.lane.b32.xlu0 %v1399_v48, %s1278_s20 }
 0xe5b   :  { %388 = vrot.lane.b32.xlu0 %v1447_v41, %s1278_s20 }
 0xe5f   :  { %v1265_v31 = vpop.eup %1264  ;;  %630 = vrot.lane.b32.xlu0 %v1494_v35, %s1278_s20 }
 0xe60   :  { %v960_v32 = vadd.f32 1.0, %v1265_v31  ;;  %v1267_v33 = vpop.eup %1266 }
 0xe62   :  { %1268 = vrcp.f32 %v960_v32 }
 0xe63   :  { %872 = vrot.lane.b32.xlu0 %v868_v22, %s1278_s20 }
 0xe6c   :  { %v1269_v34 = vpop.eup %1268 }
 0xe6d   :  { %v978_v36 = vmul.f32 %v1269_v34, %v1267_v33  ;;  %v977_v38 = vmul.f32 %v1269_v34, %v862_v6 }
 0xe6f   :  { %980 = vrot.lane.b32.xlu1 %v978_v36, %s1277_s18 }
 0xec5   :  { %v968_v37 = vpop.permute.xlu0 %967 }
 0xec6   :  { %v969_v14 = vrot.slane %v968_v37, 4 }
 0xec8   :  { %v1047_v15 = vmul.f32 -1.442695, %v969_v14 }
 0xec9   :  { %v147_v48 = vpop.permute.xlu0 %146 }
 0xeca   :  { %1007 = vst.msk [vmem:[%s1596_s3 + $0x1c] sm:$0xf] %vm143_vm0, %v147_v48 }
 0xecd   :  { %v389_v41 = vpop.permute.xlu0 %388 }
 0xece   :  { %1019 = vst.msk [vmem:[%s1596_s3 + $0x14] sm:$0xf] %vm143_vm0, %v389_v41 }
 0xed1   :  { %v631_v35 = vpop.permute.xlu0 %630 }
 0xed2   :  { %1031 = vst.msk [vmem:[%s1596_s3 + $0xc] sm:$0xf] %vm143_vm0, %v631_v35 }
 0xed5   :  { %v873_v8 = vpop.permute.xlu0 %872 }
 0xed6   :  { %1043 = vst.msk [vmem:[%s1596_s3 + $0x4] sm:$0xf] %vm143_vm0, %v873_v8 }
 0xee1   :  { %v981_v3 = vpop.permute.xlu1 %980 }
 0xee2   :  { %v983_v39 = vadd.f32 %v981_v3, %v977_v38 }
 0xee4   :  { %1270 = vtanh.f32 %v983_v39 }
 0xee5   :  { %1272 = vpow2.f32 %v1047_v15 }
 0xeee   :  { %v1271_v9 = vpop.eup %1270 }
 0xeef   :  { %986 = vrot.lane.b32.xlu1 %v1271_v9, %s1277_s18  ;;  %v1273_v20 = vpop.eup %1272 }
 0xef0   :  { %v974_v21 = vadd.f32 1.0, %v1273_v20 }
 0xef2   :  { %1274 = vrcp.f32 %v974_v21 }
 0xef3   :  { %267 = vrot.lane.b32.xlu1 %v1423_v12, %s1278_s20 }
 0xef7   :  { %509 = vrot.lane.b32.xlu1 %v1471_v1, %s1278_s20 }
 0xefb   :  { %751 = vrot.lane.b32.xlu1 %v1517_v53, %s1278_s20 }
 0xefc   :  { %v1275_v24 = vpop.eup %1274 }
 0xf61   :  { %v987_v40 = vpop.permute.xlu1 %986 }
 0xf62   :  { %v989_v42 = vmul.f32 %v1275_v24, %v987_v40 }
 0xf64   :  { %1048 = vst.msk [vmem:[%s1595_s2 + $0x1c] sm:$0xf] %vm143_vm0, %v989_v42  ;;  %993 = vrot.lane.b32.xlu1 %v989_v42, %s1278_s20 }
 0xf65   :  { %v268_v12 = vpop.permute.xlu1 %267 }
 0xf66   :  { %1013 = vst.msk [vmem:[%s1596_s3 + $0x18] sm:$0xf] %vm143_vm0, %v268_v12 }
 0xf69   :  { %v510_v1 = vpop.permute.xlu1 %509 }
 0xf6a   :  { %1025 = vst.msk [vmem:[%s1596_s3 + $0x10] sm:$0xf] %vm143_vm0, %v510_v1 }
 0xf6d   :  { %v752_v43 = vpop.permute.xlu1 %751 }
 0xf6e   :  { %1037 = vst.msk [vmem:[%s1596_s3 + $0x8] sm:$0xf] %vm143_vm0, %v752_v43 }
 0xfd6   :  { %v994_v44 = vpop.permute.xlu1 %993 }
 0xfd7   :  { %996 = vst.msk [vmem:[%s1596_s3] sm:$0xf] %vm143_vm0, %v994_v44 }

// kernel: forward.38
= control target key start
LH: loop header
LB: loop body
LE: loop exit
PB: predicated region body
PF: predicated region fallthrough
CT: control target
= control target key end

     0   :  { %v136_v0 = vmov 0.0   ;;  %vm137_vm0 = vmmov 0   ;;  %vm46_vm1 = vcmask 261120   ;;  %s176_s1 = inlined_call_operand.vmem [shape: bf16[32,128], index: 1, kind: input, shape index: {}]   ;;  %s177_s0 = inlined_call_operand.vmem [shape: bf16[16,32], index: 0, kind: input, shape index: {}]   ;;  %s178_s2 = inlined_call_operand.vmem [shape: f32[1,128], index: 2, kind: input, shape index: {}]   ;;  %s179_s3 = inlined_call_operand.vmem [shape: f32[16,128], index: 3, kind: output, shape index: {}]  }
   0x1   :  { %123 = vmatprep.subr.bf16.mxu0 %v136_v0  ;;  %v133_v1 = vld [vmem:[%s176_s1] sm:$0xff]   ;;  %127 = vmatprep.mubr.msk.bf16.mxu0 %vm137_vm0, %v136_v0  ;;  %v134_v2 = vld [vmem:[%s176_s1 + $0x8] sm:$0xff]  }
   0x2   :  { %124 = vmatpush3.bf16.msra.mxu0 %v133_v1  ;;  %v135_v3 = vld [vmem:[%s177_s0] sm:$0xff]  }
   0x3   :  { %125 = vmatprep.subr.bf16.mxu0 %v136_v0  ;;  %v119_v4 = vld [vmem:[%s178_s2] ss:$0 sm:$0xff] }
   0x6   :  { %126 = vmatpush3.bf16.msra.mxu0 %v134_v2 }
   0x9   :  { %128 = vmatmul.mubr.msk.bf16.vlgmr.msra.gmra.mrb[0].mxu0 %vm46_vm1, %v135_v3 }
  0xdc   :  { %v84_v5 = vpop.f32.mrb[0].mxu0 }
  0xdd   :  { %v107_v6 = vadd.f32 %v119_v4, %v84_v5  ;;  %v129_v7 = vpop.f32.mrb[1].mxu0 }
  0xde   :  { %v87_v8 = vpop.f32.mrb[2].mxu0 }
  0xdf   :  { %109 = vst [vmem:[%s179_s3] sm:$0xff] %v107_v6  ;;  %v108_v9 = vadd.f32 %v119_v4, %v87_v8  ;;  %v130_v10 = vpop.f32.mrb[3].mxu0 }
  0xe1   :  { %110 = vst [vmem:[%s179_s3 + $0x8] sm:$0xff] %v108_v9 }

// kernel: forward.41
= control target key start
LH: loop header
LB: loop body
LE: loop exit
PB: predicated region body
PF: predicated region fallthrough
CT: control target
= control target key end

     0   :  { %v120_v0 = vmov 0.0   ;;  %vm121_vm0 = vmmov 0   ;;  %vm38_vm1 = vcmask 261120   ;;  %s157_s1 = inlined_call_operand.vmem [shape: bf16[32,128], index: 1, kind: input, shape index: {}]   ;;  %s158_s0 = inlined_call_operand.vmem [shape: bf16[8,32], index: 0, kind: input, shape index: {}]   ;;  %s159_s2 = inlined_call_operand.vmem [shape: f32[1,128], index: 2, kind: input, shape index: {}]   ;;  %s160_s3 = inlined_call_operand.vmem [shape: f32[8,128], index: 3, kind: output, shape index: {}]  }
   0x1   :  { %108 = vmatprep.subr.bf16.mxu0 %v120_v0  ;;  %v118_v1 = vld [vmem:[%s157_s1] sm:$0xff]   ;;  %112 = vmatprep.mubr.msk.bf16.mxu0 %vm121_vm0, %v120_v0  ;;  %v119_v2 = vld [vmem:[%s157_s1 + $0x8] sm:$0xff]  }
   0x2   :  { %109 = vmatpush3.bf16.msra.mxu0 %v118_v1  ;;  %v21_v3 = vld [vmem:[%s158_s0] sm:$0xf] }
   0x3   :  { %110 = vmatprep.subr.bf16.mxu0 %v120_v0  ;;  %v104_v4 = vld [vmem:[%s159_s2] ss:$0 sm:$0xff] }
   0x6   :  { %111 = vmatpush3.bf16.msra.mxu0 %v119_v2 }
   0x9   :  { %113 = vmatmul.mubr.msk.bf16.vlgmr.msra.gmra.mrb[0].mxu0 %vm38_vm1, %v21_v3 }
  0xdc   :  { %v76_v5 = vpop.f32.mrb[0].mxu0 }
  0xdd   :  { %v95_v6 = vadd.f32 %v104_v4, %v76_v5  ;;  %v114_v7 = vpop.f32.mrb[1].mxu0 }
  0xde   :  { %v79_v8 = vpop.f32.mrb[2].mxu0 }
  0xdf   :  { %96 = vst [vmem:[%s160_s3] sm:$0xff] %v95_v6  ;;  %v115_v9 = vpop.f32.mrb[3].mxu0 }

// kernel: forward.39
= control target key start
LH: loop header
LB: loop body
LE: loop exit
PB: predicated region body
PF: predicated region fallthrough
CT: control target
= control target key end

     0   :  { %v3512_v0 = vmov 0.0|0.0   ;;  %vm3513_vm0 = vmmov 0   ;;  %v3514_v4 = vmov 0.0   ;;  %v3515_v8 = vmov 1966171168   ;;  %s3518_s12 = smov 64   ;;  %s4162_s3 = inlined_call_operand.vmem [shape: f32[32,32], index: 3, kind: input, shape index: {}]   ;;  %s4163_s4 = inlined_call_operand.vmem [shape: f32[1,32], index: 4, kind: input, shape index: {}]   ;;  %s4164_s1 = inlined_call_operand.vmem [shape: f32[2,8,32], index: 1, kind: input, shape index: {}]   ;;  %s4165_s5 = inlined_call_operand.vmem [shape: f32[1,32], index: 5, kind: input, shape index: {}]   ;;  %s4166_s7 = inlined_call_operand.vmem [shape: f32[10,128], index: 7, kind: input, shape index: {}]   ;;  %s4167_s6 = inlined_call_operand.vmem [shape: f32[32,128], index: 6, kind: input, shape index: {}]   ;;  %s4168_s2 = inlined_call_operand.vmem [shape: f32[6,2,10], index: 2, kind: input, shape index: {}]   ;;  %s4169_s8 = inlined_call_operand.vmem [shape: f32[32,128], index: 8, kind: input, shape index: {}]   ;;  %s4170_s0 = inlined_call_operand.vmem [shape: f32[2,8,32], index: 0, kind: input, shape index: {}]   ;;  %s4171_s9 = inlined_call_operand.vmem [shape: f32[1,128], index: 9, kind: input, shape index: {}]   ;;  %s4172_s10 = inlined_call_operand.vmem [shape: f32[6,2,32], index: 10, kind: output, shape index: {}]  }
   0x1   :  { %3255 = vmatprep.subr.bf16.mxu0 %v3512_v0  ;;  %v39_v1 = vld [vmem:[%s4162_s3] sm:$0xff]  ;;  %v40_v2 = vld [vmem:[%s4162_s3 + $0x8] sm:$0xff]  ;;  %v41_v3 = vld [vmem:[%s4162_s3 + $0x10] sm:$0xff]  ;;  %3023 = vmatprep.mubr.msk.f32.mxu0 %vm3513_vm0, %v3514_v4  ;;  %v144_v9 = vunpack.c.l.s4 %v3515_v8  ;;  %v146_v10 = vlaneseq  ;;  %vm68_vm1 = vcmask 261120   ;;  %vm199_vm2 = vcmask 1041409   ;;  %s3519_s13 = smov 32  }
   0x2   :  { %v3587_v5 = vpack.c.bf16 %v40_v2, %v39_v1  ;;  %v42_v6 = vld [vmem:[%s4162_s3 + $0x18] sm:$0xff]  ;;  %3261 = vmatprep.subr.bf16.mxu1 %v3512_v0  ;;  %3030 = vmatprep.mubr.msk.f32.mxu1 %vm3513_vm0, %v3514_v4  ;;  %v3607_v13 = vld [vmem:[%s4163_s4] ss:$0 sm:$0xff]  ;;  %v3626_v25 = vld [vmem:[%s4164_s1 + $0x8] sm:$0xff]  ;;  %vm202_vm3 = vcmask 58368   ;;  %v3516_v44 = vmov 0  }
   0x3   :  { %v3596_v7 = vpack.c.bf16 %v42_v6, %v41_v3  ;;  %v145_v11 = vunpack.c.0.s8 %v144_v9  ;;  %v147_v12 = vshrl.u32 %v146_v10, 7  ;;  %v3619_v22 = vld [vmem:[%s4164_s1] sm:$0xff]  ;;  %v190_v36 = vand.u32 127, %v146_v10  ;;  %3396 = vset.pattern.permute.xlu0 %v3516_v44  ;;  %3395 = vset.pattern.permute.xlu1 %v3516_v44  ;;  %v49_v8 = vld [vmem:[%s4166_s7 + $0x8] sm:$0x3] }
   0x4   :  { %3257 = vmatpush3.bf16.msra.mxu0 %v3587_v5  ;;  %v3634_v29 = vld [vmem:[%s4165_s5] ss:$0 sm:$0xff]  ;;  %vm289_vm4 = vcmask 1041408   ;;  %vm3517_vm5 = vmmov 1   ;;  %vm285_vm7 = vcmask 80896   ;;  %vm544_vm8 = vcmask 254976  }
   0x5   :  { %3258 = vmatprep.subr.bf16.mxu0 %v3512_v0  ;;  %v3609_v14 = vsub.s32 %v145_v11, %v147_v12  ;;  %v3613_v19 = vsub.s32 0, %v147_v12  ;;  %v3640_v38 = vsub.s32 %v190_v36, %v147_v12  ;;  %v3646_v45 = vsub.s32 1, %v147_v12  ;;  %v48_v6 = vld [vmem:[%s4166_s7] sm:$0xff]  ;;  %vm3664_vm6 = vmpackc.low %vm289_vm4, %vm3517_vm5  ;;  %v45_v12 = vld [vmem:[%s4167_s6 + $0x8] sm:$0xff] }
   0x6   :  { %v3662_v9 = vpack.c.bf16 %v49_v8, %v48_v6  ;;  %v44_v11 = vld [vmem:[%s4167_s6] sm:$0xff] }
   0x8   :  { %3260 = vmatpush3.bf16.msra.mxu0 %v3596_v7  ;;  %3264 = vmatpush3.bf16.msk.msra.mxu1 %vm3664_vm6, %v3662_v9 }
   0x9   :  { %3271 = vmatprep.subr.bf16.mxu0 %v3512_v0  ;;  %3265 = vmatprep.subr.bf16.mxu1 %v3512_v0 }
   0xb   :  { %3024 = vmatmul.mubr.f32.vlgmr.msra.gmra.mrb[0].mxu0 %v3514_v4 }
   0xc   :  { %3052 = vmatprep.mubr.msk.f32.mxu0 %vm3513_vm0, %v3514_v4 }
  0xde   :  { %v138_v15 = vpop.f32.mrb[0].mxu0 }
  0xdf   :  { %v139_v16 = vadd.f32 %v3607_v13, %v138_v15  ;;  %v3025_v17 = vpop.f32.mrb[1].mxu0  ;;  %v284_v15 = vld [vmem:[%s4168_s2] sm:$0x3] }
  0xe0   :  { %v50_v17 = vld [vmem:[%s4169_s8] sm:$0xff]  ;;  %3031 = vmatmul.mubr.msk.f32.vlgmr.msra.gmra.mrb[0].mxu1 %vm285_vm7, %v284_v15 }
  0xe1   :  { %v149_v18 = vrot.slane %v139_v16, %v3609_v14  ;;  %v3681_v16 = vpack.c.bf16 %v45_v12, %v44_v11  ;;  %3041 = vmatprep.mubr.msk.f32.mxu1 %vm3513_vm0, %v3514_v4 }
  0xe3   :  { %v150_v20 = vcombine.high %v149_v18, %v149_v18  ;;  %v157_v21 = vrot.slane %v149_v18, %v3609_v14  ;;  %v51_v18 = vld [vmem:[%s4169_s8 + $0x8] sm:$0xff]  ;;  %3267 = vmatpush3.bf16.msra.mxu1 %v3681_v16 }
  0xe4   :  { %3268 = vmatprep.subr.bf16.mxu1 %v3512_v0 }
  0xe5   :  { %v164_v23 = vrot.slane %v150_v20, %v3609_v14  ;;  %v168_v24 = vrot.slane %v157_v21, %v3613_v19  ;;  %v3690_v20 = vpack.c.bf16 %v51_v18, %v50_v17  ;;  %v46_v21 = vld [vmem:[%s4167_s6 + $0x10] sm:$0xff] }
  0xe7   :  { %v172_v26 = vrot.slane %v164_v23, %v3613_v19  ;;  %v175_v27 = vadd.f32 %v168_v24, %v3619_v22  ;;  %3273 = vmatpush3.bf16.msra.mxu0 %v3690_v20  ;;  %v47_v23 = vld [vmem:[%s4167_s6 + $0x18] sm:$0xff] }
  0xe8   :  { %v3703_v24 = vpack.c.bf16 %v47_v23, %v46_v21  ;;  %3274 = vmatprep.subr.bf16.mxu0 %v3512_v0 }
  0xe9   :  { %v176_v28 = vadd.f32 %v172_v26, %v3626_v25  ;;  %3397 = vtanh.f32 %v175_v27  ;;  %v52_v26 = vld [vmem:[%s4169_s8 + $0x10] sm:$0xff]  ;;  %v53_v27 = vld [vmem:[%s4169_s8 + $0x18] sm:$0xff] }
  0xea   :  { %3270 = vmatpush3.bf16.msra.mxu1 %v3703_v24 }
  0xeb   :  { %3399 = vtanh.f32 %v176_v28  ;;  %v3712_v28 = vpack.c.bf16 %v53_v27, %v52_v26  ;;  %3277 = vmatprep.subr.bf16.mxu1 %v3512_v0 }
  0xed   :  { %3276 = vmatpush3.bf16.msra.mxu0 %v3712_v28 }
  0xee   :  { %3283 = vmatprep.subr.bf16.mxu0 %v3512_v0 }
  0xf0   :  { %3053 = vmatmul.mubr.f32.vlgmr.msra.gmra.mrb[2].mxu0 %v3514_v4 }
  0xf1   :  { %3286 = vmatpush3.bf16.msk.msra.mxu0 %vm3664_vm6, %v3662_v9  ;;  %3070 = vmatprep.mubr.msk.f32.mxu0 %vm3513_vm0, %v3514_v4 }
  0xf2   :  { %3287 = vmatprep.subr.bf16.mxu0 %v3512_v0 }
  0xf3   :  { %v3398_v30 = vpop.eup %3397 }
  0xf4   :  { %v179_v31 = vmul.f32 %v3398_v30, %v3634_v29  ;;  %v3728_v30 = vld [vmem:[%s4170_s0] sm:$0xff] }
  0xf5   :  { %v3400_v32 = vpop.eup %3399 }
  0xf6   :  { %v181_v33 = vsel %vm68_vm1, %v179_v31, 0.0  ;;  %v180_v34 = vmul.f32 %v3400_v32, %v3634_v29 }
  0xf7   :  { %182 = vadd.xlane.f32.xlu0 %v181_v33  ;;  %v3734_v33 = vld [vmem:[%s4170_s0 + $0x8] sm:$0xff] }
  0xf8   :  { %v184_v35 = vsel %vm68_vm1, %v180_v34, 0.0 }
  0xfb   :  { %185 = vadd.xlane.f32.xlu0 %v184_v35 }
 0x184   :  { %v183_v37 = vpop.xlane.xlu0 %182 }
 0x185   :  { %v194_v40 = vrot.slane %v183_v37, %v3640_v38 }
 0x188   :  { %v186_v39 = vpop.xlane.xlu0 %185 }
 0x189   :  { %v198_v41 = vrot.slane %v186_v39, %v3640_v38 }
 0x18b   :  { %v200_v42 = vsel %vm199_vm2, %v198_v41, %v194_v40 }
 0x18c   :  { %v203_v43 = vsel %vm202_vm3, %v200_v42, -inf }
 0x18d   :  { %204 = vmax.xlane.f32.xlu1 %v203_v43 }
 0x21a   :  { %v205_v46 = vpop.xlane.xlu1 %204 }
 0x21b   :  { %v210_v47 = vrot.slane %v205_v46, %v3613_v19  ;;  %v214_v48 = vrot.slane %v205_v46, %v3646_v45 }
 0x21d   :  { %v217_v49 = vsub.f32 %v183_v37, %v210_v47  ;;  %v218_v50 = vsub.f32 %v186_v39, %v214_v48 }
 0x21f   :  { %v219_v51 = vmul.f32 1.442695, %v217_v49  ;;  %v221_v52 = vmul.f32 1.442695, %v218_v50 }
 0x221   :  { %3401 = vpow2.f32 %v219_v51 }
 0x222   :  { %3403 = vpow2.f32 %v221_v52 }
 0x22b   :  { %v3402_v53 = vpop.eup %3401 }
 0x22c   :  { %v3404_v54 = vpop.eup %3403  ;;  %226 = vperm.xlu1 %3395, %v3402_v53  }
 0x22d   :  { %229 = vperm.xlu0 %3396, %v3404_v54  }
 0x2ab   :  { %v227_v55 = vpop.permute.xlu1 %226 }
 0x2ac   :  { %v230_v56 = vpop.permute.xlu0 %229  ;;  %v234_v57 = vrot.slane %v227_v55, %v3640_v38  ;;  %v504_v55 = vpop.f32.mrb[2].mxu0 }
 0x2ad   :  { %v238_v58 = vrot.slane %v230_v56, %v3640_v38  ;;  %v3054_v56 = vpop.f32.mrb[3].mxu0 }
 0x2af   :  { %v239_v59 = vsel %vm199_vm2, %v238_v58, %v234_v57 }
 0x2b0   :  { %v241_v60 = vsel %vm202_vm3, %v239_v59, 0.0 }
 0x2b1   :  { %242 = vadd.xlane.f32.xlu1 %v241_v60  ;;  %v3750_v60 = vld [vmem:[%s4171_s9] ss:$0 sm:$0xff] }
 0x33e   :  { %v243_v61 = vpop.xlane.xlu1 %242 }
 0x33f   :  { %3405 = vrcp.f32 %v243_v61 }
 0x349   :  { %v3406_v62 = vpop.eup %3405 }
 0x34a   :  { %v249_v63 = vrot.slane %v3406_v62, %v3613_v19  ;;  %v253_v2 = vrot.slane %v3406_v62, %v3646_v45 }
 0x34c   :  { %v256_v1 = vmul.f32 %v3402_v53, %v249_v63  ;;  %v257_v3 = vmul.f32 %v3404_v54, %v253_v2  ;;  %v359_v53 = vpop.f32.mrb[0].mxu1 }
 0x34d   :  { %v3032_v54 = vpop.f32.mrb[1].mxu1 }
 0x34e   :  { %260 = vperm.xlu0 %3396, %v256_v1  }
 0x352   :  { %265 = vperm.xlu0 %3396, %v257_v3  }
 0x3cd   :  { %v261_v31 = vpop.permute.xlu0 %260 }
 0x3ce   :  { %v268_v32 = vmul.f32 %v261_v31, %v3728_v30 }
 0x3d0   :  { %v270_v34 = vsel %vm68_vm1, %v268_v32, 0.0 }
 0x3d1   :  { %v271_v35 = vrot.slane %v270_v34, 4  ;;  %v266_v36 = vpop.permute.xlu0 %265 }
 0x3d2   :  { %v269_v37 = vmul.f32 %v266_v36, %v3734_v33 }
 0x3d3   :  { %v272_v39 = vadd.f32 %v271_v35, %v270_v34 }
 0x3d4   :  { %v277_v40 = vsel %vm68_vm1, %v269_v37, 0.0 }
 0x3d5   :  { %v273_v41 = vrot.slane %v272_v39, 2  ;;  %v278_v42 = vrot.slane %v277_v40, 4 }
 0x3d7   :  { %v274_v43 = vadd.f32 %v273_v41, %v272_v39  ;;  %v279_v44 = vadd.f32 %v278_v42, %v277_v40 }
 0x3d9   :  { %v280_v46 = vrot.slane %v279_v44, 2  ;;  %v275_v47 = vrot.slane %v274_v43, 1 }
 0x3db   :  { %v281_v48 = vadd.f32 %v280_v46, %v279_v44  ;;  %v276_v50 = vadd.f32 %v275_v47, %v274_v43 }
 0x3dd   :  { %v282_v49 = vrot.slane %v281_v48, 1 }
 0x3df   :  { %v283_v51 = vadd.f32 %v282_v49, %v281_v48 }
 0x3e1   :  { %v365_v52 = vsel %vm199_vm2, %v283_v51, %v276_v50 }
 0x3e2   :  { %3042 = vmatmul.mubr.msk.f32.vlgmr.msra.gmra.mrb[2].mxu1 %vm68_vm1, %v365_v52 }
 0x3e3   :  { %3279 = vmatpush3.bf16.msra.mxu1 %v3587_v5  ;;  %3063 = vmatprep.mubr.msk.f32.mxu1 %vm3513_vm0, %v3514_v4 }
 0x3e4   :  { %3280 = vmatprep.subr.bf16.mxu1 %v3512_v0 }
 0x3e7   :  { %3282 = vmatpush3.bf16.msra.mxu1 %v3596_v7 }
 0x3e8   :  { %3293 = vmatprep.subr.bf16.mxu1 %v3512_v0 }
 0x4b5   :  { %v434_v57 = vpop.f32.mrb[2].mxu1 }
 0x4b6   :  { %v435_v58 = vadd.f32 %v434_v57, %v359_v53  ;;  %v3043_v59 = vpop.f32.mrb[3].mxu1 }
 0x4b8   :  { %v508_v61 = vadd.f32 %v504_v55, %v435_v58 }
 0x4ba   :  { %v515_v62 = vadd.f32 %v3750_v60, %v508_v61 }
 0x4bc   :  { %3407 = vtanh.f32 %v515_v62  ;;  %v2866_v1 = vmul.f32 -1.442695, %v515_v62 }
 0x4be   :  { %3409 = vpow2.f32 %v2866_v1 }
 0x4c6   :  { %v3408_v63 = vpop.eup %3407 }
 0x4c7   :  { %525 = vrot.lane.b32.xlu1 %v3408_v63, %s3518_s12 }
 0x4c8   :  { %v3410_v2 = vpop.eup %3409 }
 0x4c9   :  { %v519_v3 = vadd.f32 1.0, %v3410_v2 }
 0x4cb   :  { %3411 = vrcp.f32 %v519_v3 }
 0x4d5   :  { %v3412_v6 = vpop.eup %3411 }
 0x4d6   :  { %v523_v12 = vmul.f32 0.0, %v3412_v6 }
 0x539   :  { %v526_v8 = vpop.permute.xlu1 %525 }
 0x53a   :  { %v528_v11 = vmul.f32 %v3412_v6, %v526_v8 }
 0x53c   :  { %530 = vrot.lane.b32.xlu0 %v528_v11, %s3519_s13 }
 0x5ae   :  { %v531_v15 = vpop.permute.xlu0 %530 }
 0x5af   :  { %v3755_v17 = vadd.f32 %v531_v15, %v523_v12 }
 0x5b1   :  { %3413 = vtanh.f32 %v3755_v17 }
 0x5bb   :  { %v3414_v18 = vpop.eup %3413 }
 0x5bc   :  { %536 = vrot.lane.b32.xlu0 %v3414_v18, %s3518_s12 }
 0x62e   :  { %v537_v21 = vpop.permute.xlu0 %536 }
 0x62f   :  { %v539_v23 = vmul.f32 %v3412_v6, %v537_v21 }
 0x631   :  { %541 = vrot.lane.b32.xlu0 %v539_v23, %s3519_s13 }
 0x6a3   :  { %v542_v26 = vpop.permute.xlu0 %541 }
 0x6a4   :  { %545 = vst.msk [vmem:[%s4172_s10] sm:$0x3] %vm544_vm8, %v542_v26  ;;  %3064 = vmatmul.mubr.msk.f32.vlgmr.msra.gmra.mrb[4].mxu1 %vm68_vm1, %v542_v26 }
 0x6a5   :  { %3295 = vmatpush3.bf16.msra.mxu1 %v3690_v20  ;;  %3092 = vmatprep.mubr.msk.f32.mxu1 %vm3513_vm0, %v3514_v4 }
 0x6a6   :  { %3296 = vmatprep.subr.bf16.mxu1 %v3512_v0 }
 0x6a9   :  { %3298 = vmatpush3.bf16.msra.mxu1 %v3712_v28 }
 0x6aa   :  { %3305 = vmatprep.subr.bf16.mxu1 %v3512_v0 }
 0x6ac   :  { %3093 = vmatmul.mubr.msk.f32.vlgmr.msra.gmra.mrb[6].mxu1 %vm68_vm1, %v542_v26 }
 0x6ad   :  { %3308 = vmatpush3.bf16.msk.msra.mxu1 %vm3664_vm6, %v3662_v9  ;;  %3110 = vmatprep.mubr.msk.f32.mxu1 %vm3513_vm0, %v3514_v4 }
 0x6ae   :  { %3309 = vmatprep.subr.bf16.mxu1 %v3512_v0 }
 0x777   :  { %v614_v27 = vpop.f32.mrb[4].mxu1 }
 0x778   :  { %v615_v31 = vadd.f32 %v3607_v13, %v614_v27  ;;  %v3065_v32 = vpop.f32.mrb[5].mxu1 }
 0x77a   :  { %v625_v34 = vrot.slane %v615_v31, %v3609_v14 }
 0x77c   :  { %v626_v35 = vcombine.high %v625_v34, %v625_v34  ;;  %v633_v36 = vrot.slane %v625_v34, %v3609_v14 }
 0x77e   :  { %v640_v37 = vrot.slane %v626_v35, %v3609_v14  ;;  %v644_v39 = vrot.slane %v633_v36, %v3613_v19  ;;  %v2868_v35 = vld [vmem:[%s4168_s2 + $0x2] sm:$0x3] }
 0x77f   :  { %v3783_v40 = vpop.f32.mrb[6].mxu1  ;;  %3071 = vmatmul.mubr.msk.f32.vlgmr.msra.gmra.mrb[4].mxu0 %vm285_vm7, %v2868_v35 }
 0x780   :  { %v648_v41 = vrot.slane %v640_v37, %v3613_v19  ;;  %v651_v42 = vadd.f32 %v644_v39, %v3619_v22  ;;  %v3094_v43 = vpop.f32.mrb[7].mxu1  ;;  %3289 = vmatpush3.bf16.msra.mxu0 %v3681_v16  ;;  %3081 = vmatprep.mubr.msk.f32.mxu0 %vm3513_vm0, %v3514_v4 }
 0x781   :  { %3290 = vmatprep.subr.bf16.mxu0 %v3512_v0 }
 0x782   :  { %v652_v44 = vadd.f32 %v648_v41, %v3626_v25  ;;  %3415 = vtanh.f32 %v651_v42 }
 0x784   :  { %3417 = vtanh.f32 %v652_v44  ;;  %3292 = vmatpush3.bf16.msra.mxu0 %v3703_v24 }
 0x785   :  { %3299 = vmatprep.subr.bf16.mxu0 %v3512_v0 }
 0x78c   :  { %v3416_v46 = vpop.eup %3415 }
 0x78d   :  { %v655_v47 = vmul.f32 %v3416_v46, %v3634_v29 }
 0x78e   :  { %v3418_v48 = vpop.eup %3417 }
 0x78f   :  { %v657_v49 = vsel %vm68_vm1, %v655_v47, 0.0  ;;  %v656_v50 = vmul.f32 %v3418_v48, %v3634_v29 }
 0x790   :  { %658 = vadd.xlane.f32.xlu0 %v657_v49 }
 0x791   :  { %v660_v51 = vsel %vm68_vm1, %v656_v50, 0.0 }
 0x792   :  { %661 = vadd.xlane.f32.xlu1 %v660_v51 }
 0x81d   :  { %v659_v52 = vpop.xlane.xlu0 %658 }
 0x81e   :  { %v668_v54 = vrot.slane %v659_v52, %v3640_v38 }
 0x81f   :  { %v662_v53 = vpop.xlane.xlu1 %661 }
 0x820   :  { %v672_v55 = vrot.slane %v662_v53, %v3640_v38 }
 0x822   :  { %v673_v56 = vsel %vm199_vm2, %v672_v55, %v668_v54 }
 0x823   :  { %v675_v57 = vsel %vm202_vm3, %v673_v56, -inf }
 0x824   :  { %676 = vmax.xlane.f32.xlu0 %v675_v57 }
 0x8b1   :  { %v677_v58 = vpop.xlane.xlu0 %676 }
 0x8b2   :  { %v682_v59 = vrot.slane %v677_v58, %v3613_v19  ;;  %v686_v61 = vrot.slane %v677_v58, %v3646_v45  ;;  %v827_v58 = vpop.f32.mrb[4].mxu0 }
 0x8b4   :  { %v689_v62 = vsub.f32 %v659_v52, %v682_v59  ;;  %v690_v63 = vsub.f32 %v662_v53, %v686_v61  ;;  %v3072_v59 = vpop.f32.mrb[5].mxu0 }
 0x8b6   :  { %v691_v1 = vmul.f32 1.442695, %v689_v62  ;;  %v693_v2 = vmul.f32 1.442695, %v690_v63 }
 0x8b8   :  { %3419 = vpow2.f32 %v691_v1 }
 0x8b9   :  { %3421 = vpow2.f32 %v693_v2 }
 0x8c2   :  { %v3420_v3 = vpop.eup %3419 }
 0x8c3   :  { %v3422_v6 = vpop.eup %3421  ;;  %698 = vperm.xlu0 %3396, %v3420_v3  }
 0x8c4   :  { %701 = vperm.xlu1 %3395, %v3422_v6  }
 0x942   :  { %v699_v8 = vpop.permute.xlu0 %698 }
 0x943   :  { %v702_v11 = vpop.permute.xlu1 %701  ;;  %v706_v12 = vrot.slane %v699_v8, %v3640_v38 }
 0x944   :  { %v710_v15 = vrot.slane %v702_v11, %v3640_v38 }
 0x946   :  { %v711_v18 = vsel %vm199_vm2, %v710_v15, %v706_v12 }
 0x947   :  { %v713_v21 = vsel %vm202_vm3, %v711_v18, 0.0 }
 0x948   :  { %714 = vadd.xlane.f32.xlu1 %v713_v21 }
 0x9d5   :  { %v715_v23 = vpop.xlane.xlu1 %714 }
 0x9d6   :  { %3423 = vrcp.f32 %v715_v23 }
 0x9e0   :  { %v3424_v26 = vpop.eup %3423 }
 0x9e1   :  { %v721_v27 = vrot.slane %v3424_v26, %v3613_v19  ;;  %v725_v32 = vrot.slane %v3424_v26, %v3646_v45 }
 0x9e3   :  { %v728_v31 = vmul.f32 %v3420_v3, %v721_v27  ;;  %v729_v34 = vmul.f32 %v3422_v6, %v725_v32 }
 0x9e5   :  { %732 = vperm.xlu0 %3396, %v728_v31  }
 0x9e9   :  { %737 = vperm.xlu0 %3396, %v729_v34  }
 0xa64   :  { %v733_v36 = vpop.permute.xlu0 %732 }
 0xa65   :  { %v740_v37 = vmul.f32 %v733_v36, %v3728_v30 }
 0xa67   :  { %v742_v39 = vsel %vm68_vm1, %v740_v37, 0.0 }
 0xa68   :  { %v743_v41 = vrot.slane %v742_v39, 4  ;;  %v738_v42 = vpop.permute.xlu0 %737 }
 0xa69   :  { %v741_v43 = vmul.f32 %v738_v42, %v3734_v33 }
 0xa6a   :  { %v744_v44 = vadd.f32 %v743_v41, %v742_v39 }
 0xa6b   :  { %v749_v46 = vsel %vm68_vm1, %v741_v43, 0.0 }
 0xa6c   :  { %v745_v47 = vrot.slane %v744_v44, 2  ;;  %v750_v48 = vrot.slane %v749_v46, 4 }
 0xa6e   :  { %v746_v49 = vadd.f32 %v745_v47, %v744_v44  ;;  %v751_v50 = vadd.f32 %v750_v48, %v749_v46 }
 0xa70   :  { %v752_v51 = vrot.slane %v751_v50, 2  ;;  %v747_v52 = vrot.slane %v746_v49, 1 }
 0xa72   :  { %v753_v53 = vadd.f32 %v752_v51, %v751_v50  ;;  %v748_v55 = vadd.f32 %v747_v52, %v746_v49 }
 0xa74   :  { %v754_v54 = vrot.slane %v753_v53, 1 }
 0xa76   :  { %v755_v56 = vadd.f32 %v754_v54, %v753_v53 }
 0xa78   :  { %v833_v57 = vsel %vm199_vm2, %v755_v56, %v748_v55 }
 0xa79   :  { %3082 = vmatmul.mubr.msk.f32.vlgmr.msra.gmra.mrb[6].mxu0 %vm68_vm1, %v833_v57 }
 0xa7a   :  { %3301 = vmatpush3.bf16.msra.mxu0 %v3587_v5  ;;  %3103 = vmatprep.mubr.msk.f32.mxu0 %vm3513_vm0, %v3514_v4 }
 0xa7b   :  { %3302 = vmatprep.subr.bf16.mxu0 %v3512_v0 }
 0xa7e   :  { %3304 = vmatpush3.bf16.msra.mxu0 %v3596_v7 }
 0xa7f   :  { %3315 = vmatprep.subr.bf16.mxu0 %v3512_v0 }
 0xb4c   :  { %v902_v61 = vpop.f32.mrb[6].mxu0 }
 0xb4d   :  { %v903_v62 = vadd.f32 %v902_v61, %v827_v58  ;;  %v3083_v63 = vpop.f32.mrb[7].mxu0 }
 0xb4f   :  { %v976_v1 = vadd.f32 %v3783_v40, %v903_v62 }
 0xb51   :  { %v977_v2 = vadd.f32 %v3750_v60, %v976_v1 }
 0xb53   :  { %3425 = vtanh.f32 %v977_v2  ;;  %v2873_v6 = vmul.f32 -1.442695, %v977_v2 }
 0xb55   :  { %3427 = vpow2.f32 %v2873_v6 }
 0xb5d   :  { %v3426_v3 = vpop.eup %3425 }
 0xb5e   :  { %987 = vrot.lane.b32.xlu0 %v3426_v3, %s3518_s12 }
 0xb5f   :  { %v3428_v8 = vpop.eup %3427 }
 0xb60   :  { %v981_v11 = vadd.f32 1.0, %v3428_v8 }
 0xb62   :  { %3429 = vrcp.f32 %v981_v11 }
 0xb6c   :  { %v3430_v12 = vpop.eup %3429 }
 0xb6d   :  { %v985_v21 = vmul.f32 %v3430_v12, %v3755_v17 }
 0xbd0   :  { %v988_v15 = vpop.permute.xlu0 %987 }
 0xbd1   :  { %v990_v18 = vmul.f32 %v3430_v12, %v988_v15 }
 0xbd3   :  { %992 = vrot.lane.b32.xlu0 %v990_v18, %s3519_s13 }
 0xc45   :  { %v993_v23 = vpop.permute.xlu0 %992 }
 0xc46   :  { %v3831_v40 = vadd.f32 %v993_v23, %v985_v21 }
 0xc48   :  { %3431 = vtanh.f32 %v3831_v40 }
 0xc52   :  { %v3432_v26 = vpop.eup %3431 }
 0xc53   :  { %998 = vrot.lane.b32.xlu0 %v3432_v26, %s3518_s12 }
 0xcc5   :  { %v999_v27 = vpop.permute.xlu0 %998 }
 0xcc6   :  { %v1001_v31 = vmul.f32 %v3430_v12, %v999_v27 }
 0xcc8   :  { %1003 = vrot.lane.b32.xlu0 %v1001_v31, %s3519_s13 }
 0xd3a   :  { %v1004_v32 = vpop.permute.xlu0 %1003 }
 0xd3b   :  { %2874 = vst.msk [vmem:[%s4172_s10 + $0x2] sm:$0x3] %vm544_vm8, %v1004_v32  ;;  %3104 = vmatmul.mubr.msk.f32.vlgmr.msra.gmra.mrb[8].mxu0 %vm68_vm1, %v1004_v32 }
 0xd3c   :  { %3317 = vmatpush3.bf16.msra.mxu0 %v3690_v20  ;;  %3132 = vmatprep.mubr.msk.f32.mxu0 %vm3513_vm0, %v3514_v4 }
 0xd3d   :  { %3318 = vmatprep.subr.bf16.mxu0 %v3512_v0 }
 0xd40   :  { %3320 = vmatpush3.bf16.msra.mxu0 %v3712_v28 }
 0xd41   :  { %3327 = vmatprep.subr.bf16.mxu0 %v3512_v0 }
 0xd43   :  { %3133 = vmatmul.mubr.msk.f32.vlgmr.msra.gmra.mrb[10].mxu0 %vm68_vm1, %v1004_v32 }
 0xd44   :  { %3330 = vmatpush3.bf16.msk.msra.mxu0 %vm3664_vm6, %v3662_v9  ;;  %3150 = vmatprep.mubr.msk.f32.mxu0 %vm3513_vm0, %v3514_v4 }
 0xd45   :  { %3331 = vmatprep.subr.bf16.mxu0 %v3512_v0 }
 0xe0e   :  { %v1076_v17 = vpop.f32.mrb[8].mxu0 }
 0xe0f   :  { %v1077_v34 = vadd.f32 %v3607_v13, %v1076_v17  ;;  %v3105_v35 = vpop.f32.mrb[9].mxu0 }
 0xe11   :  { %v1087_v36 = vrot.slane %v1077_v34, %v3609_v14 }
 0xe13   :  { %v1088_v37 = vcombine.high %v1087_v36, %v1087_v36  ;;  %v1095_v39 = vrot.slane %v1087_v36, %v3609_v14 }
 0xe15   :  { %v1102_v41 = vrot.slane %v1088_v37, %v3609_v14  ;;  %v1106_v42 = vrot.slane %v1095_v39, %v3613_v19  ;;  %v2876_v37 = vld [vmem:[%s4168_s2 + $0x4] sm:$0x3] }
 0xe16   :  { %v3859_v43 = vpop.f32.mrb[10].mxu0  ;;  %3111 = vmatmul.mubr.msk.f32.vlgmr.msra.gmra.mrb[8].mxu1 %vm285_vm7, %v2876_v37 }
 0xe17   :  { %v1110_v44 = vrot.slane %v1102_v41, %v3613_v19  ;;  %v1113_v46 = vadd.f32 %v1106_v42, %v3619_v22  ;;  %v3134_v47 = vpop.f32.mrb[11].mxu0  ;;  %3311 = vmatpush3.bf16.msra.mxu1 %v3681_v16  ;;  %3121 = vmatprep.mubr.msk.f32.mxu1 %vm3513_vm0, %v3514_v4 }
 0xe18   :  { %3312 = vmatprep.subr.bf16.mxu1 %v3512_v0 }
 0xe19   :  { %v1114_v48 = vadd.f32 %v1110_v44, %v3626_v25  ;;  %3433 = vtanh.f32 %v1113_v46 }
 0xe1b   :  { %3435 = vtanh.f32 %v1114_v48  ;;  %3314 = vmatpush3.bf16.msra.mxu1 %v3703_v24 }
 0xe1c   :  { %3321 = vmatprep.subr.bf16.mxu1 %v3512_v0 }
 0xe23   :  { %v3434_v49 = vpop.eup %3433 }
 0xe24   :  { %v1117_v50 = vmul.f32 %v3434_v49, %v3634_v29 }
 0xe25   :  { %v3436_v51 = vpop.eup %3435 }
 0xe26   :  { %v1119_v52 = vsel %vm68_vm1, %v1117_v50, 0.0  ;;  %v1118_v53 = vmul.f32 %v3436_v51, %v3634_v29 }
 0xe27   :  { %1120 = vadd.xlane.f32.xlu0 %v1119_v52 }
 0xe28   :  { %v1122_v54 = vsel %vm68_vm1, %v1118_v53, 0.0 }
 0xe29   :  { %1123 = vadd.xlane.f32.xlu1 %v1122_v54 }
 0xeb4   :  { %v1121_v55 = vpop.xlane.xlu0 %1120 }
 0xeb5   :  { %v1130_v57 = vrot.slane %v1121_v55, %v3640_v38 }
 0xeb6   :  { %v1124_v56 = vpop.xlane.xlu1 %1123 }
 0xeb7   :  { %v1134_v58 = vrot.slane %v1124_v56, %v3640_v38 }
 0xeb9   :  { %v1135_v59 = vsel %vm199_vm2, %v1134_v58, %v1130_v57 }
 0xeba   :  { %v1137_v61 = vsel %vm202_vm3, %v1135_v59, -inf }
 0xebb   :  { %1138 = vmax.xlane.f32.xlu1 %v1137_v61 }
 0xf48   :  { %v1139_v62 = vpop.xlane.xlu1 %1138 }
 0xf49   :  { %v1144_v63 = vrot.slane %v1139_v62, %v3613_v19  ;;  %v1148_v1 = vrot.slane %v1139_v62, %v3646_v45  ;;  %v1289_v62 = vpop.f32.mrb[8].mxu1 }
 0xf4b   :  { %v1151_v2 = vsub.f32 %v1121_v55, %v1144_v63  ;;  %v1152_v3 = vsub.f32 %v1124_v56, %v1148_v1  ;;  %v3112_v63 = vpop.f32.mrb[9].mxu1 }
 0xf4d   :  { %v1153_v6 = vmul.f32 1.442695, %v1151_v2  ;;  %v1155_v8 = vmul.f32 1.442695, %v1152_v3 }
 0xf4f   :  { %3437 = vpow2.f32 %v1153_v6 }
 0xf50   :  { %3439 = vpow2.f32 %v1155_v8 }
 0xf59   :  { %v3438_v11 = vpop.eup %3437 }
 0xf5a   :  { %v3440_v12 = vpop.eup %3439  ;;  %1160 = vperm.xlu1 %3395, %v3438_v11  }
 0xf5b   :  { %1163 = vperm.xlu0 %3396, %v3440_v12  }
 0xfd9   :  { %v1161_v15 = vpop.permute.xlu1 %1160 }
 0xfda   :  { %v1164_v18 = vpop.permute.xlu0 %1163  ;;  %v1168_v21 = vrot.slane %v1161_v15, %v3640_v38 }
 0xfdb   :  { %v1172_v23 = vrot.slane %v1164_v18, %v3640_v38 }
 0xfdd   :  { %v1173_v26 = vsel %vm199_vm2, %v1172_v23, %v1168_v21 }
 0xfde   :  { %v1175_v27 = vsel %vm202_vm3, %v1173_v26, 0.0 }
 0xfdf   :  { %1176 = vadd.xlane.f32.xlu1 %v1175_v27 }
0x106c   :  { %v1177_v31 = vpop.xlane.xlu1 %1176 }
0x106d   :  { %3441 = vrcp.f32 %v1177_v31 }
0x1077   :  { %v3442_v32 = vpop.eup %3441 }
0x1078   :  { %v1183_v17 = vrot.slane %v3442_v32, %v3613_v19  ;;  %v1187_v35 = vrot.slane %v3442_v32, %v3646_v45 }
0x107a   :  { %v1190_v34 = vmul.f32 %v3438_v11, %v1183_v17  ;;  %v1191_v36 = vmul.f32 %v3440_v12, %v1187_v35 }
0x107c   :  { %1194 = vperm.xlu0 %3396, %v1190_v34  }
0x1080   :  { %1199 = vperm.xlu0 %3396, %v1191_v36  }
0x10fb   :  { %v1195_v39 = vpop.permute.xlu0 %1194 }
0x10fc   :  { %v1202_v41 = vmul.f32 %v1195_v39, %v3728_v30 }
0x10fe   :  { %v1204_v42 = vsel %vm68_vm1, %v1202_v41, 0.0 }
0x10ff   :  { %v1205_v44 = vrot.slane %v1204_v42, 4  ;;  %v1200_v46 = vpop.permute.xlu0 %1199 }
0x1100   :  { %v1203_v47 = vmul.f32 %v1200_v46, %v3734_v33 }
0x1101   :  { %v1206_v48 = vadd.f32 %v1205_v44, %v1204_v42 }
0x1102   :  { %v1211_v49 = vsel %vm68_vm1, %v1203_v47, 0.0 }
0x1103   :  { %v1207_v50 = vrot.slane %v1206_v48, 2  ;;  %v1212_v51 = vrot.slane %v1211_v49, 4 }
0x1105   :  { %v1208_v52 = vadd.f32 %v1207_v50, %v1206_v48  ;;  %v1213_v53 = vadd.f32 %v1212_v51, %v1211_v49 }
0x1107   :  { %v1214_v54 = vrot.slane %v1213_v53, 2  ;;  %v1209_v55 = vrot.slane %v1208_v52, 1 }
0x1109   :  { %v1215_v56 = vadd.f32 %v1214_v54, %v1213_v53  ;;  %v1210_v58 = vadd.f32 %v1209_v55, %v1208_v52 }
0x110b   :  { %v1216_v57 = vrot.slane %v1215_v56, 1 }
0x110d   :  { %v1217_v59 = vadd.f32 %v1216_v57, %v1215_v56 }
0x110f   :  { %v1295_v61 = vsel %vm199_vm2, %v1217_v59, %v1210_v58 }
0x1110   :  { %3122 = vmatmul.mubr.msk.f32.vlgmr.msra.gmra.mrb[10].mxu1 %vm68_vm1, %v1295_v61 }
0x1111   :  { %3323 = vmatpush3.bf16.msra.mxu1 %v3587_v5  ;;  %3143 = vmatprep.mubr.msk.f32.mxu1 %vm3513_vm0, %v3514_v4 }
0x1112   :  { %3324 = vmatprep.subr.bf16.mxu1 %v3512_v0 }
0x1115   :  { %3326 = vmatpush3.bf16.msra.mxu1 %v3596_v7 }
0x1116   :  { %3337 = vmatprep.subr.bf16.mxu1 %v3512_v0 }
0x11e3   :  { %v1364_v1 = vpop.f32.mrb[10].mxu1 }
0x11e4   :  { %v1365_v2 = vadd.f32 %v1364_v1, %v1289_v62  ;;  %v3123_v3 = vpop.f32.mrb[11].mxu1 }
0x11e6   :  { %v1438_v6 = vadd.f32 %v3859_v43, %v1365_v2 }
0x11e8   :  { %v1439_v8 = vadd.f32 %v3750_v60, %v1438_v6 }
0x11ea   :  { %3443 = vtanh.f32 %v1439_v8  ;;  %v2881_v12 = vmul.f32 -1.442695, %v1439_v8 }
0x11ec   :  { %3445 = vpow2.f32 %v2881_v12 }
0x11f4   :  { %v3444_v11 = vpop.eup %3443 }
0x11f5   :  { %1449 = vrot.lane.b32.xlu0 %v3444_v11, %s3518_s12 }
0x11f6   :  { %v3446_v15 = vpop.eup %3445 }
0x11f7   :  { %v1443_v18 = vadd.f32 1.0, %v3446_v15 }
0x11f9   :  { %3447 = vrcp.f32 %v1443_v18 }
0x1203   :  { %v3448_v21 = vpop.eup %3447 }
0x1204   :  { %v1447_v27 = vmul.f32 %v3448_v21, %v3831_v40 }
0x1267   :  { %v1450_v23 = vpop.permute.xlu0 %1449 }
0x1268   :  { %v1452_v26 = vmul.f32 %v3448_v21, %v1450_v23 }
0x126a   :  { %1454 = vrot.lane.b32.xlu0 %v1452_v26, %s3519_s13 }
0x12dc   :  { %v1455_v31 = vpop.permute.xlu0 %1454 }
0x12dd   :  { %v3907_v43 = vadd.f32 %v1455_v31, %v1447_v27 }
0x12df   :  { %3449 = vtanh.f32 %v3907_v43 }
0x12e9   :  { %v3450_v32 = vpop.eup %3449 }
0x12ea   :  { %1460 = vrot.lane.b32.xlu0 %v3450_v32, %s3518_s12 }
0x135c   :  { %v1461_v17 = vpop.permute.xlu0 %1460 }
0x135d   :  { %v1463_v34 = vmul.f32 %v3448_v21, %v1461_v17 }
0x135f   :  { %1465 = vrot.lane.b32.xlu1 %v1463_v34, %s3519_s13 }
0x13d1   :  { %v1466_v35 = vpop.permute.xlu1 %1465 }
0x13d2   :  { %2882 = vst.msk [vmem:[%s4172_s10 + $0x4] sm:$0x3] %vm544_vm8, %v1466_v35  ;;  %3144 = vmatmul.mubr.msk.f32.vlgmr.msra.gmra.mrb[12].mxu1 %vm68_vm1, %v1466_v35 }
0x13d3   :  { %3339 = vmatpush3.bf16.msra.mxu1 %v3690_v20  ;;  %3172 = vmatprep.mubr.msk.f32.mxu1 %vm3513_vm0, %v3514_v4 }
0x13d4   :  { %3340 = vmatprep.subr.bf16.mxu1 %v3512_v0 }
0x13d7   :  { %3342 = vmatpush3.bf16.msra.mxu1 %v3712_v28 }
0x13d8   :  { %3349 = vmatprep.subr.bf16.mxu1 %v3512_v0 }
0x13da   :  { %3173 = vmatmul.mubr.msk.f32.vlgmr.msra.gmra.mrb[14].mxu1 %vm68_vm1, %v1466_v35 }
0x13db   :  { %3352 = vmatpush3.bf16.msk.msra.mxu1 %vm3664_vm6, %v3662_v9  ;;  %3190 = vmatprep.mubr.msk.f32.mxu1 %vm3513_vm0, %v3514_v4 }
0x13dc   :  { %3353 = vmatprep.subr.bf16.mxu1 %v3512_v0 }
0x14a5   :  { %v1538_v40 = vpop.f32.mrb[12].mxu1 }
0x14a6   :  { %v1539_v36 = vadd.f32 %v3607_v13, %v1538_v40  ;;  %v3145_v37 = vpop.f32.mrb[13].mxu1  ;;  %v2884_v40 = vld [vmem:[%s4168_s2 + $0x6] sm:$0x3] }
0x14a7   :  { %3151 = vmatmul.mubr.msk.f32.vlgmr.msra.gmra.mrb[12].mxu0 %vm285_vm7, %v2884_v40  ;;  %v4022_v40 = vld [vmem:[%s4164_s1] sm:$0xff] }
0x14a8   :  { %v1549_v39 = vrot.slane %v1539_v36, %v3609_v14  ;;  %3333 = vmatpush3.bf16.msra.mxu0 %v3681_v16  ;;  %3161 = vmatprep.mubr.msk.f32.mxu0 %vm3513_vm0, %v3514_v4 }
0x14a9   :  { %3334 = vmatprep.subr.bf16.mxu0 %v3512_v0 }
0x14aa   :  { %v1550_v41 = vcombine.high %v1549_v39, %v1549_v39  ;;  %v1557_v42 = vrot.slane %v1549_v39, %v3609_v14 }
0x14ac   :  { %v1564_v44 = vrot.slane %v1550_v41, %v3609_v14  ;;  %v1568_v46 = vrot.slane %v1557_v42, %v3613_v19  ;;  %3336 = vmatpush3.bf16.msra.mxu0 %v3703_v24 }
0x14ad   :  { %v3935_v47 = vpop.f32.mrb[14].mxu1  ;;  %3343 = vmatprep.subr.bf16.mxu0 %v3512_v0 }
0x14ae   :  { %v1572_v48 = vrot.slane %v1564_v44, %v3613_v19  ;;  %v1575_v49 = vadd.f32 %v1568_v46, %v3619_v22  ;;  %v3174_v50 = vpop.f32.mrb[15].mxu1 }
0x14b0   :  { %v1576_v51 = vadd.f32 %v1572_v48, %v3626_v25  ;;  %3451 = vtanh.f32 %v1575_v49 }
0x14b2   :  { %3453 = vtanh.f32 %v1576_v51 }
0x14ba   :  { %v3452_v13 = vpop.eup %3451 }
0x14bb   :  { %v1579_v52 = vmul.f32 %v3452_v13, %v3634_v29 }
0x14bc   :  { %v3454_v53 = vpop.eup %3453 }
0x14bd   :  { %v1581_v54 = vsel %vm68_vm1, %v1579_v52, 0.0  ;;  %v1580_v55 = vmul.f32 %v3454_v53, %v3634_v29 }
0x14be   :  { %1582 = vadd.xlane.f32.xlu0 %v1581_v54 }
0x14bf   :  { %v1584_v56 = vsel %vm68_vm1, %v1580_v55, 0.0 }
0x14c0   :  { %1585 = vadd.xlane.f32.xlu1 %v1584_v56 }
0x154b   :  { %v1583_v57 = vpop.xlane.xlu0 %1582 }
0x154c   :  { %v1592_v22 = vrot.slane %v1583_v57, %v3640_v38 }
0x154d   :  { %v1586_v58 = vpop.xlane.xlu1 %1585 }
0x154e   :  { %v1596_v25 = vrot.slane %v1586_v58, %v3640_v38 }
0x1550   :  { %v1597_v59 = vsel %vm199_vm2, %v1596_v25, %v1592_v22 }
0x1551   :  { %v1599_v61 = vsel %vm202_vm3, %v1597_v59, -inf }
0x1552   :  { %1600 = vmax.xlane.f32.xlu0 %v1599_v61 }
0x15df   :  { %v1601_v62 = vpop.xlane.xlu0 %1600 }
0x15e0   :  { %v1606_v63 = vrot.slane %v1601_v62, %v3613_v19  ;;  %v1610_v29 = vrot.slane %v1601_v62, %v3646_v45 }
0x15e2   :  { %v1613_v1 = vsub.f32 %v1583_v57, %v1606_v63  ;;  %v1614_v2 = vsub.f32 %v1586_v58, %v1610_v29 }
0x15e4   :  { %v1615_v3 = vmul.f32 1.442695, %v1613_v1  ;;  %v1617_v6 = vmul.f32 1.442695, %v1614_v2 }
0x15e6   :  { %3455 = vpow2.f32 %v1615_v3 }
0x15e7   :  { %3457 = vpow2.f32 %v1617_v6 }
0x15f0   :  { %v3456_v8 = vpop.eup %3455 }
0x15f1   :  { %v3458_v11 = vpop.eup %3457  ;;  %1622 = vperm.xlu0 %3396, %v3456_v8  }
0x15f2   :  { %1625 = vperm.xlu1 %3395, %v3458_v11  }
0x1670   :  { %v1623_v12 = vpop.permute.xlu0 %1622 }
0x1671   :  { %v1626_v15 = vpop.permute.xlu1 %1625  ;;  %v1630_v18 = vrot.slane %v1623_v12, %v3640_v38 }
0x1672   :  { %v1634_v21 = vrot.slane %v1626_v15, %v3640_v38 }
0x1674   :  { %v1635_v23 = vsel %vm199_vm2, %v1634_v21, %v1630_v18 }
0x1675   :  { %v1637_v26 = vsel %vm202_vm3, %v1635_v23, 0.0  ;;  %v4009_v23 = vld [vmem:[%s4163_s4] ss:$0 sm:$0xff] }
0x1676   :  { %1638 = vadd.xlane.f32.xlu0 %v1637_v26 }
0x1703   :  { %v1639_v27 = vpop.xlane.xlu0 %1638 }
0x1704   :  { %3459 = vrcp.f32 %v1639_v27 }
0x170e   :  { %v3460_v31 = vpop.eup %3459 }
0x170f   :  { %v1645_v32 = vrot.slane %v3460_v31, %v3613_v19  ;;  %v1649_v34 = vrot.slane %v3460_v31, %v3646_v45 }
0x1711   :  { %v1652_v17 = vmul.f32 %v3456_v8, %v1645_v32  ;;  %v1653_v35 = vmul.f32 %v3458_v11, %v1649_v34 }
0x1713   :  { %1656 = vperm.xlu1 %3395, %v1652_v17  }
0x1717   :  { %1661 = vperm.xlu1 %3395, %v1653_v35  }
0x1792   :  { %v1657_v36 = vpop.permute.xlu1 %1656 }
0x1793   :  { %v1664_v37 = vmul.f32 %v1657_v36, %v3728_v30 }
0x1795   :  { %v1666_v39 = vsel %vm68_vm1, %v1664_v37, 0.0 }
0x1796   :  { %v1667_v41 = vrot.slane %v1666_v39, 4  ;;  %v1662_v42 = vpop.permute.xlu1 %1661 }
0x1797   :  { %v1665_v44 = vmul.f32 %v1662_v42, %v3734_v33  ;;  %v1751_v33 = vpop.f32.mrb[12].mxu0 }
0x1798   :  { %v1668_v46 = vadd.f32 %v1667_v41, %v1666_v39  ;;  %v3152_v58 = vpop.f32.mrb[13].mxu0  ;;  %v4028_v39 = vld [vmem:[%s4164_s1 + $0x8] sm:$0xff] }
0x1799   :  { %v1673_v48 = vsel %vm68_vm1, %v1665_v44, 0.0  ;;  %v4034_v44 = vld [vmem:[%s4165_s5] ss:$0 sm:$0xff] }
0x179a   :  { %v1669_v49 = vrot.slane %v1668_v46, 2  ;;  %v1674_v50 = vrot.slane %v1673_v48, 4 }
0x179c   :  { %v1670_v51 = vadd.f32 %v1669_v49, %v1668_v46  ;;  %v1675_v13 = vadd.f32 %v1674_v50, %v1673_v48 }
0x179e   :  { %v1676_v52 = vrot.slane %v1675_v13, 2  ;;  %v1671_v53 = vrot.slane %v1670_v51, 1 }
0x17a0   :  { %v1677_v54 = vadd.f32 %v1676_v52, %v1675_v13  ;;  %v1672_v56 = vadd.f32 %v1671_v53, %v1670_v51 }
0x17a2   :  { %v1678_v55 = vrot.slane %v1677_v54, 1 }
0x17a4   :  { %v1679_v57 = vadd.f32 %v1678_v55, %v1677_v54 }
0x17a6   :  { %v1757_v30 = vsel %vm199_vm2, %v1679_v57, %v1672_v56 }
0x17a7   :  { %3162 = vmatmul.mubr.msk.f32.vlgmr.msra.gmra.mrb[14].mxu0 %vm68_vm1, %v1757_v30 }
0x17a8   :  { %3345 = vmatpush3.bf16.msra.mxu0 %v3587_v5  ;;  %3183 = vmatprep.mubr.msk.f32.mxu0 %vm3513_vm0, %v3514_v4 }
0x17a9   :  { %3346 = vmatprep.subr.bf16.mxu0 %v3512_v0 }
0x17ac   :  { %3348 = vmatpush3.bf16.msra.mxu0 %v3596_v7 }
0x17ad   :  { %3359 = vmatprep.subr.bf16.mxu0 %v3512_v0 }
0x187a   :  { %v1826_v22 = vpop.f32.mrb[14].mxu0 }
0x187b   :  { %v1827_v25 = vadd.f32 %v1826_v22, %v1751_v33  ;;  %v3163_v59 = vpop.f32.mrb[15].mxu0 }
0x187d   :  { %v1900_v61 = vadd.f32 %v3935_v47, %v1827_v25 }
0x187f   :  { %v1901_v62 = vadd.f32 %v3750_v60, %v1900_v61 }
0x1881   :  { %3461 = vtanh.f32 %v1901_v62  ;;  %v2889_v29 = vmul.f32 -1.442695, %v1901_v62 }
0x1883   :  { %3463 = vpow2.f32 %v2889_v29 }
0x188b   :  { %v3462_v63 = vpop.eup %3461 }
0x188c   :  { %1911 = vrot.lane.b32.xlu1 %v3462_v63, %s3518_s12 }
0x188d   :  { %v3464_v1 = vpop.eup %3463 }
0x188e   :  { %v1905_v2 = vadd.f32 1.0, %v3464_v1 }
0x1890   :  { %3465 = vrcp.f32 %v1905_v2 }
0x189a   :  { %v3466_v3 = vpop.eup %3465 }
0x189b   :  { %v1909_v11 = vmul.f32 %v3466_v3, %v3907_v43 }
0x18fe   :  { %v1912_v6 = vpop.permute.xlu1 %1911 }
0x18ff   :  { %v1914_v8 = vmul.f32 %v3466_v3, %v1912_v6 }
0x1901   :  { %1916 = vrot.lane.b32.xlu1 %v1914_v8, %s3519_s13 }
0x1973   :  { %v1917_v12 = vpop.permute.xlu1 %1916 }
0x1974   :  { %v3983_v47 = vadd.f32 %v1917_v12, %v1909_v11 }
0x1976   :  { %3467 = vtanh.f32 %v3983_v47 }
0x1980   :  { %v3468_v60 = vpop.eup %3467 }
0x1981   :  { %1922 = vrot.lane.b32.xlu1 %v3468_v60, %s3518_s12 }
0x19f3   :  { %v1923_v15 = vpop.permute.xlu1 %1922 }
0x19f4   :  { %v1925_v18 = vmul.f32 %v3466_v3, %v1923_v15 }
0x19f6   :  { %1927 = vrot.lane.b32.xlu0 %v1925_v18, %s3519_s13 }
0x1a68   :  { %v1928_v21 = vpop.permute.xlu0 %1927 }
0x1a69   :  { %2890 = vst.msk [vmem:[%s4172_s10 + $0x6] sm:$0x3] %vm544_vm8, %v1928_v21  ;;  %3184 = vmatmul.mubr.msk.f32.vlgmr.msra.gmra.mrb[16].mxu0 %vm68_vm1, %v1928_v21 }
0x1a6a   :  { %3361 = vmatpush3.bf16.msra.mxu0 %v3690_v20  ;;  %3212 = vmatprep.mubr.msk.f32.mxu0 %vm3513_vm0, %v3514_v4 }
0x1a6b   :  { %3362 = vmatprep.subr.bf16.mxu0 %v3512_v0 }
0x1a6e   :  { %3364 = vmatpush3.bf16.msra.mxu0 %v3712_v28 }
0x1a6f   :  { %3371 = vmatprep.subr.bf16.mxu0 %v3512_v0 }
0x1a71   :  { %3213 = vmatmul.mubr.msk.f32.vlgmr.msra.gmra.mrb[18].mxu0 %vm68_vm1, %v1928_v21  ;;  %v2892_v21 = vld [vmem:[%s4168_s2 + $0x8] sm:$0x3] }
0x1a72   :  { %3374 = vmatpush3.bf16.msk.msra.mxu0 %vm3664_vm6, %v3662_v9  ;;  %3230 = vmatprep.mubr.msk.f32.mxu0 %vm3513_vm0, %v3514_v4 }
0x1a73   :  { %3375 = vmatprep.subr.bf16.mxu0 %v3512_v0  ;;  %3191 = vmatmul.mubr.msk.f32.vlgmr.msra.gmra.mrb[16].mxu1 %vm285_vm7, %v2892_v21 }
0x1a74   :  { %3355 = vmatpush3.bf16.msra.mxu1 %v3681_v16  ;;  %3201 = vmatprep.mubr.msk.f32.mxu1 %vm3513_vm0, %v3514_v4 }
0x1a75   :  { %3356 = vmatprep.subr.bf16.mxu1 %v3512_v0 }
0x1a78   :  { %3358 = vmatpush3.bf16.msra.mxu1 %v3703_v24 }
0x1a79   :  { %3365 = vmatprep.subr.bf16.mxu1 %v3512_v0 }
0x1b3c   :  { %v2000_v43 = vpop.f32.mrb[16].mxu0 }
0x1b3d   :  { %v2001_v26 = vadd.f32 %v4009_v23, %v2000_v43  ;;  %v3185_v27 = vpop.f32.mrb[17].mxu0 }
0x1b3f   :  { %v2011_v31 = vrot.slane %v2001_v26, %v3609_v14  ;;  %v4065_v26 = vld [vmem:[%s4170_s0] sm:$0xff] }
0x1b41   :  { %v2012_v32 = vcombine.high %v2011_v31, %v2011_v31  ;;  %v2019_v10 = vrot.slane %v2011_v31, %v3609_v14 }
0x1b43   :  { %v2026_v9 = vrot.slane %v2012_v32, %v3609_v14  ;;  %v2030_v17 = vrot.slane %v2019_v10, %v3613_v19 }
0x1b44   :  { %v4016_v34 = vpop.f32.mrb[18].mxu0 }
0x1b45   :  { %v2034_v35 = vrot.slane %v2026_v9, %v3613_v19  ;;  %v2037_v36 = vadd.f32 %v4022_v40, %v2030_v17  ;;  %v3214_v37 = vpop.f32.mrb[19].mxu0  ;;  %v4072_v9 = vld [vmem:[%s4170_s0 + $0x8] sm:$0xff] }
0x1b47   :  { %v2038_v41 = vadd.f32 %v4028_v39, %v2034_v35  ;;  %3469 = vtanh.f32 %v2037_v36 }
0x1b49   :  { %3471 = vtanh.f32 %v2038_v41 }
0x1b51   :  { %v3470_v42 = vpop.eup %3469 }
0x1b52   :  { %v2041_v46 = vmul.f32 %v4034_v44, %v3470_v42 }
0x1b53   :  { %v3472_v48 = vpop.eup %3471 }
0x1b54   :  { %v2043_v49 = vsel %vm68_vm1, %v2041_v46, 0.0  ;;  %v2042_v50 = vmul.f32 %v4034_v44, %v3472_v48 }
0x1b55   :  { %2044 = vadd.xlane.f32.xlu1 %v2043_v49 }
0x1b56   :  { %v2046_v51 = vsel %vm68_vm1, %v2042_v50, 0.0 }
0x1b57   :  { %2047 = vadd.xlane.f32.xlu0 %v2046_v51 }
0x1be2   :  { %v2045_v13 = vpop.xlane.xlu1 %2044 }
0x1be3   :  { %v2054_v53 = vrot.slane %v2045_v13, %v3640_v38 }
0x1be4   :  { %v2048_v52 = vpop.xlane.xlu0 %2047 }
0x1be5   :  { %v2058_v54 = vrot.slane %v2048_v52, %v3640_v38 }
0x1be7   :  { %v2059_v55 = vsel %vm199_vm2, %v2058_v54, %v2054_v53  ;;  %v2213_v54 = vpop.f32.mrb[16].mxu1 }
0x1be8   :  { %v2061_v56 = vsel %vm202_vm3, %v2059_v55, -inf  ;;  %v3192_v55 = vpop.f32.mrb[17].mxu1 }
0x1be9   :  { %2062 = vmax.xlane.f32.xlu1 %v2061_v56 }
0x1c76   :  { %v2063_v57 = vpop.xlane.xlu1 %2062 }
0x1c77   :  { %v2068_v30 = vrot.slane %v2063_v57, %v3613_v19  ;;  %v2072_v33 = vrot.slane %v2063_v57, %v3646_v45 }
0x1c79   :  { %v2075_v58 = vsub.f32 %v2045_v13, %v2068_v30  ;;  %v2076_v22 = vsub.f32 %v2048_v52, %v2072_v33 }
0x1c7b   :  { %v2077_v25 = vmul.f32 1.442695, %v2075_v58  ;;  %v2079_v59 = vmul.f32 1.442695, %v2076_v22 }
0x1c7d   :  { %3473 = vpow2.f32 %v2077_v25 }
0x1c7e   :  { %3475 = vpow2.f32 %v2079_v59 }
0x1c87   :  { %v3474_v61 = vpop.eup %3473 }
0x1c88   :  { %v3476_v62 = vpop.eup %3475  ;;  %2084 = vperm.xlu1 %3395, %v3474_v61  }
0x1c89   :  { %2087 = vperm.xlu0 %3396, %v3476_v62  }
0x1d07   :  { %v2085_v63 = vpop.permute.xlu1 %2084 }
0x1d08   :  { %v2088_v29 = vpop.permute.xlu0 %2087  ;;  %v2092_v1 = vrot.slane %v2085_v63, %v3640_v38 }
0x1d09   :  { %v2096_v2 = vrot.slane %v2088_v29, %v3640_v38 }
0x1d0b   :  { %v2097_v3 = vsel %vm199_vm2, %v2096_v2, %v2092_v1 }
0x1d0c   :  { %v2099_v6 = vsel %vm202_vm3, %v2097_v3, 0.0 }
0x1d0d   :  { %2100 = vadd.xlane.f32.xlu1 %v2099_v6 }
0x1d9a   :  { %v2101_v8 = vpop.xlane.xlu1 %2100 }
0x1d9b   :  { %3477 = vrcp.f32 %v2101_v8 }
0x1da5   :  { %v3478_v11 = vpop.eup %3477 }
0x1da6   :  { %v2107_v12 = vrot.slane %v3478_v11, %v3613_v19  ;;  %v2111_v15 = vrot.slane %v3478_v11, %v3646_v45 }
0x1da8   :  { %v2114_v60 = vmul.f32 %v3474_v61, %v2107_v12  ;;  %v2115_v18 = vmul.f32 %v3476_v62, %v2111_v15 }
0x1daa   :  { %2118 = vperm.xlu0 %3396, %v2114_v60  }
0x1dae   :  { %2123 = vperm.xlu0 %3396, %v2115_v18  }
0x1e29   :  { %v2119_v43 = vpop.permute.xlu0 %2118 }
0x1e2a   :  { %v2126_v27 = vmul.f32 %v4065_v26, %v2119_v43 }
0x1e2c   :  { %v2128_v31 = vsel %vm68_vm1, %v2126_v27, 0.0 }
0x1e2d   :  { %v2129_v32 = vrot.slane %v2128_v31, 4  ;;  %v2124_v10 = vpop.permute.xlu0 %2123 }
0x1e2e   :  { %v2127_v17 = vmul.f32 %v4072_v9, %v2124_v10 }
0x1e2f   :  { %v2130_v35 = vadd.f32 %v2129_v32, %v2128_v31 }
0x1e30   :  { %v2135_v36 = vsel %vm68_vm1, %v2127_v17, 0.0 }
0x1e31   :  { %v2131_v37 = vrot.slane %v2130_v35, 2  ;;  %v2136_v41 = vrot.slane %v2135_v36, 4 }
0x1e33   :  { %v2132_v42 = vadd.f32 %v2131_v37, %v2130_v35  ;;  %v2137_v46 = vadd.f32 %v2136_v41, %v2135_v36 }
0x1e35   :  { %v2138_v48 = vrot.slane %v2137_v46, 2  ;;  %v2133_v49 = vrot.slane %v2132_v42, 1 }
0x1e37   :  { %v2139_v50 = vadd.f32 %v2138_v48, %v2137_v46  ;;  %v2134_v13 = vadd.f32 %v2133_v49, %v2132_v42 }
0x1e39   :  { %v2140_v51 = vrot.slane %v2139_v50, 1 }
0x1e3b   :  { %v2141_v52 = vadd.f32 %v2140_v51, %v2139_v50 }
0x1e3d   :  { %v2219_v53 = vsel %vm199_vm2, %v2141_v52, %v2134_v13 }
0x1e3e   :  { %3202 = vmatmul.mubr.msk.f32.vlgmr.msra.gmra.mrb[18].mxu1 %vm68_vm1, %v2219_v53 }
0x1e3f   :  { %3367 = vmatpush3.bf16.msra.mxu1 %v3587_v5  ;;  %3223 = vmatprep.mubr.msk.f32.mxu1 %vm3513_vm0, %v3514_v4  ;;  %v4088_v5 = vld [vmem:[%s4171_s9] ss:$0 sm:$0xff] }
0x1e40   :  { %3368 = vmatprep.subr.bf16.mxu1 %v3512_v0 }
0x1e43   :  { %3370 = vmatpush3.bf16.msra.mxu1 %v3596_v7 }
0x1e44   :  { %3381 = vmatprep.subr.bf16.mxu1 %v3512_v0 }
0x1f11   :  { %v2288_v56 = vpop.f32.mrb[18].mxu1 }
0x1f12   :  { %v2289_v57 = vadd.f32 %v2288_v56, %v2213_v54  ;;  %v3203_v30 = vpop.f32.mrb[19].mxu1 }
0x1f14   :  { %v2362_v33 = vadd.f32 %v4016_v34, %v2289_v57 }
0x1f16   :  { %v2363_v58 = vadd.f32 %v4088_v5, %v2362_v33 }
0x1f18   :  { %3479 = vtanh.f32 %v2363_v58  ;;  %v2897_v7 = vmul.f32 -1.442695, %v2363_v58 }
0x1f1a   :  { %3481 = vpow2.f32 %v2897_v7 }
0x1f22   :  { %v3480_v22 = vpop.eup %3479 }
0x1f23   :  { %2373 = vrot.lane.b32.xlu0 %v3480_v22, %s3518_s12 }
0x1f24   :  { %v3482_v25 = vpop.eup %3481 }
0x1f25   :  { %v2367_v59 = vadd.f32 1.0, %v3482_v25 }
0x1f27   :  { %3483 = vrcp.f32 %v2367_v59 }
0x1f31   :  { %v3484_v61 = vpop.eup %3483 }
0x1f32   :  { %v2371_v34 = vmul.f32 %v3484_v61, %v3983_v47 }
0x1f95   :  { %v2374_v62 = vpop.permute.xlu0 %2373 }
0x1f96   :  { %v2376_v63 = vmul.f32 %v3484_v61, %v2374_v62 }
0x1f98   :  { %2378 = vrot.lane.b32.xlu0 %v2376_v63, %s3519_s13 }
0x200a   :  { %v2379_v29 = vpop.permute.xlu0 %2378 }
0x200b   :  { %v4094_v1 = vadd.f32 %v2379_v29, %v2371_v34 }
0x200d   :  { %3485 = vtanh.f32 %v4094_v1 }
0x2017   :  { %v3486_v2 = vpop.eup %3485 }
0x2018   :  { %2384 = vrot.lane.b32.xlu0 %v3486_v2, %s3518_s12 }
0x208a   :  { %v2385_v3 = vpop.permute.xlu0 %2384 }
0x208b   :  { %v2387_v6 = vmul.f32 %v3484_v61, %v2385_v3 }
0x208d   :  { %2389 = vrot.lane.b32.xlu1 %v2387_v6, %s3519_s13 }
0x20ff   :  { %v2390_v8 = vpop.permute.xlu1 %2389 }
0x2100   :  { %2898 = vst.msk [vmem:[%s4172_s10 + $0x8] sm:$0x3] %vm544_vm8, %v2390_v8  ;;  %3224 = vmatmul.mubr.msk.f32.vlgmr.msra.gmra.mrb[20].mxu1 %vm68_vm1, %v2390_v8 }
0x2101   :  { %3383 = vmatpush3.bf16.msra.mxu1 %v3690_v20  ;;  %3252 = vmatprep.mubr.msk.f32.mxu1 %vm3513_vm0, %v3514_v4 }
0x2102   :  { %3384 = vmatprep.subr.bf16.mxu1 %v3512_v0 }
0x2105   :  { %3386 = vmatpush3.bf16.msra.mxu1 %v3712_v28 }
0x2108   :  { %3253 = vmatmul.mubr.msk.f32.vlgmr.msra.gmra.mrb[22].mxu1 %vm68_vm1, %v2390_v8 }
0x21d3   :  { %v2462_v47 = vpop.f32.mrb[20].mxu1 }
0x21d4   :  { %v2463_v11 = vadd.f32 %v4009_v23, %v2462_v47  ;;  %v3225_v12 = vpop.f32.mrb[21].mxu1 }
0x21d6   :  { %v2473_v60 = vrot.slane %v2463_v11, %v3609_v14 }
0x21d8   :  { %v2474_v15 = vcombine.high %v2473_v60, %v2473_v60  ;;  %v2481_v18 = vrot.slane %v2473_v60, %v3609_v14 }
0x21da   :  { %v2488_v20 = vrot.slane %v2474_v15, %v3609_v14  ;;  %v2492_v21 = vrot.slane %v2481_v18, %v3613_v19 }
0x21db   :  { %v4115_v43 = vpop.f32.mrb[22].mxu1 }
0x21dc   :  { %v2496_v27 = vrot.slane %v2488_v20, %v3613_v19  ;;  %v2499_v28 = vadd.f32 %v4022_v40, %v2492_v21  ;;  %v3254_v31 = vpop.f32.mrb[23].mxu1 }
0x21de   :  { %v2500_v32 = vadd.f32 %v4028_v39, %v2496_v27  ;;  %3487 = vtanh.f32 %v2499_v28 }
0x21e0   :  { %3489 = vtanh.f32 %v2500_v32 }
0x21e8   :  { %v3488_v23 = vpop.eup %3487 }
0x21e9   :  { %v2503_v10 = vmul.f32 %v4034_v44, %v3488_v23 }
0x21ea   :  { %v3490_v17 = vpop.eup %3489 }
0x21eb   :  { %v2505_v35 = vsel %vm68_vm1, %v2503_v10, 0.0  ;;  %v2504_v14 = vmul.f32 %v4034_v44, %v3490_v17 }
0x21ec   :  { %2506 = vadd.xlane.f32.xlu0 %v2505_v35 }
0x21ed   :  { %v2508_v36 = vsel %vm68_vm1, %v2504_v14, 0.0 }
0x21ee   :  { %2509 = vadd.xlane.f32.xlu1 %v2508_v36 }
0x2279   :  { %v2507_v37 = vpop.xlane.xlu0 %2506 }
0x227a   :  { %v2516_v40 = vrot.slane %v2507_v37, %v3640_v38 }
0x227b   :  { %v2510_v41 = vpop.xlane.xlu1 %2509 }
0x227c   :  { %v2520_v39 = vrot.slane %v2510_v41, %v3640_v38 }
0x227e   :  { %v2521_v42 = vsel %vm199_vm2, %v2520_v39, %v2516_v40 }
0x227f   :  { %v2523_v46 = vsel %vm202_vm3, %v2521_v42, -inf }
0x2280   :  { %2524 = vmax.xlane.f32.xlu0 %v2523_v46 }
0x230d   :  { %v2525_v48 = vpop.xlane.xlu0 %2524 }
0x230e   :  { %v2530_v49 = vrot.slane %v2525_v48, %v3613_v19  ;;  %v2534_v44 = vrot.slane %v2525_v48, %v3646_v45 }
0x2310   :  { %v2537_v50 = vsub.f32 %v2507_v37, %v2530_v49  ;;  %v2538_v51 = vsub.f32 %v2510_v41, %v2534_v44 }
0x2312   :  { %v2539_v13 = vmul.f32 1.442695, %v2537_v50  ;;  %v2541_v52 = vmul.f32 1.442695, %v2538_v51 }
0x2314   :  { %3491 = vpow2.f32 %v2539_v13 }
0x2315   :  { %3493 = vpow2.f32 %v2541_v52 }
0x231e   :  { %v3492_v53 = vpop.eup %3491 }
0x231f   :  { %v3494_v54 = vpop.eup %3493  ;;  %2546 = vperm.xlu0 %3396, %v3492_v53  }
0x2320   :  { %2549 = vperm.xlu1 %3395, %v3494_v54  }
0x239e   :  { %v2547_v55 = vpop.permute.xlu0 %2546 }
0x239f   :  { %v2550_v56 = vpop.permute.xlu1 %2549  ;;  %v2554_v57 = vrot.slane %v2547_v55, %v3640_v38 }
0x23a0   :  { %v2558_v30 = vrot.slane %v2550_v56, %v3640_v38  ;;  %v2900_v38 = vld [vmem:[%s4168_s2 + $0xa] sm:$0x3] }
0x23a1   :  { %3231 = vmatmul.mubr.msk.f32.vlgmr.msra.gmra.mrb[20].mxu0 %vm285_vm7, %v2900_v38 }
0x23a2   :  { %v2559_v33 = vsel %vm199_vm2, %v2558_v30, %v2554_v57  ;;  %3377 = vmatpush3.bf16.msra.mxu0 %v3681_v16  ;;  %3241 = vmatprep.mubr.msk.f32.mxu0 %vm3513_vm0, %v3514_v4 }
0x23a3   :  { %v2561_v58 = vsel %vm202_vm3, %v2559_v33, 0.0  ;;  %3378 = vmatprep.subr.bf16.mxu0 %v3512_v0 }
0x23a4   :  { %2562 = vadd.xlane.f32.xlu0 %v2561_v58 }
0x23a6   :  { %3380 = vmatpush3.bf16.msra.mxu0 %v3703_v24 }
0x2431   :  { %v2563_v22 = vpop.xlane.xlu0 %2562 }
0x2432   :  { %3495 = vrcp.f32 %v2563_v22 }
0x243c   :  { %v3496_v7 = vpop.eup %3495 }
0x243d   :  { %v2569_v25 = vrot.slane %v3496_v7, %v3613_v19  ;;  %v2573_v61 = vrot.slane %v3496_v7, %v3646_v45 }
0x243f   :  { %v2576_v59 = vmul.f32 %v3492_v53, %v2569_v25  ;;  %v2577_v62 = vmul.f32 %v3494_v54, %v2573_v61 }
0x2441   :  { %2580 = vperm.xlu1 %3395, %v2576_v59  }
0x2445   :  { %2585 = vperm.xlu1 %3395, %v2577_v62  }
0x2474   :  { %v2675_v18 = vpop.f32.mrb[20].mxu0 }
0x2475   :  { %v3232_v20 = vpop.f32.mrb[21].mxu0 }
0x24c0   :  { %v2581_v19 = vpop.permute.xlu1 %2580 }
0x24c1   :  { %v2588_v45 = vmul.f32 %v4065_v26, %v2581_v19 }
0x24c3   :  { %v2590_v63 = vsel %vm68_vm1, %v2588_v45, 0.0 }
0x24c4   :  { %v2591_v34 = vrot.slane %v2590_v63, 4  ;;  %v2586_v29 = vpop.permute.xlu1 %2585 }
0x24c5   :  { %v2589_v2 = vmul.f32 %v4072_v9, %v2586_v29 }
0x24c6   :  { %v2592_v3 = vadd.f32 %v2591_v34, %v2590_v63 }
0x24c7   :  { %v2597_v6 = vsel %vm68_vm1, %v2589_v2, 0.0 }
0x24c8   :  { %v2593_v16 = vrot.slane %v2592_v3, 2  ;;  %v2598_v8 = vrot.slane %v2597_v6, 4 }
0x24ca   :  { %v2594_v47 = vadd.f32 %v2593_v16, %v2592_v3  ;;  %v2599_v4 = vadd.f32 %v2598_v8, %v2597_v6 }
0x24cc   :  { %v2600_v11 = vrot.slane %v2599_v4, 2  ;;  %v2595_v0 = vrot.slane %v2594_v47, 1 }
0x24ce   :  { %v2601_v12 = vadd.f32 %v2600_v11, %v2599_v4  ;;  %v2596_v60 = vadd.f32 %v2595_v0, %v2594_v47 }
0x24d0   :  { %v2602_v24 = vrot.slane %v2601_v12, 1 }
0x24d2   :  { %v2603_v15 = vadd.f32 %v2602_v24, %v2601_v12 }
0x24d4   :  { %v2681_v26 = vsel %vm199_vm2, %v2603_v15, %v2596_v60 }
0x24d5   :  { %3242 = vmatmul.mubr.msk.f32.vlgmr.msra.gmra.mrb[22].mxu0 %vm68_vm1, %v2681_v26 }
0x25a8   :  { %v2750_v9 = vpop.f32.mrb[22].mxu0 }
0x25a9   :  { %v2751_v21 = vadd.f32 %v2750_v9, %v2675_v18  ;;  %v3243_v27 = vpop.f32.mrb[23].mxu0 }
0x25ab   :  { %v2824_v28 = vadd.f32 %v4115_v43, %v2751_v21 }
0x25ad   :  { %v2825_v31 = vadd.f32 %v4088_v5, %v2824_v28 }
0x25af   :  { %3497 = vtanh.f32 %v2825_v31  ;;  %v2905_v23 = vmul.f32 -1.442695, %v2825_v31 }
0x25b1   :  { %3499 = vpow2.f32 %v2905_v23 }
0x25b9   :  { %v3498_v32 = vpop.eup %3497 }
0x25ba   :  { %2835 = vrot.lane.b32.xlu1 %v3498_v32, %s3518_s12 }
0x25bb   :  { %v3500_v10 = vpop.eup %3499 }
0x25bc   :  { %v2829_v17 = vadd.f32 1.0, %v3500_v10 }
0x25be   :  { %3501 = vrcp.f32 %v2829_v17 }
0x25c8   :  { %v3502_v35 = vpop.eup %3501 }
0x25c9   :  { %v2833_v37 = vmul.f32 %v3502_v35, %v4094_v1 }
0x262c   :  { %v2836_v14 = vpop.permute.xlu1 %2835 }
0x262d   :  { %v2838_v36 = vmul.f32 %v3502_v35, %v2836_v14 }
0x262f   :  { %2840 = vrot.lane.b32.xlu1 %v2838_v36, %s3519_s13 }
0x26a1   :  { %v2841_v41 = vpop.permute.xlu1 %2840 }
0x26a2   :  { %v2843_v43 = vadd.f32 %v2841_v41, %v2833_v37 }
0x26a4   :  { %3503 = vtanh.f32 %v2843_v43 }
0x26ae   :  { %v3504_v5 = vpop.eup %3503 }
0x26af   :  { %2846 = vrot.lane.b32.xlu1 %v3504_v5, %s3518_s12 }
0x2721   :  { %v2847_v40 = vpop.permute.xlu1 %2846 }
0x2722   :  { %v2849_v39 = vmul.f32 %v3502_v35, %v2847_v40 }
0x2724   :  { %2851 = vrot.lane.b32.xlu0 %v2849_v39, %s3519_s13 }
0x2796   :  { %v2852_v42 = vpop.permute.xlu0 %2851 }
0x2797   :  { %2906 = vst.msk [vmem:[%s4172_s10 + $0xa] sm:$0x3] %vm544_vm8, %v2852_v42 }

</bundles_post_ra>
